<compile_context>
chip_gen: v7x
topology: tpu7x:2x2x1
jax: 0.10.0
libtpu: 0.0.40
codegen_flags: <defaults>
</compile_context>

<pallas_src>
import functools

import numpy as np
import jax
import jax.numpy as jnp
from jax.experimental import pallas as pl
from jax.experimental.pallas import tpu as pltpu

# ----------------------------- module hyper-params -----------------------------
DIM_IN = 16
DIM_OUT = 16
EXP_RATIO = 1.0
DIM_MID = int(DIM_IN * EXP_RATIO)           # 16
DIM_HEAD = 8
NUM_HEAD = DIM_IN // DIM_HEAD               # 2
DH_V = DIM_MID // NUM_HEAD                  # 8
WINDOW = 7
L_WIN = WINDOW * WINDOW                     # 49 tokens / window
LPAD = ((L_WIN + 7) // 8) * 8               # 56, sublane-aligned window stride
SCALE = DIM_HEAD ** (-0.5)
EPS = 1e-6
DW_KS = 3
PAD_ROWS = 24                               # slab guard rows (>= W+3, multiple of 8)


# ----------------------------- fused Pallas kernel ------------------------------
def _irmb_kernel(xw_ref, xs_ref, p2_ref, wqkv_ref, bqkv_ref, wdw_ref,
                 bn2s_ref, bn2b_ref, wproj_ref, o_ref,
                 qkv_ref, xspa_ref, slab_ref, *, bb, nw, wp2, ps):
    """Whole iRMB forward for a block of `bb` images.

    xw_ref:   (bb, nw*LPAD, C)  window-major tokens (token rows 49..55 of each window are 0).
    xs_ref:   (bb, ps, C)       raw input in dense zero-bordered slab layout (outer shortcut).
    p2_ref:   (ps, nw*LPAD)     0/1 scatter matrix: windowed token -> padded spatial row.
    wqkv_ref: (C, 3C)           BN1- and scale-folded qk|v 1x1 conv weight;  bqkv: (1, 3C) bias.
    wdw_ref:  (9, C)            depthwise 3x3 taps, row-major (dy, dx).
    bn2s/bn2b:(1, C)            folded inference BatchNorm2d of conv_local.
    wproj_ref:(C, C)            proj 1x1 conv weight.
    o_ref:    (bb, ps, C)       output in dense slab layout (border rows are discarded).
    scratches: qkv (bb*nw*LPAD, 3C), xspa (bb, nw*LPAD, C), slab (bb*ps + 2*PAD_ROWS, C).
    """
    C = DIM_IN
    ntok = bb * nw * LPAD
    nb = bb * nw
    nrows = bb * ps

    # (1) BN1 + qk/v 1x1 convs (+ attention scale), one MXU pass over every token in the block.
    x_tok = xw_ref[...].reshape(ntok, C).astype(jnp.float32)
    qkv_ref[...] = (jnp.dot(x_tok, wqkv_ref[...], preferred_element_type=jnp.float32)
                    + bqkv_ref[...])

    # (2) windowed multi-head attention, batched over (images * windows).
    key_ok = jax.lax.broadcasted_iota(jnp.int32, (1, 1, LPAD), 2) < L_WIN
    for h in range(NUM_HEAD):
        q = qkv_ref[:, h * DIM_HEAD:(h + 1) * DIM_HEAD].reshape(nb, LPAD, DIM_HEAD)
        k = qkv_ref[:, C + h * DIM_HEAD:C + (h + 1) * DIM_HEAD].reshape(nb, LPAD, DIM_HEAD)
        v = jnp.maximum(qkv_ref[:, 2 * C + h * DH_V:2 * C + (h + 1) * DH_V],
                        0.0).reshape(nb, LPAD, DH_V)                      # ReLU of v-conv
        s = jax.lax.dot_general(q, k, (((2,), (2,)), ((0,), (0,))),
                                preferred_element_type=jnp.float32)       # (nb, LPAD, LPAD)
        s = jnp.where(key_ok, s, -1e30)                                   # mask pad keys
        s = s - jnp.max(s, axis=-1, keepdims=True)
        p = jnp.exp(s)
        p = p * pl.reciprocal(jnp.sum(p, axis=-1, keepdims=True), approx=True)
        o_h = jax.lax.dot_general(p, v, (((2,), (1,)), ((0,), (0,))),
                                  preferred_element_type=jnp.float32)     # (nb, LPAD, dh)
        xspa_ref[:, :, h * DH_V:(h + 1) * DH_V] = o_h.reshape(bb, nw * LPAD, DH_V)

    # (3) scatter the windowed attention output into dense zero-bordered spatial slabs (MXU).
    #     The scatter matrix has zero rows for border positions and zero columns for the pad
    #     tokens, so the slab border is produced zeroed for free.
    slab_ref[0:PAD_ROWS, :] = jnp.zeros((PAD_ROWS, DIM_MID), jnp.float32)
    slab_ref[PAD_ROWS + nrows:2 * PAD_ROWS + nrows, :] = jnp.zeros(
        (PAD_ROWS, DIM_MID), jnp.float32)
    p2 = p2_ref[...]
    for b in range(bb):
        slab_ref[PAD_ROWS + b * ps:PAD_ROWS + (b + 1) * ps, :] = jnp.dot(
            p2, xspa_ref[b], preferred_element_type=jnp.float32)

    # (4) conv_local: depthwise 3x3 (pad=1) + BN2 + SiLU + local skip on the stacked slabs.
    #     A tap (dy, dx) is a single sublane-shifted slice of the slab; per-image interior
    #     rows never read across image boundaries because every image's border rows are zero.
    wdw = wdw_ref[...]
    acc = jnp.zeros((nrows, DIM_MID), jnp.float32)
    for dy in range(DW_KS):
        for dx in range(DW_KS):
            start = PAD_ROWS + (dy - 1) * wp2 + (dx - 1)
            tap = wdw[dy * DW_KS + dx:dy * DW_KS + dx + 1, :]              # (1, C)
            acc = acc + slab_ref[start:start + nrows, :] * tap
    yl = acc * bn2s_ref[...] + bn2b_ref[...]
    yl = yl * jax.nn.sigmoid(yl)                                           # SiLU
    x2 = slab_ref[PAD_ROWS:PAD_ROWS + nrows, :] + yl                      # conv_local skip

    # (5) proj 1x1 conv over all dense tokens of the block + outer residual shortcut.
    x3 = jnp.dot(x2, wproj_ref[...], preferred_element_type=jnp.float32)
    out = xs_ref[...].reshape(nrows, DIM_IN).astype(jnp.float32) + x3
    o_ref[...] = out.reshape(bb, ps, DIM_OUT).astype(o_ref.dtype)


# ----------------------------- wrapper helpers ----------------------------------
def _pick_block_batch(B):
    """Images per grid step: batch up to 8, prefer an even grid length (v7x megacore)."""
    for bb in (8, 4, 2, 1):
        if B % bb == 0 and (B // bb) % 2 == 0:
            return bb
    for bb in (8, 4, 2, 1):
        if B % bb == 0:
            return bb
    return 1


def _scatter_matrix(H, W, ws):
    """0/1 matrix mapping window-major padded tokens -> padded dense spatial rows."""
    n1, n2 = H // ws, W // ws
    wp2 = W + 2
    ps = (H + 2) * wp2
    P = np.zeros((ps, n1 * n2 * LPAD), np.float32)
    for i1 in range(n1):
        for i2 in range(n2):
            widx = i1 * n2 + i2
            for h1 in range(ws):
                for w1 in range(ws):
                    t = widx * LPAD + h1 * ws + w1
                    p = (1 + h1 * n1 + i1) * wp2 + (1 + w1 * n2 + i2)
                    P[p, t] = 1.0
    return jnp.asarray(P)


# ----------------------------- public forward ------------------------------------
@jax.jit
def irmb_forward(x_nchw, params):
    B, C, H, W = x_nchw.shape
    assert C == DIM_IN
    ws = WINDOW
    # TODO(synk): zero-padding path (F.pad branch) for H, W not multiples of window_size.
    assert H % ws == 0 and W % ws == 0
    n1, n2 = H // ws, W // ws
    nw = n1 * n2
    wp2, hp2 = W + 2, H + 2
    ps = hp2 * wp2
    bb = _pick_block_batch(B)
    f32 = jnp.float32
    xf = x_nchw.astype(f32)

    # window-major tokens, per-window token count padded 49 -> 56 (sublane aligned)
    xw = xf.reshape(B, C, ws, n1, ws, n2)
    xw = jnp.transpose(xw, (0, 3, 5, 2, 4, 1)).reshape(B, nw, L_WIN, C)
    xw = jnp.pad(xw, ((0, 0), (0, 0), (0, LPAD - L_WIN), (0, 0))).reshape(B, nw * LPAD, C)

    # raw input in dense zero-bordered slab layout (outer shortcut / output layout)
    xs = jnp.pad(jnp.transpose(xf, (0, 2, 3, 1)), ((0, 0), (1, 1), (1, 1), (0, 0)))
    xs = xs.reshape(B, ps, C)

    # fold inference BN1 and the attention scale into one qk|v weight / bias
    s1 = params['bn1_gamma'] / jnp.sqrt(params['bn1_var'] + EPS)
    b1 = params['bn1_beta'] - params['bn1_mean'] * s1
    w_qkv = jnp.concatenate([params['w_qk'], params['w_v']], axis=1).astype(f32)  # (C, 3C)
    w_eff = s1[:, None].astype(f32) * w_qkv
    b_eff = (b1[None, :].astype(f32) @ w_qkv)                                     # (1, 3C)
    qscale = jnp.concatenate([jnp.full((DIM_IN,), SCALE, f32),
                              jnp.ones((2 * DIM_IN,), f32)])[None, :]
    w_eff = w_eff * qscale
    b_eff = b_eff * qscale

    s2 = params['bn2_gamma'] / jnp.sqrt(params['bn2_var'] + EPS)
    b2 = params['bn2_beta'] - params['bn2_mean'] * s2

    p2 = _scatter_matrix(H, W, ws)

    kernel = functools.partial(_irmb_kernel, bb=bb, nw=nw, wp2=wp2, ps=ps)
    out_slab = pl.pallas_call(
        kernel,
        out_shape=jax.ShapeDtypeStruct((B, ps, DIM_OUT), x_nchw.dtype),
        grid=(B // bb,),
        in_specs=[
            pl.BlockSpec((bb, nw * LPAD, DIM_IN), lambda i: (i, 0, 0)),
            pl.BlockSpec((bb, ps, DIM_IN), lambda i: (i, 0, 0)),
            pl.BlockSpec((ps, nw * LPAD), lambda i: (0, 0)),
            pl.BlockSpec((DIM_IN, 3 * DIM_IN), lambda i: (0, 0)),
            pl.BlockSpec((1, 3 * DIM_IN), lambda i: (0, 0)),
            pl.BlockSpec((DW_KS * DW_KS, DIM_MID), lambda i: (0, 0)),
            pl.BlockSpec((1, DIM_MID), lambda i: (0, 0)),
            pl.BlockSpec((1, DIM_MID), lambda i: (0, 0)),
            pl.BlockSpec((DIM_MID, DIM_OUT), lambda i: (0, 0)),
        ],
        out_specs=pl.BlockSpec((bb, ps, DIM_OUT), lambda i: (i, 0, 0)),
        scratch_shapes=[
            pltpu.VMEM((bb * nw * LPAD, 3 * DIM_IN), jnp.float32),
            pltpu.VMEM((bb, nw * LPAD, DIM_MID), jnp.float32),
            pltpu.VMEM((bb * ps + 2 * PAD_ROWS, DIM_MID), jnp.float32),
        ],
        compiler_params=pltpu.CompilerParams(dimension_semantics=("parallel",)),
    )(xw, xs, p2, w_eff, b_eff,
      params['w_dw'].astype(f32).reshape(DW_KS * DW_KS, DIM_MID),
      s2[None, :].astype(f32), b2[None, :].astype(f32),
      params['w_proj'].astype(f32))

    out = out_slab.reshape(B, hp2, wp2, DIM_OUT)[:, 1:H + 1, 1:W + 1, :]
    return jnp.transpose(out, (0, 3, 1, 2))


# ----------------------------- params & reference --------------------------------
def init_params(key):
    ks = jax.random.split(key, 12)
    p = {}
    p['bn1_gamma'] = 1.0 + 0.1 * jax.random.normal(ks[0], (DIM_IN,), jnp.float32)
    p['bn1_beta'] = 0.1 * jax.random.normal(ks[1], (DIM_IN,), jnp.float32)
    p['bn1_mean'] = 0.1 * jax.random.normal(ks[2], (DIM_IN,), jnp.float32)
    p['bn1_var'] = 1.0 + 0.1 * jnp.abs(jax.random.normal(ks[3], (DIM_IN,), jnp.float32))
    p['w_qk'] = 0.1 * jax.random.normal(ks[4], (DIM_IN, 2 * DIM_IN), jnp.float32)
    p['w_v'] = 0.1 * jax.random.normal(ks[5], (DIM_IN, DIM_MID), jnp.float32)
    p['w_dw'] = 0.1 * jax.random.normal(ks[6], (DW_KS, DW_KS, DIM_MID), jnp.float32)
    p['bn2_gamma'] = 1.0 + 0.1 * jax.random.normal(ks[7], (DIM_MID,), jnp.float32)
    p['bn2_beta'] = 0.1 * jax.random.normal(ks[8], (DIM_MID,), jnp.float32)
    p['bn2_mean'] = 0.1 * jax.random.normal(ks[9], (DIM_MID,), jnp.float32)
    p['bn2_var'] = 1.0 + 0.1 * jnp.abs(jax.random.normal(ks[10], (DIM_MID,), jnp.float32))
    p['w_proj'] = 0.1 * jax.random.normal(ks[11], (DIM_MID, DIM_OUT), jnp.float32)
    return p


def irmb_reference(x_nchw, p):
    """Pure-JAX mirror of the PyTorch forward (NCHW, inference-mode BN)."""
    B, C, H, W = x_nchw.shape
    shortcut = x_nchw
    s1 = p['bn1_gamma'] / jnp.sqrt(p['bn1_var'] + EPS)
    b1 = p['bn1_beta'] - p['bn1_mean'] * s1
    xn = x_nchw * s1[None, :, None, None] + b1[None, :, None, None]

    ws = WINDOW
    n1, n2 = H // ws, W // ws
    xw = xn.reshape(B, C, ws, n1, ws, n2)
    xw = jnp.transpose(xw, (0, 3, 5, 1, 2, 4)).reshape(B * n1 * n2, C, ws, ws)
    b, L = B * n1 * n2, ws * ws

    x_tok = jnp.transpose(xw.reshape(b, C, L), (0, 2, 1))                 # (b, L, C)
    qk = x_tok @ p['w_qk']
    q = jnp.transpose(qk[..., :C].reshape(b, L, NUM_HEAD, DIM_HEAD), (0, 2, 1, 3))
    k = jnp.transpose(qk[..., C:].reshape(b, L, NUM_HEAD, DIM_HEAD), (0, 2, 1, 3))
    attn = (q @ jnp.swapaxes(k, -1, -2)) * SCALE
    attn = jax.nn.softmax(attn, axis=-1)
    v = jax.nn.relu(x_tok @ p['w_v'])
    v = jnp.transpose(v.reshape(b, L, NUM_HEAD, DH_V), (0, 2, 1, 3))
    xs = attn @ v                                                          # (b, h, L, dh)
    xs = jnp.transpose(xs, (0, 2, 1, 3)).reshape(b, L, DIM_MID)
    xs = jnp.transpose(xs, (0, 2, 1)).reshape(b, DIM_MID, ws, ws)

    xs = xs.reshape(B, n1, n2, DIM_MID, ws, ws)
    xs = jnp.transpose(xs, (0, 3, 4, 1, 5, 2)).reshape(B, DIM_MID, H, W)

    xp = jnp.pad(xs, ((0, 0), (0, 0), (1, 1), (1, 1)))
    acc = jnp.zeros_like(xs)
    for dy in range(DW_KS):
        for dx in range(DW_KS):
            acc = acc + xp[:, :, dy:dy + H, dx:dx + W] * p['w_dw'][dy, dx][None, :, None, None]
    s2 = p['bn2_gamma'] / jnp.sqrt(p['bn2_var'] + EPS)
    b2 = p['bn2_beta'] - p['bn2_mean'] * s2
    yl = acc * s2[None, :, None, None] + b2[None, :, None, None]
    yl = yl * jax.nn.sigmoid(yl)
    x2 = xs + yl
    x3 = jnp.einsum('bchw,cd->bdhw', x2, p['w_proj'])
    return shortcut + x3


# ----------------------------- main -----------------------------------------------
if __name__ == "__main__":
    key = jax.random.PRNGKey(0)
    kx, kp = jax.random.split(key)
    B, H, W = 2, 14, 14                     # H, W multiples of window_size=7 (no pad branch)
    x = jax.random.normal(kx, (B, DIM_IN, H, W), jnp.float32)
    params = init_params(kp)

    out = jax.block_until_ready(irmb_forward(x, params))
    assert out.shape == (B, DIM_OUT, H, W)

    ref = irmb_reference(x, params)
    max_err = float(jnp.max(jnp.abs(out - ref)))
    assert max_err < 5e-2, f"mismatch vs reference, max_err={max_err}"

    print("KERNEL_OK")
</pallas_src>

<mosaic_0001>
module attributes {stable_mosaic.version = 11 : i64} {
  func.func @_irmb_kernel(%arg0: i32, %arg1: memref<1x224x16xf32, #tpu.memory_space<vmem>>, %arg2: memref<1x256x16xf32, #tpu.memory_space<vmem>>, %arg3: memref<256x224xf32, #tpu.memory_space<vmem>>, %arg4: memref<16x48xf32, #tpu.memory_space<vmem>>, %arg5: memref<1x48xf32, #tpu.memory_space<vmem>>, %arg6: memref<9x16xf32, #tpu.memory_space<vmem>>, %arg7: memref<1x16xf32, #tpu.memory_space<vmem>>, %arg8: memref<1x16xf32, #tpu.memory_space<vmem>>, %arg9: memref<16x16xf32, #tpu.memory_space<vmem>>, %arg10: memref<1x256x16xf32, #tpu.memory_space<vmem>>, %arg11: memref<224x48xf32, #tpu.memory_space<vmem>>, %arg12: memref<1x224x16xf32, #tpu.memory_space<vmem>>, %arg13: memref<304x16xf32, #tpu.memory_space<vmem>>) attributes {dimension_semantics = [#tpu.dimension_semantics<parallel>], iteration_bounds = array<i64: 2>, scalar_prefetch = 0 : i64, scratch_operands = 3 : i64, tpu.core_type = #tpu.core_type<tc>, window_params = [{transform_indices = @transform_0, window_bounds = array<i64: 1, 224, 16>}, {transform_indices = @transform_1, window_bounds = array<i64: 1, 256, 16>}, {pipeline_mode = #tpu.pipeline_mode<synchronous>, transform_indices = @transform_2, window_bounds = array<i64: 256, 224>}, {pipeline_mode = #tpu.pipeline_mode<synchronous>, transform_indices = @transform_3, window_bounds = array<i64: 16, 48>}, {pipeline_mode = #tpu.pipeline_mode<synchronous>, transform_indices = @transform_4, window_bounds = array<i64: 1, 48>}, {pipeline_mode = #tpu.pipeline_mode<synchronous>, transform_indices = @transform_5, window_bounds = array<i64: 9, 16>}, {pipeline_mode = #tpu.pipeline_mode<synchronous>, transform_indices = @transform_6, window_bounds = array<i64: 1, 16>}, {pipeline_mode = #tpu.pipeline_mode<synchronous>, transform_indices = @transform_7, window_bounds = array<i64: 1, 16>}, {pipeline_mode = #tpu.pipeline_mode<synchronous>, transform_indices = @transform_8, window_bounds = array<i64: 16, 16>}, {transform_indices = @transform_9, window_bounds = array<i64: 1, 256, 16>}]} {
    %c0 = arith.constant 0 : index
    %c0_0 = arith.constant 0 : index
    %c0_1 = arith.constant 0 : index
    %0 = vector.load %arg1[%c0, %c0_0, %c0_1] : memref<1x224x16xf32, #tpu.memory_space<vmem>>, vector<1x224x16xf32>
    %1 = vector.shape_cast %0 : vector<1x224x16xf32> to vector<224x16xf32>
    %c0_2 = arith.constant 0 : index
    %c0_3 = arith.constant 0 : index
    %2 = vector.load %arg4[%c0_2, %c0_3] : memref<16x48xf32, #tpu.memory_space<vmem>>, vector<16x48xf32>
    %cst = arith.constant dense<0.000000e+00> : vector<224x48xf32>
    %3 = tpu.matmul %1, %2, %cst {dimension_numbers = #tpu.dot_dimension_numbers<[1], [0], [0], [1], [0, 0, 1, 1], [], []>} : vector<224x16xf32>, vector<16x48xf32>, vector<224x48xf32> -> vector<224x48xf32>
    %c0_4 = arith.constant 0 : index
    %c0_5 = arith.constant 0 : index
    %4 = vector.load %arg5[%c0_4, %c0_5] : memref<1x48xf32, #tpu.memory_space<vmem>>, vector<1x48xf32>
    %5 = vector.broadcast %4 : vector<1x48xf32> to vector<224x48xf32>
    %6 = arith.addf %3, %5 : vector<224x48xf32>
    %c0_6 = arith.constant 0 : index
    %c0_7 = arith.constant 0 : index
    %7 = vector.load %arg11[%c0_6, %c0_7] : memref<224x48xf32, #tpu.memory_space<vmem>>, vector<224x48xf32>
    tpu.vector_store %arg11[%c0_6, %c0_7], %6 {strides = array<i32>} : memref<224x48xf32, #tpu.memory_space<vmem>>, vector<224x48xf32>,
    %8 = tpu.iota {dimensions = array<i32: 2>} : vector<1x1x56xi32>
    %c49_i32 = arith.constant 49 : i32
    %9 = vector.broadcast %c49_i32 : i32 to vector<1x1x56xi32>
    %10 = arith.cmpi slt, %8, %9 : vector<1x1x56xi32>
    %c0_8 = arith.constant 0 : index
    %c0_9 = arith.constant 0 : index
    %11 = vector.load %arg11[%c0_8, %c0_9] : memref<224x48xf32, #tpu.memory_space<vmem>>, vector<224x8xf32>
    %12 = vector.shape_cast %11 : vector<224x8xf32> to vector<4x56x8xf32>
    %c0_10 = arith.constant 0 : index
    %c16 = arith.constant 16 : index
    %13 = vector.load %arg11[%c0_10, %c16] : memref<224x48xf32, #tpu.memory_space<vmem>>, vector<224x8xf32>
    %14 = vector.shape_cast %13 : vector<224x8xf32> to vector<4x56x8xf32>
    %c0_11 = arith.constant 0 : index
    %c32 = arith.constant 32 : index
    %15 = vector.load %arg11[%c0_11, %c32] : memref<224x48xf32, #tpu.memory_space<vmem>>, vector<224x8xf32>
    %cst_12 = arith.constant 0.000000e+00 : f32
    %16 = vector.broadcast %cst_12 : f32 to vector<224x8xf32>
    %17 = arith.maximumf %15, %16 : vector<224x8xf32>
    %18 = vector.shape_cast %17 : vector<224x8xf32> to vector<4x56x8xf32>
    %cst_13 = arith.constant dense<0.000000e+00> : vector<4x56x56xf32>
    %19 = tpu.matmul %12, %14, %cst_13 {dimension_numbers = #tpu.dot_dimension_numbers<[2], [2], [1], [1], [0, 0, 0, 1, 1, 1], [0], [0]>} : vector<4x56x8xf32>, vector<4x56x8xf32>, vector<4x56x56xf32> -> vector<4x56x56xf32>
    %cst_14 = arith.constant -1.000000e+30 : f32
    %20 = vector.shape_cast %10 : vector<1x1x56xi1> to vector<1x1x56xi1>
    %21 = vector.broadcast %20 : vector<1x1x56xi1> to vector<4x56x56xi1>
    %22 = vector.broadcast %cst_14 : f32 to vector<4x56x56xf32>
    %23 = arith.select %21, %19, %22 : vector<4x56x56xi1>, vector<4x56x56xf32>
    %cst_15 = arith.constant dense<0xFF800000> : vector<4x56xf32>
    %24 = vector.multi_reduction <maximumf>, %23, %cst_15 [2] : vector<4x56x56xf32> to vector<4x56xf32>
    %25 = vector.shape_cast %24 : vector<4x56xf32> to vector<4x56x1xf32>
    %26 = vector.broadcast %25 : vector<4x56x1xf32> to vector<4x56x56xf32>
    %27 = arith.subf %23, %26 : vector<4x56x56xf32>
    %28 = math.exp %27 : vector<4x56x56xf32>
    %cst_16 = arith.constant dense<0.000000e+00> : vector<4x56xf32>
    %29 = vector.multi_reduction <add>, %28, %cst_16 [2] : vector<4x56x56xf32> to vector<4x56xf32>
    %30 = vector.shape_cast %29 : vector<4x56xf32> to vector<4x56x1xf32>
    %31 = tpu.reciprocal %30 {approx = true} : vector<4x56x1xf32> -> vector<4x56x1xf32>
    %32 = vector.broadcast %31 : vector<4x56x1xf32> to vector<4x56x56xf32>
    %33 = arith.mulf %28, %32 : vector<4x56x56xf32>
    %cst_17 = arith.constant dense<0.000000e+00> : vector<4x56x8xf32>
    %34 = tpu.matmul %33, %18, %cst_17 {dimension_numbers = #tpu.dot_dimension_numbers<[2], [1], [1], [2], [0, 0, 0, 1, 1, 2], [0], [0]>} : vector<4x56x56xf32>, vector<4x56x8xf32>, vector<4x56x8xf32> -> vector<4x56x8xf32>
    %35 = vector.shape_cast %34 : vector<4x56x8xf32> to vector<1x224x8xf32>
    %c0_18 = arith.constant 0 : index
    %c0_19 = arith.constant 0 : index
    %c0_20 = arith.constant 0 : index
    %36 = vector.load %arg12[%c0_18, %c0_19, %c0_20] : memref<1x224x16xf32, #tpu.memory_space<vmem>>, vector<1x224x8xf32>
    tpu.vector_store %arg12[%c0_18, %c0_19, %c0_20], %35 {strides = array<i32>} : memref<1x224x16xf32, #tpu.memory_space<vmem>>, vector<1x224x8xf32>,
    %c0_21 = arith.constant 0 : index
    %c8 = arith.constant 8 : index
    %37 = vector.load %arg11[%c0_21, %c8] : memref<224x48xf32, #tpu.memory_space<vmem>>, vector<224x8xf32>
    %38 = vector.shape_cast %37 : vector<224x8xf32> to vector<4x56x8xf32>
    %c0_22 = arith.constant 0 : index
    %c24 = arith.constant 24 : index
    %39 = vector.load %arg11[%c0_22, %c24] : memref<224x48xf32, #tpu.memory_space<vmem>>, vector<224x8xf32>
    %40 = vector.shape_cast %39 : vector<224x8xf32> to vector<4x56x8xf32>
    %c0_23 = arith.constant 0 : index
    %c40 = arith.constant 40 : index
    %41 = vector.load %arg11[%c0_23, %c40] : memref<224x48xf32, #tpu.memory_space<vmem>>, vector<224x8xf32>
    %cst_24 = arith.constant 0.000000e+00 : f32
    %42 = vector.broadcast %cst_24 : f32 to vector<224x8xf32>
    %43 = arith.maximumf %41, %42 : vector<224x8xf32>
    %44 = vector.shape_cast %43 : vector<224x8xf32> to vector<4x56x8xf32>
    %cst_25 = arith.constant dense<0.000000e+00> : vector<4x56x56xf32>
    %45 = tpu.matmul %38, %40, %cst_25 {dimension_numbers = #tpu.dot_dimension_numbers<[2], [2], [1], [1], [0, 0, 0, 1, 1, 1], [0], [0]>} : vector<4x56x8xf32>, vector<4x56x8xf32>, vector<4x56x56xf32> -> vector<4x56x56xf32>
    %cst_26 = arith.constant -1.000000e+30 : f32
    %46 = vector.shape_cast %10 : vector<1x1x56xi1> to vector<1x1x56xi1>
    %47 = vector.broadcast %46 : vector<1x1x56xi1> to vector<4x56x56xi1>
    %48 = vector.broadcast %cst_26 : f32 to vector<4x56x56xf32>
    %49 = arith.select %47, %45, %48 : vector<4x56x56xi1>, vector<4x56x56xf32>
    %cst_27 = arith.constant dense<0xFF800000> : vector<4x56xf32>
    %50 = vector.multi_reduction <maximumf>, %49, %cst_27 [2] : vector<4x56x56xf32> to vector<4x56xf32>
    %51 = vector.shape_cast %50 : vector<4x56xf32> to vector<4x56x1xf32>
    %52 = vector.broadcast %51 : vector<4x56x1xf32> to vector<4x56x56xf32>
    %53 = arith.subf %49, %52 : vector<4x56x56xf32>
    %54 = math.exp %53 : vector<4x56x56xf32>
    %cst_28 = arith.constant dense<0.000000e+00> : vector<4x56xf32>
    %55 = vector.multi_reduction <add>, %54, %cst_28 [2] : vector<4x56x56xf32> to vector<4x56xf32>
    %56 = vector.shape_cast %55 : vector<4x56xf32> to vector<4x56x1xf32>
    %57 = tpu.reciprocal %56 {approx = true} : vector<4x56x1xf32> -> vector<4x56x1xf32>
    %58 = vector.broadcast %57 : vector<4x56x1xf32> to vector<4x56x56xf32>
    %59 = arith.mulf %54, %58 : vector<4x56x56xf32>
    %cst_29 = arith.constant dense<0.000000e+00> : vector<4x56x8xf32>
    %60 = tpu.matmul %59, %44, %cst_29 {dimension_numbers = #tpu.dot_dimension_numbers<[2], [1], [1], [2], [0, 0, 0, 1, 1, 2], [0], [0]>} : vector<4x56x56xf32>, vector<4x56x8xf32>, vector<4x56x8xf32> -> vector<4x56x8xf32>
    %61 = vector.shape_cast %60 : vector<4x56x8xf32> to vector<1x224x8xf32>
    %c0_30 = arith.constant 0 : index
    %c0_31 = arith.constant 0 : index
    %c8_32 = arith.constant 8 : index
    %62 = vector.load %arg12[%c0_30, %c0_31, %c8_32] : memref<1x224x16xf32, #tpu.memory_space<vmem>>, vector<1x224x8xf32>
    tpu.vector_store %arg12[%c0_30, %c0_31, %c8_32], %61 {strides = array<i32>} : memref<1x224x16xf32, #tpu.memory_space<vmem>>, vector<1x224x8xf32>,
    %cst_33 = arith.constant 0.000000e+00 : f32
    %63 = vector.broadcast %cst_33 : f32 to vector<24x16xf32>
    %c0_34 = arith.constant 0 : index
    %c0_35 = arith.constant 0 : index
    %64 = vector.load %arg13[%c0_34, %c0_35] : memref<304x16xf32, #tpu.memory_space<vmem>>, vector<24x16xf32>
    tpu.vector_store %arg13[%c0_34, %c0_35], %63 {strides = array<i32>} : memref<304x16xf32, #tpu.memory_space<vmem>>, vector<24x16xf32>,
    %cst_36 = arith.constant 0.000000e+00 : f32
    %65 = vector.broadcast %cst_36 : f32 to vector<24x16xf32>
    %c280 = arith.constant 280 : index
    %c0_37 = arith.constant 0 : index
    %66 = vector.load %arg13[%c280, %c0_37] : memref<304x16xf32, #tpu.memory_space<vmem>>, vector<24x16xf32>
    tpu.vector_store %arg13[%c280, %c0_37], %65 {strides = array<i32>} : memref<304x16xf32, #tpu.memory_space<vmem>>, vector<24x16xf32>,
    %c0_38 = arith.constant 0 : index
    %c0_39 = arith.constant 0 : index
    %67 = vector.load %arg3[%c0_38, %c0_39] : memref<256x224xf32, #tpu.memory_space<vmem>>, vector<256x224xf32>
    %c0_40 = arith.constant 0 : index
    %c0_41 = arith.constant 0 : index
    %c0_42 = arith.constant 0 : index
    %68 = vector.load %arg12[%c0_40, %c0_41, %c0_42] : memref<1x224x16xf32, #tpu.memory_space<vmem>>, vector<1x224x16xf32>
    %69 = vector.shape_cast %68 : vector<1x224x16xf32> to vector<224x16xf32>
    %cst_43 = arith.constant dense<0.000000e+00> : vector<256x16xf32>
    %70 = tpu.matmul %67, %69, %cst_43 {dimension_numbers = #tpu.dot_dimension_numbers<[1], [0], [0], [1], [0, 0, 1, 1], [], []>} : vector<256x224xf32>, vector<224x16xf32>, vector<256x16xf32> -> vector<256x16xf32>
    %c24_44 = arith.constant 24 : index
    %c0_45 = arith.constant 0 : index
    %71 = vector.load %arg13[%c24_44, %c0_45] : memref<304x16xf32, #tpu.memory_space<vmem>>, vector<256x16xf32>
    tpu.vector_store %arg13[%c24_44, %c0_45], %70 {strides = array<i32>} : memref<304x16xf32, #tpu.memory_space<vmem>>, vector<256x16xf32>,
    %c0_46 = arith.constant 0 : index
    %c0_47 = arith.constant 0 : index
    %72 = vector.load %arg6[%c0_46, %c0_47] : memref<9x16xf32, #tpu.memory_space<vmem>>, vector<9x16xf32>
    %cst_48 = arith.constant 0.000000e+00 : f32
    %73 = vector.broadcast %cst_48 : f32 to vector<256x16xf32>
    %74 = vector.extract_strided_slice %72 {offsets = [0, 0], sizes = [1, 16], strides = [1, 1]} : vector<9x16xf32> to vector<1x16xf32>
    %c7 = arith.constant 7 : index
    %c0_49 = arith.constant 0 : index
    %75 = vector.load %arg13[%c7, %c0_49] : memref<304x16xf32, #tpu.memory_space<vmem>>, vector<256x16xf32>
    %76 = vector.broadcast %74 : vector<1x16xf32> to vector<256x16xf32>
    %77 = arith.mulf %75, %76 : vector<256x16xf32>
    %78 = arith.addf %73, %77 : vector<256x16xf32>
    %79 = vector.extract_strided_slice %72 {offsets = [1, 0], sizes = [1, 16], strides = [1, 1]} : vector<9x16xf32> to vector<1x16xf32>
    %c8_50 = arith.constant 8 : index
    %c0_51 = arith.constant 0 : index
    %80 = vector.load %arg13[%c8_50, %c0_51] : memref<304x16xf32, #tpu.memory_space<vmem>>, vector<256x16xf32>
    %81 = vector.broadcast %79 : vector<1x16xf32> to vector<256x16xf32>
    %82 = arith.mulf %80, %81 : vector<256x16xf32>
    %83 = arith.addf %78, %82 : vector<256x16xf32>
    %84 = vector.extract_strided_slice %72 {offsets = [2, 0], sizes = [1, 16], strides = [1, 1]} : vector<9x16xf32> to vector<1x16xf32>
    %c9 = arith.constant 9 : index
    %c0_52 = arith.constant 0 : index
    %85 = vector.load %arg13[%c9, %c0_52] : memref<304x16xf32, #tpu.memory_space<vmem>>, vector<256x16xf32>
    %86 = vector.broadcast %84 : vector<1x16xf32> to vector<256x16xf32>
    %87 = arith.mulf %85, %86 : vector<256x16xf32>
    %88 = arith.addf %83, %87 : vector<256x16xf32>
    %89 = vector.extract_strided_slice %72 {offsets = [3, 0], sizes = [1, 16], strides = [1, 1]} : vector<9x16xf32> to vector<1x16xf32>
    %c23 = arith.constant 23 : index
    %c0_53 = arith.constant 0 : index
    %90 = vector.load %arg13[%c23, %c0_53] : memref<304x16xf32, #tpu.memory_space<vmem>>, vector<256x16xf32>
    %91 = vector.broadcast %89 : vector<1x16xf32> to vector<256x16xf32>
    %92 = arith.mulf %90, %91 : vector<256x16xf32>
    %93 = arith.addf %88, %92 : vector<256x16xf32>
    %94 = vector.extract_strided_slice %72 {offsets = [4, 0], sizes = [1, 16], strides = [1, 1]} : vector<9x16xf32> to vector<1x16xf32>
    %c24_54 = arith.constant 24 : index
    %c0_55 = arith.constant 0 : index
    %95 = vector.load %arg13[%c24_54, %c0_55] : memref<304x16xf32, #tpu.memory_space<vmem>>, vector<256x16xf32>
    %96 = vector.broadcast %94 : vector<1x16xf32> to vector<256x16xf32>
    %97 = arith.mulf %95, %96 : vector<256x16xf32>
    %98 = arith.addf %93, %97 : vector<256x16xf32>
    %99 = vector.extract_strided_slice %72 {offsets = [5, 0], sizes = [1, 16], strides = [1, 1]} : vector<9x16xf32> to vector<1x16xf32>
    %c25 = arith.constant 25 : index
    %c0_56 = arith.constant 0 : index
    %100 = vector.load %arg13[%c25, %c0_56] : memref<304x16xf32, #tpu.memory_space<vmem>>, vector<256x16xf32>
    %101 = vector.broadcast %99 : vector<1x16xf32> to vector<256x16xf32>
    %102 = arith.mulf %100, %101 : vector<256x16xf32>
    %103 = arith.addf %98, %102 : vector<256x16xf32>
    %104 = vector.extract_strided_slice %72 {offsets = [6, 0], sizes = [1, 16], strides = [1, 1]} : vector<9x16xf32> to vector<1x16xf32>
    %c39 = arith.constant 39 : index
    %c0_57 = arith.constant 0 : index
    %105 = vector.load %arg13[%c39, %c0_57] : memref<304x16xf32, #tpu.memory_space<vmem>>, vector<256x16xf32>
    %106 = vector.broadcast %104 : vector<1x16xf32> to vector<256x16xf32>
    %107 = arith.mulf %105, %106 : vector<256x16xf32>
    %108 = arith.addf %103, %107 : vector<256x16xf32>
    %109 = vector.extract_strided_slice %72 {offsets = [7, 0], sizes = [1, 16], strides = [1, 1]} : vector<9x16xf32> to vector<1x16xf32>
    %c40_58 = arith.constant 40 : index
    %c0_59 = arith.constant 0 : index
    %110 = vector.load %arg13[%c40_58, %c0_59] : memref<304x16xf32, #tpu.memory_space<vmem>>, vector<256x16xf32>
    %111 = vector.broadcast %109 : vector<1x16xf32> to vector<256x16xf32>
    %112 = arith.mulf %110, %111 : vector<256x16xf32>
    %113 = arith.addf %108, %112 : vector<256x16xf32>
    %114 = vector.extract_strided_slice %72 {offsets = [8, 0], sizes = [1, 16], strides = [1, 1]} : vector<9x16xf32> to vector<1x16xf32>
    %c41 = arith.constant 41 : index
    %c0_60 = arith.constant 0 : index
    %115 = vector.load %arg13[%c41, %c0_60] : memref<304x16xf32, #tpu.memory_space<vmem>>, vector<256x16xf32>
    %116 = vector.broadcast %114 : vector<1x16xf32> to vector<256x16xf32>
    %117 = arith.mulf %115, %116 : vector<256x16xf32>
    %118 = arith.addf %113, %117 : vector<256x16xf32>
    %c0_61 = arith.constant 0 : index
    %c0_62 = arith.constant 0 : index
    %119 = vector.load %arg7[%c0_61, %c0_62] : memref<1x16xf32, #tpu.memory_space<vmem>>, vector<1x16xf32>
    %120 = vector.broadcast %119 : vector<1x16xf32> to vector<256x16xf32>
    %121 = arith.mulf %118, %120 : vector<256x16xf32>
    %c0_63 = arith.constant 0 : index
    %c0_64 = arith.constant 0 : index
    %122 = vector.load %arg8[%c0_63, %c0_64] : memref<1x16xf32, #tpu.memory_space<vmem>>, vector<1x16xf32>
    %123 = vector.broadcast %122 : vector<1x16xf32> to vector<256x16xf32>
    %124 = arith.addf %121, %123 : vector<256x16xf32>
    %125 = arith.negf %124 : vector<256x16xf32>
    %126 = math.exp %125 : vector<256x16xf32>
    %cst_65 = arith.constant 1.000000e+00 : f32
    %127 = vector.broadcast %cst_65 : f32 to vector<256x16xf32>
    %128 = arith.addf %127, %126 : vector<256x16xf32>
    %129 = arith.divf %127, %128 : vector<256x16xf32>
    %130 = arith.mulf %124, %129 : vector<256x16xf32>
    %c24_66 = arith.constant 24 : index
    %c0_67 = arith.constant 0 : index
    %131 = vector.load %arg13[%c24_66, %c0_67] : memref<304x16xf32, #tpu.memory_space<vmem>>, vector<256x16xf32>
    %132 = arith.addf %131, %130 : vector<256x16xf32>
    %c0_68 = arith.constant 0 : index
    %c0_69 = arith.constant 0 : index
    %133 = vector.load %arg9[%c0_68, %c0_69] : memref<16x16xf32, #tpu.memory_space<vmem>>, vector<16x16xf32>
    %cst_70 = arith.constant dense<0.000000e+00> : vector<256x16xf32>
    %134 = tpu.matmul %132, %133, %cst_70 {dimension_numbers = #tpu.dot_dimension_numbers<[1], [0], [0], [1], [0, 0, 1, 1], [], []>} : vector<256x16xf32>, vector<16x16xf32>, vector<256x16xf32> -> vector<256x16xf32>
    %c0_71 = arith.constant 0 : index
    %c0_72 = arith.constant 0 : index
    %c0_73 = arith.constant 0 : index
    %135 = vector.load %arg2[%c0_71, %c0_72, %c0_73] : memref<1x256x16xf32, #tpu.memory_space<vmem>>, vector<1x256x16xf32>
    %136 = vector.shape_cast %135 : vector<1x256x16xf32> to vector<256x16xf32>
    %137 = arith.addf %136, %134 : vector<256x16xf32>
    %138 = vector.shape_cast %137 : vector<256x16xf32> to vector<1x256x16xf32>
    %c0_74 = arith.constant 0 : index
    %c0_75 = arith.constant 0 : index
    %c0_76 = arith.constant 0 : index
    %139 = vector.load %arg10[%c0_74, %c0_75, %c0_76] : memref<1x256x16xf32, #tpu.memory_space<vmem>>, vector<1x256x16xf32>
    tpu.vector_store %arg10[%c0_74, %c0_75, %c0_76], %138 {strides = array<i32>} : memref<1x256x16xf32, #tpu.memory_space<vmem>>, vector<1x256x16xf32>,
    return
  }
  func.func @transform_0(%arg0: i32) -> (i32, i32, i32) {
    %c0_i32 = arith.constant 0 : i32
    %c0_i32_0 = arith.constant 0 : i32
    %c0_i32_1 = arith.constant 0 : i32
    return %arg0, %c0_i32, %c0_i32_0 : i32, i32, i32
  }
  func.func @transform_1(%arg0: i32) -> (i32, i32, i32) {
    %c0_i32 = arith.constant 0 : i32
    %c0_i32_0 = arith.constant 0 : i32
    %c0_i32_1 = arith.constant 0 : i32
    return %arg0, %c0_i32, %c0_i32_0 : i32, i32, i32
  }
  func.func @transform_2(%arg0: i32) -> (i32, i32) {
    %c0_i32 = arith.constant 0 : i32
    %c0_i32_0 = arith.constant 0 : i32
    %c0_i32_1 = arith.constant 0 : i32
    return %c0_i32, %c0_i32_0 : i32, i32
  }
  func.func @transform_3(%arg0: i32) -> (i32, i32) {
    %c0_i32 = arith.constant 0 : i32
    %c0_i32_0 = arith.constant 0 : i32
    %c0_i32_1 = arith.constant 0 : i32
    return %c0_i32, %c0_i32_0 : i32, i32
  }
  func.func @transform_4(%arg0: i32) -> (i32, i32) {
    %c0_i32 = arith.constant 0 : i32
    %c0_i32_0 = arith.constant 0 : i32
    %c0_i32_1 = arith.constant 0 : i32
    return %c0_i32, %c0_i32_0 : i32, i32
  }
  func.func @transform_5(%arg0: i32) -> (i32, i32) {
    %c0_i32 = arith.constant 0 : i32
    %c0_i32_0 = arith.constant 0 : i32
    %c0_i32_1 = arith.constant 0 : i32
    return %c0_i32, %c0_i32_0 : i32, i32
  }
  func.func @transform_6(%arg0: i32) -> (i32, i32) {
    %c0_i32 = arith.constant 0 : i32
    %c0_i32_0 = arith.constant 0 : i32
    %c0_i32_1 = arith.constant 0 : i32
    return %c0_i32, %c0_i32_0 : i32, i32
  }
  func.func @transform_7(%arg0: i32) -> (i32, i32) {
    %c0_i32 = arith.constant 0 : i32
    %c0_i32_0 = arith.constant 0 : i32
    %c0_i32_1 = arith.constant 0 : i32
    return %c0_i32, %c0_i32_0 : i32, i32
  }
  func.func @transform_8(%arg0: i32) -> (i32, i32) {
    %c0_i32 = arith.constant 0 : i32
    %c0_i32_0 = arith.constant 0 : i32
    %c0_i32_1 = arith.constant 0 : i32
    return %c0_i32, %c0_i32_0 : i32, i32
  }
  func.func @transform_9(%arg0: i32) -> (i32, i32, i32) {
    %c0_i32 = arith.constant 0 : i32
    %c0_i32_0 = arith.constant 0 : i32
    %c0_i32_1 = arith.constant 0 : i32
    return %arg0, %c0_i32, %c0_i32_0 : i32, i32, i32
  }
}

</mosaic_0001>

<bundles_post_ra>
// kernel: irmb_forward.1
= control target key start
LH: loop header
LB: loop body
LE: loop exit
PB: predicated region body
PF: predicated region fallthrough
CT: control target
= control target key end

     0   :  { %s8279_s30 = smov 0   ;;  %s11398_s0 = inlined_call_operand.vmem [shape: f32[2,224,16], index: 0, kind: input, shape index: {}]   ;;  %s11399_s1 = inlined_call_operand.vmem [shape: f32[2,256,16], index: 1, kind: input, shape index: {}]   ;;  %s11400_s2 = inlined_call_operand.vmem [shape: f32[256,224], index: 2, kind: input, shape index: {}]   ;;  %s11401_s3 = inlined_call_operand.vmem [shape: f32[16,48], index: 3, kind: input, shape index: {}]   ;;  %s11402_s4 = inlined_call_operand.vmem [shape: f32[1,48], index: 4, kind: input, shape index: {}]   ;;  %s11403_s5 = inlined_call_operand.vmem [shape: f32[9,16], index: 5, kind: input, shape index: {}]   ;;  %s11404_s6 = inlined_call_operand.vmem [shape: f32[1,16], index: 6, kind: input, shape index: {}]   ;;  %s11405_s7 = inlined_call_operand.vmem [shape: f32[1,16], index: 7, kind: input, shape index: {}]   ;;  %s11406_s8 = inlined_call_operand.vmem [shape: f32[16,16], index: 8, kind: input, shape index: {}]   ;;  %s11407_s9 = inlined_call_operand.vmem [shape: f32[2,256,16], index: 9, kind: output, shape index: {}]  }
   0x1 LB: > { %s6103_s10 = sadd.s32 4294967295, %s8218_s30   ;;  %p6107_p0 = scmp.ge.s32.totalorder %s8218_s30, 1  ;;  %s8218_s30 = sphi %s8279_s30, %s19_s30  }
   0x2   : > { %p297_p1 = scmp.lt.s32.totalorder %s8218_s30, 3 }
   0x4   : > { %p298_p2 = pnand %p6107_p0, %p297_p1 }
   0x6   : > { %301 = sbr.rel (%p298_p2) target bundleno = 2790 (0xae6), region = 56 }
   0xd   : > { %v381_v0 = vld [vmem:[%s11401_s3] sm:$0xff]  ;;  %v382_v1 = vld [vmem:[%s11401_s3 + $0x8] sm:$0xff]  ;;  %p338_p3 = scmp.lt.s32.totalorder %s6103_s10, 1  ;;  %vm390_vm0 = vcmask 130048   ;;  %vm680_vm1 = vcmask 392192   ;;  %v11411_v37 = vmov 0.0|0.0  }
   0xe   : > { %v7359_v2 = vpack.c.bf16 %v382_v1, %v381_v0  ;;  %v8360_v31 = vld [vmem:[%s11402_s4] ss:$0 sm:$0xff]  ;;  %7387 = vmatprep.subr.bf16.mxu0 %v11411_v37  ;;  %s8221_s21 = smov 112   ;;  %vm8223_vm2 = vmmov 0   ;;  %s8224_s22 = smov 96   ;;  %vm789_vm3 = vcmask 64512  }
   0xf   : > { %s11473_s10 = smov (!%p338_p3, %s6103_s10), 1  ;;  %s8225_s23 = smov 104   ;;  %vm8657_vm4 = vmpackc.low %vm789_vm3, %vm789_vm3  ;;  %vm1395_vm6 = vcmask 457728   ;;  %vm4080_vm7 = vcmask 130112   ;;  %vm4207_vm8 = vcmask 785408  }
  0x10   : > { %7360 = vmatprep.subr.bf16.mxu1 %v7359_v2  ;;  %s7577_s15 = smul.u32 224, %s11473_s10  ;;  %s8226_s24 = smov 120  }
  0x11   : > { %7362 = vmatpush3.bf16.msra.mxu1 %v7359_v2  ;;  %s8227_s25 = smov 88   ;;  %s8228_s26 = smov 8  }
  0x12   : > { %s8299_s18 = scalar_lea.vmem %s11398_s0, %s7577_s15  ;;  %7363 = vmatprep.subr.bf16.mxu1 %v11411_v37 }
  0x13   : > { %v353_v3 = vld [vmem:[%s8299_s18] sm:$0xff]  ;;  %v354_v4 = vld [vmem:[%s8299_s18 + $0x8] sm:$0xff]  ;;  %v355_v5 = vld [vmem:[%s8299_s18 + $0x10] sm:$0xff] }
  0x14   : > { %6705 = vmatprep.mubr.msk.f32.mxu1 %vm390_vm0, %v353_v3  ;;  %v356_v6 = vld [vmem:[%s8299_s18 + $0x18] sm:$0xff]  ;;  %v357_v7 = vld [vmem:[%s8299_s18 + $0x20] sm:$0xff]  ;;  %v358_v8 = vld [vmem:[%s8299_s18 + $0x28] sm:$0xff] }
  0x15   : > { %6706 = vmatmul.mubr.msk.f32.vlgmr.msra.gmra.mrb[0].mxu1 %vm390_vm0, %v354_v4  ;;  %v359_v9 = vld [vmem:[%s8299_s18 + $0x30] sm:$0xff]  ;;  %v360_v10 = vld [vmem:[%s8299_s18 + $0x38] sm:$0xff]  ;;  %v361_v11 = vld [vmem:[%s8299_s18 + $0x40] sm:$0xff] }
  0x16   : > { %6708 = vmatprep.mubr.msk.f32.mxu1 %vm390_vm0, %v355_v5  ;;  %v362_v12 = vld [vmem:[%s8299_s18 + $0x48] sm:$0xff]  ;;  %v363_v13 = vld [vmem:[%s8299_s18 + $0x50] sm:$0xff]  ;;  %v364_v14 = vld [vmem:[%s8299_s18 + $0x58] sm:$0xff] }
  0x17   : > { %v365_v15 = vld [vmem:[%s8299_s18 + $0x60] sm:$0xff]  ;;  %v366_v16 = vld [vmem:[%s8299_s18 + $0x68] sm:$0xff]  ;;  %v367_v17 = vld [vmem:[%s8299_s18 + $0x70] sm:$0xff] }
  0x18   : > { %v368_v18 = vld [vmem:[%s8299_s18 + $0x78] sm:$0xff]  ;;  %v369_v19 = vld [vmem:[%s8299_s18 + $0x80] sm:$0xff]  ;;  %v370_v20 = vld [vmem:[%s8299_s18 + $0x88] sm:$0xff] }
  0x19   : > { %6709 = vmatmul.mubr.msk.f32.gmra.mrb[2].mxu1 %vm390_vm0, %v356_v6  ;;  %v371_v21 = vld [vmem:[%s8299_s18 + $0x90] sm:$0xff]  ;;  %v372_v22 = vld [vmem:[%s8299_s18 + $0x98] sm:$0xff]  ;;  %v373_v23 = vld [vmem:[%s8299_s18 + $0xa0] sm:$0xff] }
  0x1a   : > { %6711 = vmatprep.mubr.msk.f32.mxu1 %vm390_vm0, %v357_v7  ;;  %v374_v24 = vld [vmem:[%s8299_s18 + $0xa8] sm:$0xff]  ;;  %v375_v25 = vld [vmem:[%s8299_s18 + $0xb0] sm:$0xff]  ;;  %v376_v26 = vld [vmem:[%s8299_s18 + $0xb8] sm:$0xff] }
  0x1b   : > { %v377_v27 = vld [vmem:[%s8299_s18 + $0xc0] sm:$0xff]  ;;  %v378_v28 = vld [vmem:[%s8299_s18 + $0xc8] sm:$0xff]  ;;  %v379_v29 = vld [vmem:[%s8299_s18 + $0xd0] sm:$0xff] }
  0x1c   : > { %v380_v30 = vld [vmem:[%s8299_s18 + $0xd8] sm:$0xff] }
  0x1d   : > { %6712 = vmatmul.mubr.msk.f32.gmra.mrb[4].mxu1 %vm390_vm0, %v358_v8 }
  0x1e   : > { %6714 = vmatprep.mubr.msk.f32.mxu1 %vm390_vm0, %v359_v9 }
  0x21   : > { %6715 = vmatmul.mubr.msk.f32.gmra.mrb[6].mxu1 %vm390_vm0, %v360_v10 }
  0x22   : > { %6717 = vmatprep.mubr.msk.f32.mxu1 %vm390_vm0, %v361_v11 }
  0x25   : > { %6718 = vmatmul.mubr.msk.f32.gmra.mrb[8].mxu1 %vm390_vm0, %v362_v12 }
  0x26   : > { %6720 = vmatprep.mubr.msk.f32.mxu1 %vm390_vm0, %v363_v13 }
  0x29   : > { %6721 = vmatmul.mubr.msk.f32.gmra.mrb[10].mxu1 %vm390_vm0, %v364_v14 }
  0x2a   : > { %6723 = vmatprep.mubr.msk.f32.mxu1 %vm390_vm0, %v365_v15 }
  0x2d   : > { %6724 = vmatmul.mubr.msk.f32.gmra.mrb[12].mxu1 %vm390_vm0, %v366_v16 }
  0x2e   : > { %6726 = vmatprep.mubr.msk.f32.mxu1 %vm390_vm0, %v367_v17 }
  0x31   : > { %6727 = vmatmul.mubr.msk.f32.gmra.mrb[14].mxu1 %vm390_vm0, %v368_v18 }
  0x32   : > { %6729 = vmatprep.mubr.msk.f32.mxu1 %vm390_vm0, %v369_v19 }
  0x35   : > { %6730 = vmatmul.mubr.msk.f32.gmra.mrb[16].mxu1 %vm390_vm0, %v370_v20 }
  0x36   : > { %6732 = vmatprep.mubr.msk.f32.mxu1 %vm390_vm0, %v371_v21 }
  0x39   : > { %6733 = vmatmul.mubr.msk.f32.gmra.mrb[18].mxu1 %vm390_vm0, %v372_v22 }
  0x3a   : > { %6735 = vmatprep.mubr.msk.f32.mxu1 %vm390_vm0, %v373_v23  ;;  %v11413_v23 = vmov 0.0  }
  0x3b   : > { %4109 = vst.msk [vmem:[#allocation4] sm:$0xff] %vm390_vm0, %v11413_v23  ;;  %4110 = vst.msk [vmem:[#allocation4 + $0x8] sm:$0xff] %vm390_vm0, %v11413_v23  ;;  %6831 = vmatprep.mubr.msk.f32.mxu0 %vm8223_vm2, %v11413_v23 }
  0x3c   : > { %4111 = vst.msk [vmem:[#allocation4 + $0x10] sm:$0xff] %vm390_vm0, %v11413_v23  ;;  %4112 = vst.msk [vmem:[#allocation4 + $0x118] sm:$0xff] %vm390_vm0, %v11413_v23 }
  0x3d   : > { %6736 = vmatmul.mubr.msk.f32.gmra.mrb[20].mxu1 %vm390_vm0, %v374_v24  ;;  %4113 = vst.msk [vmem:[#allocation4 + $0x120] sm:$0xff] %vm390_vm0, %v11413_v23  ;;  %4114 = vst.msk [vmem:[#allocation4 + $0x128] sm:$0xff] %vm390_vm0, %v11413_v23 }
  0x3e   : > { %6738 = vmatprep.mubr.msk.f32.mxu1 %vm390_vm0, %v375_v25 }
  0x41   : > { %6739 = vmatmul.mubr.msk.f32.gmra.mrb[22].mxu1 %vm390_vm0, %v376_v26 }
  0x42   : > { %6741 = vmatprep.mubr.msk.f32.mxu1 %vm390_vm0, %v377_v27 }
  0x45   : > { %6742 = vmatmul.mubr.msk.f32.gmra.mrb[24].mxu1 %vm390_vm0, %v378_v28 }
  0x46   : > { %6744 = vmatprep.mubr.msk.f32.mxu1 %vm390_vm0, %v379_v29 }
  0x49   : > { %6745 = vmatmul.mubr.msk.f32.gmra.mrb[26].mxu1 %vm390_vm0, %v380_v30 }
  0x4a   : > { %6761 = vmatprep.mubr.msk.f32.mxu1 %vm8223_vm2, %v11413_v23 }
  0xe8   : > { %v6707_v32 = vpop.f32.mrb[0].mxu1 }
  0xe9   : > { %v547_v33 = vadd.f32 %v6707_v32, %v8360_v31  ;;  %v541_v34 = vpop.f32.mrb[1].mxu1 }
  0xea   : > { %v542_v35 = vadd.f32 %v8360_v31, %v541_v34 }
  0xeb   : > { %682 = vst.msk [vmem:[#allocation2 + $0x8] sm:$0xff] %vm680_vm1, %v547_v33 }
  0xec   : > { %681 = vst.msk [vmem:[#allocation2] sm:$0xff] %vm680_vm1, %v542_v35  ;;  %v6710_v36 = vpop.f32.mrb[2].mxu1 }
  0xed   : > { %v557_v38 = vadd.f32 %v6710_v36, %v8360_v31  ;;  %v551_v39 = vpop.f32.mrb[3].mxu1 }
  0xee   : > { %v552_v40 = vadd.f32 %v8360_v31, %v551_v39 }
  0xef   : > { %684 = vst.msk [vmem:[#allocation2 + $0x18] sm:$0xff] %vm680_vm1, %v557_v38 }
  0xf0   : > { %683 = vst.msk [vmem:[#allocation2 + $0x10] sm:$0xff] %vm680_vm1, %v552_v40  ;;  %v6713_v41 = vpop.f32.mrb[4].mxu1 }
  0xf1   : > { %v567_v42 = vadd.f32 %v6713_v41, %v8360_v31  ;;  %v561_v43 = vpop.f32.mrb[5].mxu1 }
  0xf2   : > { %v8373_v44 = vld [vmem:[#allocation2 + $0x8] sm:$0xff]  ;;  %v562_v45 = vadd.f32 %v8360_v31, %v561_v43 }
  0xf3   : > { %v8376_v46 = vld [vmem:[#allocation2] sm:$0xff]  ;;  %686 = vst.msk [vmem:[#allocation2 + $0x28] sm:$0xff] %vm680_vm1, %v567_v42  ;;  %v741_v47 = vmax.f32 %v8373_v44, 0.0 }
  0xf4   : > { %v8382_v48 = vpack.i.bf16 %v8373_v44, %v8376_v46  ;;  %685 = vst.msk [vmem:[#allocation2 + $0x20] sm:$0xff] %vm680_vm1, %v562_v45  ;;  %v6716_v49 = vpop.f32.mrb[6].mxu1  ;;  %v740_v50 = vmax.f32 %v8376_v46, 0.0 }
  0xf5   : > { %v577_v51 = vadd.f32 %v6716_v49, %v8360_v31  ;;  %v571_v52 = vpop.f32.mrb[7].mxu1 }
  0xf6   : > { %7596 = vrot.lane.b32.xlu0 %v8382_v48, %s8221_s21  ;;  %v572_v53 = vadd.f32 %v8360_v31, %v571_v52  ;;  %v8390_v54 = vld [vmem:[#allocation2 + $0x18] sm:$0xff]  ;;  %v8392_v55 = vpack.i.bf16 %v741_v47, %v740_v50 }
  0xf7   : > { %688 = vst.msk [vmem:[#allocation2 + $0x38] sm:$0xff] %vm680_vm1, %v577_v51  ;;  %v8395_v56 = vld [vmem:[#allocation2 + $0x10] sm:$0xff]  ;;  %v743_v57 = vmax.f32 %v8390_v54, 0.0 }
  0xf8   : > { %687 = vst.msk [vmem:[#allocation2 + $0x30] sm:$0xff] %vm680_vm1, %v572_v53  ;;  %v6719_v58 = vpop.f32.mrb[8].mxu1  ;;  %v8401_v59 = vpack.i.bf16 %v8390_v54, %v8395_v56  ;;  %v742_v60 = vmax.f32 %v8395_v56, 0.0 }
  0xf9   : > { %v587_v61 = vadd.f32 %v6719_v58, %v8360_v31  ;;  %v581_v62 = vpop.f32.mrb[9].mxu1 }
  0xfa   : > { %7601 = vrot.lane.b32.xlu0 %v8401_v59, %s8221_s21  ;;  %v582_v63 = vadd.f32 %v8360_v31, %v581_v62  ;;  %v8408_v0 = vld [vmem:[#allocation2 + $0x28] sm:$0xff]  ;;  %v8410_v1 = vpack.i.bf16 %v743_v57, %v742_v60 }
  0xfb   : > { %690 = vst.msk [vmem:[#allocation2 + $0x48] sm:$0xff] %vm680_vm1, %v587_v61  ;;  %v8413_v2 = vld [vmem:[#allocation2 + $0x20] sm:$0xff]  ;;  %v745_v3 = vmax.f32 %v8408_v0, 0.0 }
  0xfc   : > { %11429 = vst [vmem:[#allocation5_spill] sm:$0xff] %v8410_v1  ;;  %689 = vst.msk [vmem:[#allocation2 + $0x40] sm:$0xff] %vm680_vm1, %v582_v63  ;;  %v6722_v4 = vpop.f32.mrb[10].mxu1  ;;  %v8419_v5 = vpack.i.bf16 %v8408_v0, %v8413_v2  ;;  %v744_v6 = vmax.f32 %v8413_v2, 0.0 }
  0xfd   : > { %v597_v7 = vadd.f32 %v6722_v4, %v8360_v31  ;;  %v591_v8 = vpop.f32.mrb[11].mxu1 }
  0xfe   : > { %v592_v9 = vadd.f32 %v8360_v31, %v591_v8  ;;  %7606 = vrot.lane.b32.xlu1 %v8419_v5, %s8221_s21  ;;  %v8426_v10 = vpack.i.bf16 %v745_v3, %v744_v6  ;;  %v8431_v12 = vld [vmem:[#allocation2 + $0x38] sm:$0xff] }
  0xff   : > { %692 = vst.msk [vmem:[#allocation2 + $0x58] sm:$0xff] %vm680_vm1, %v597_v7  ;;  %v8429_v11 = vld [vmem:[#allocation2 + $0x30] sm:$0xff]  ;;  %v747_v17 = vmax.f32 %v8431_v12, 0.0 }
 0x100   : > { %691 = vst.msk [vmem:[#allocation2 + $0x50] sm:$0xff] %vm680_vm1, %v592_v9  ;;  %v6725_v13 = vpop.f32.mrb[12].mxu1 }
 0x101   : > { %v607_v14 = vadd.f32 %v6725_v13, %v8360_v31  ;;  %v601_v15 = vpop.f32.mrb[13].mxu1 }
 0x102   : > { %v602_v16 = vadd.f32 %v8360_v31, %v601_v15  ;;  %787 = vrot.lane.b32.xlu1 %v8429_v11, %s8221_s21  ;;  %v8440_v18 = vld [vmem:[#allocation2 + $0x48] sm:$0xff] }
 0x103   : > { %694 = vst.msk [vmem:[#allocation2 + $0x68] sm:$0xff] %vm680_vm1, %v607_v14  ;;  %v8442_v19 = vld [vmem:[#allocation2 + $0x40] sm:$0xff]  ;;  %v749_v27 = vmax.f32 %v8440_v18, 0.0 }
 0x104   : > { %693 = vst.msk [vmem:[#allocation2 + $0x60] sm:$0xff] %vm680_vm1, %v602_v16  ;;  %v6728_v20 = vpop.f32.mrb[14].mxu1  ;;  %v8447_v21 = vpack.i.bf16 %v8442_v19, %v8431_v12  ;;  %v748_v22 = vmax.f32 %v8442_v19, 0.0 }
 0x105   : > { %v617_v24 = vadd.f32 %v6728_v20, %v8360_v31  ;;  %v611_v25 = vpop.f32.mrb[15].mxu1 }
 0x106   : > { %v612_v26 = vadd.f32 %v8360_v31, %v611_v25  ;;  %7611 = vrot.lane.b32.xlu0 %v8447_v21, %s8221_s21  ;;  %v8469_v28 = vpack.i.bf16 %v748_v22, %v747_v17  ;;  %v8474_v30 = vld [vmem:[#allocation2 + $0x58] sm:$0xff] }
 0x107   : > { %696 = vst.msk [vmem:[#allocation2 + $0x78] sm:$0xff] %vm680_vm1, %v617_v24  ;;  %v8472_v29 = vld [vmem:[#allocation2 + $0x50] sm:$0xff]  ;;  %v751_v39 = vmax.f32 %v8474_v30, 0.0 }
 0x108   : > { %11430 = vst [vmem:[#allocation6_spill] sm:$0xff] %v8469_v28  ;;  %695 = vst.msk [vmem:[#allocation2 + $0x70] sm:$0xff] %vm680_vm1, %v612_v26  ;;  %v6731_v32 = vpop.f32.mrb[16].mxu1  ;;  %v8481_v33 = vpack.i.bf16 %v8472_v29, %v8440_v18  ;;  %v750_v34 = vmax.f32 %v8472_v29, 0.0 }
 0x109   : > { %v627_v35 = vadd.f32 %v6731_v32, %v8360_v31  ;;  %v621_v36 = vpop.f32.mrb[17].mxu1 }
 0x10a   : > { %v622_v38 = vadd.f32 %v8360_v31, %v621_v36  ;;  %7616 = vrot.lane.b32.xlu1 %v8481_v33, %s8221_s21  ;;  %v8489_v40 = vpack.i.bf16 %v750_v34, %v749_v27  ;;  %v8537_v17 = vld [vmem:[#allocation2 + $0x68] sm:$0xff] }
 0x10b   : > { %698 = vst.msk [vmem:[#allocation2 + $0x88] sm:$0xff] %vm680_vm1, %v627_v35  ;;  %v8492_v41 = vld [vmem:[#allocation2 + $0x60] sm:$0xff] }
 0x10c   : > { %697 = vst.msk [vmem:[#allocation2 + $0x80] sm:$0xff] %vm680_vm1, %v622_v38  ;;  %v6734_v42 = vpop.f32.mrb[18].mxu1  ;;  %v8497_v43 = vpack.i.bf16 %v8492_v41, %v8474_v30  ;;  %v752_v45 = vmax.f32 %v8492_v41, 0.0 }
 0x10d   : > { %v637_v47 = vadd.f32 %v6734_v42, %v8360_v31  ;;  %v631_v49 = vpop.f32.mrb[19].mxu1 }
 0x10e   : > { %v632_v50 = vadd.f32 %v8360_v31, %v631_v49  ;;  %v8502_v51 = vld [vmem:[#allocation2 + $0x78] sm:$0xff]  ;;  %7621 = vrot.lane.b32.xlu0 %v8497_v43, %s8221_s21  ;;  %v8506_v52 = vpack.i.bf16 %v752_v45, %v751_v39 }
 0x10f   : > { %700 = vst.msk [vmem:[#allocation2 + $0x98] sm:$0xff] %vm680_vm1, %v637_v47  ;;  %v8509_v53 = vld [vmem:[#allocation2 + $0x70] sm:$0xff]  ;;  %v755_v57 = vmax.f32 %v8502_v51, 0.0 }
 0x110   : > { %11431 = vst [vmem:[#allocation7_spill] sm:$0xff] %v8506_v52  ;;  %699 = vst.msk [vmem:[#allocation2 + $0x90] sm:$0xff] %vm680_vm1, %v632_v50  ;;  %v6737_v58 = vpop.f32.mrb[20].mxu1  ;;  %v8515_v60 = vpack.i.bf16 %v8502_v51, %v8509_v53  ;;  %v754_v61 = vmax.f32 %v8509_v53, 0.0 }
 0x111   : > { %v647_v62 = vadd.f32 %v6737_v58, %v8360_v31  ;;  %v641_v63 = vpop.f32.mrb[21].mxu1 }
 0x112   : > { %7626 = vrot.lane.b32.xlu1 %v8515_v60, %s8221_s21  ;;  %v642_v3 = vadd.f32 %v8360_v31, %v641_v63  ;;  %v8522_v4 = vld [vmem:[#allocation2 + $0x88] sm:$0xff]  ;;  %v8524_v6 = vpack.i.bf16 %v755_v57, %v754_v61 }
 0x113   : > { %702 = vst.msk [vmem:[#allocation2 + $0xa8] sm:$0xff] %vm680_vm1, %v647_v62  ;;  %v8527_v7 = vld [vmem:[#allocation2 + $0x80] sm:$0xff]  ;;  %v757_v8 = vmax.f32 %v8522_v4, 0.0 }
 0x114   : > { %11432 = vst [vmem:[#allocation8_spill] sm:$0xff] %v8524_v6  ;;  %701 = vst.msk [vmem:[#allocation2 + $0xa0] sm:$0xff] %vm680_vm1, %v642_v3  ;;  %v6740_v9 = vpop.f32.mrb[22].mxu1  ;;  %v8533_v13 = vpack.i.bf16 %v8522_v4, %v8527_v7  ;;  %v756_v14 = vmax.f32 %v8527_v7, 0.0 }
 0x115   : > { %v657_v15 = vadd.f32 %v6740_v9, %v8360_v31  ;;  %v651_v16 = vpop.f32.mrb[23].mxu1 }
 0x116   : > { %v652_v20 = vadd.f32 %v8360_v31, %v651_v16  ;;  %7631 = vrot.lane.b32.xlu0 %v8533_v13, %s8221_s21  ;;  %937 = vrot.lane.b32.xlu1 %v8537_v17, %s8221_s21  ;;  %v8544_v22 = vld [vmem:[#allocation2 + $0x98] sm:$0xff]  ;;  %v8546_v24 = vpack.i.bf16 %v757_v8, %v756_v14 }
 0x117   : > { %704 = vst.msk [vmem:[#allocation2 + $0xb8] sm:$0xff] %vm680_vm1, %v657_v15  ;;  %v8549_v25 = vld [vmem:[#allocation2 + $0x90] sm:$0xff]  ;;  %v11410_v15 = vmax.f32 %v8429_v11, 0.0 }
 0x118   : > { %703 = vst.msk [vmem:[#allocation2 + $0xb0] sm:$0xff] %vm680_vm1, %v652_v20  ;;  %v6743_v26 = vpop.f32.mrb[24].mxu1  ;;  %v7640_v27 = vpack.i.bf16 %v8544_v22, %v8549_v25 }
 0x119   : > { %v667_v32 = vadd.f32 %v6743_v26, %v8360_v31  ;;  %v661_v34 = vpop.f32.mrb[25].mxu1 }
 0x11a   : > { %v662_v35 = vadd.f32 %v8360_v31, %v661_v34  ;;  %7641 = vrot.lane.b32.xlu1 %v7640_v27, %s8221_s21  ;;  %v8562_v45 = vld [vmem:[#allocation2 + $0xa8] sm:$0xff]  ;;  %v758_v34 = vmax.f32 %v8549_v25, 0.0 }
 0x11b   : > { %706 = vst.msk [vmem:[#allocation2 + $0xc8] sm:$0xff] %vm680_vm1, %v667_v32  ;;  %v8558_v36 = vld [vmem:[#allocation2 + $0xa0] sm:$0xff]  ;;  %v761_v49 = vmax.f32 %v8562_v45, 0.0  ;;  %v11409_v32 = vmax.f32 %v8537_v17, 0.0 }
 0x11c   : > { %705 = vst.msk [vmem:[#allocation2 + $0xc0] sm:$0xff] %vm680_vm1, %v662_v35  ;;  %v6746_v38 = vpop.f32.mrb[26].mxu1  ;;  %v760_v26 = vmax.f32 %v8558_v36, 0.0  ;;  %v759_v35 = vmax.f32 %v8544_v22, 0.0 }
 0x11d   : > { %v677_v39 = vadd.f32 %v6746_v38, %v8360_v31  ;;  %v671_v42 = vpop.f32.mrb[27].mxu1 }
 0x11e   : > { %v672_v47 = vadd.f32 %v8360_v31, %v671_v42  ;;  %1086 = vrot.lane.b32.xlu1 %v8558_v36, %s8221_s21  ;;  %v8575_v61 = vld [vmem:[#allocation2 + $0xb8] sm:$0xff]  ;;  %v7695_v38 = vpack.i.bf16 %v759_v35, %v758_v34 }
 0x11f   : > { %708 = vst.msk [vmem:[#allocation2 + $0xd8] sm:$0xff] %vm680_vm1, %v677_v39  ;;  %v8569_v50 = vld [vmem:[#allocation2 + $0xb0] sm:$0xff]  ;;  %v763_v16 = vmax.f32 %v8575_v61, 0.0 }
 0x120   : > { %707 = vst.msk [vmem:[#allocation2 + $0xd0] sm:$0xff] %vm680_vm1, %v672_v47  ;;  %v7635_v57 = vpack.i.bf16 %v8569_v50, %v8562_v45  ;;  %v762_v58 = vmax.f32 %v8569_v50, 0.0 }
 0x122   : > { %7636 = vrot.lane.b32.xlu0 %v7635_v57, %s8221_s21  ;;  %v8578_v31 = vpack.i.bf16 %v762_v58, %v761_v49  ;;  %v8584_v3 = vld [vmem:[#allocation2 + $0xc8] sm:$0xff] }
 0x123   : > { %v8580_v62 = vld [vmem:[#allocation2 + $0xc0] sm:$0xff]  ;;  %v765_v47 = vmax.f32 %v8584_v3, 0.0 }
 0x124   : > { %11433 = vst [vmem:[#allocation9_spill] sm:$0xff] %v8578_v31  ;;  %v7645_v63 = vpack.i.bf16 %v8580_v62, %v8575_v61  ;;  %v764_v20 = vmax.f32 %v8580_v62, 0.0 }
 0x126   : > { %7646 = vrot.lane.b32.xlu0 %v7645_v63, %s8221_s21  ;;  %v8587_v8 = vld [vmem:[#allocation2 + $0xd8] sm:$0xff]  ;;  %v7705_v27 = vpack.i.bf16 %v764_v20, %v763_v16 }
 0x127   : > { %1235 = vrot.lane.b32.xlu1 %v8587_v8, %s8221_s21  ;;  %v8591_v9 = vld [vmem:[#allocation2 + $0xd0] sm:$0xff] }
 0x128   : > { %v7650_v14 = vpack.i.bf16 %v8591_v9, %v8584_v3  ;;  %v766_v49 = vmax.f32 %v8591_v9, 0.0 }
 0x12a   : > { %7651 = vrot.lane.b32.xlu0 %v7650_v14, %s8221_s21  ;;  %v7755_v58 = vpack.i.bf16 %v766_v49, %v765_v47  ;;  %s6411_s21 = sshll.u32 %s11473_s10, 8 }
 0x12b   : > { %7661 = vrot.lane.b32.xlu1 %v8410_v1, %s8224_s22  ;;  %s11299_s27 = scalar_lea.vmem %s11407_s9, %s6411_s21 }
 0x12e   : > { %7656 = vrot.lane.b32.xlu0 %v8392_v55, %s8224_s22 }
 0x12f   : > { %7671 = vrot.lane.b32.xlu1 %v8469_v28, %s8224_s22 }
 0x132   : > { %7666 = vrot.lane.b32.xlu0 %v8426_v10, %s8224_s22 }
 0x133   : > { %7681 = vrot.lane.b32.xlu1 %v8506_v52, %s8224_s22 }
 0x136   : > { %1723 = vrot.lane.b32.xlu0 %v11410_v15, %s8224_s22 }
 0x137   : > { %7691 = vrot.lane.b32.xlu1 %v8546_v24, %s8224_s22 }
 0x13a   : > { %7676 = vrot.lane.b32.xlu0 %v8489_v40, %s8224_s22 }
 0x13b   : > { %2021 = vrot.lane.b32.xlu1 %v760_v26, %s8224_s22 }
 0x13e   : > { %7686 = vrot.lane.b32.xlu0 %v8524_v6, %s8224_s22 }
 0x13f   : > { %7706 = vrot.lane.b32.xlu1 %v7705_v27, %s8224_s22 }
 0x142   : > { %1872 = vrot.lane.b32.xlu0 %v11409_v32, %s8224_s22 }
 0x143   : > { %7716 = vrot.lane.b32.xlu1 %v8401_v59, %s8225_s23  ;;  %v767_v59 = vmax.f32 %v8587_v8, 0.0 }
 0x146   : > { %7696 = vrot.lane.b32.xlu0 %v7695_v38, %s8224_s22 }
 0x147   : > { %2417 = vrot.lane.b32.xlu1 %v8429_v11, %s8225_s23 }
 0x14a   : > { %7701 = vrot.lane.b32.xlu0 %v8578_v31, %s8224_s22 }
 0x14b   : > { %2395 = vrot.lane.b32.xlu1 %v8395_v56, %s8226_s24 }
 0x14e   : > { %7711 = vrot.lane.b32.xlu0 %v8382_v48, %s8225_s23 }
 0x14f   : > { %7751 = vrot.lane.b32.xlu1 %v7635_v57, %s8225_s23 }
 0x152   : > { %7721 = vrot.lane.b32.xlu0 %v8447_v21, %s8225_s23 }
 0x153   : > { %2170 = vrot.lane.b32.xlu1 %v767_v59, %s8224_s22 }
 0x156   : > { %7726 = vrot.lane.b32.xlu0 %v8419_v5, %s8225_s23 }
 0x15a   : > { %7731 = vrot.lane.b32.xlu0 %v8481_v33, %s8225_s23 }
 0x15e   : > { %7736 = vrot.lane.b32.xlu0 %v8497_v43, %s8225_s23 }
 0x162   : > { %7741 = vrot.lane.b32.xlu0 %v8515_v60, %s8225_s23 }
 0x166   : > { %2391 = vrot.lane.b32.xlu0 %v8376_v46, %s8226_s24 }
 0x168   : > { %v7597_v48 = vpop.permute.xlu0 %7596 }
 0x169   : > { %v7599_v21 = vunpack.i.h.bf16 %v7597_v48  ;;  %v7598_v39 = vunpack.i.l.bf16 %v7597_v48 }
 0x16a   : > { %2393 = vrot.lane.b32.xlu0 %v8373_v44, %s8226_s24 }
 0x16b   : > { %v7364_v33 = vpack.c.bf16 %v7599_v21, %v7598_v39 }
 0x16c   : > { %v7602_v43 = vpop.permute.xlu0 %7601 }
 0x16d   : > { %7366 = vmatpush3.bf16.xpose.msk.msra.mxu1 %vm8657_vm4, %v7364_v33  ;;  %v7604_v60 = vunpack.i.h.bf16 %v7602_v43  ;;  %v7603_v42 = vunpack.i.l.bf16 %v7602_v43 }
 0x16e   : > { %7746 = vrot.lane.b32.xlu0 %v8533_v13, %s8225_s23  ;;  %7367 = vmatprep.subr.bf16.mxu1 %v11411_v37 }
 0x16f   : > { %v7368_v57 = vpack.c.bf16 %v7604_v60, %v7603_v42 }
 0x170   : > { %v7607_v63 = vpop.permute.xlu1 %7606 }
 0x171   : > { %v7609_v13 = vunpack.i.h.bf16 %v7607_v63  ;;  %v7608_v14 = vunpack.i.l.bf16 %v7607_v63 }
 0x172   : > { %2580 = vrot.lane.b32.xlu0 %v8537_v17, %s8225_s23 }
 0x173   : > { %v7372_v16 = vpack.c.bf16 %v7609_v13, %v7608_v14 }
 0x174   : > { %v788_v20 = vpop.permute.xlu1 %787 }
 0x175   : > { %7370 = vmatpush3.bf16.xpose.msk.msra.mxu1 %vm8657_vm4, %v7368_v57 }
 0x176   : > { %7756 = vrot.lane.b32.xlu0 %v7755_v58, %s8224_s22  ;;  %7371 = vmatprep.subr.bf16.mxu1 %v11411_v37 }
 0x178   : > { %v7612_v27 = vpop.permute.xlu0 %7611 }
 0x179   : > { %v7614_v34 = vunpack.i.h.bf16 %v7612_v27  ;;  %v7613_v35 = vunpack.i.l.bf16 %v7612_v27 }
 0x17b   : > { %v7376_v39 = vpack.c.bf16 %v7614_v34, %v7613_v35 }
 0x17c   : > { %v7617_v26 = vpop.permute.xlu1 %7616 }
 0x17d   : > { %7374 = vmatpush3.bf16.xpose.msk.msra.mxu1 %vm8657_vm4, %v7372_v16  ;;  %v7619_v49 = vunpack.i.h.bf16 %v7617_v26  ;;  %v7618_v57 = vunpack.i.l.bf16 %v7617_v26 }
 0x17e   : > { %6759 = vmatprep.subr.mxu1 %v11413_v23 }
 0x17f   : > { %v7380_v63 = vpack.c.bf16 %v7619_v49, %v7618_v57 }
 0x180   : > { %v7622_v59 = vpop.permute.xlu0 %7621 }
 0x181   : > { %v7623_v16 = vunpack.i.l.bf16 %v7622_v59 }
 0x184   : > { %v7627_v38 = vpop.permute.xlu1 %7626 }
 0x185   : > { %v7629_v48 = vunpack.i.h.bf16 %v7627_v38  ;;  %v7628_v21 = vunpack.i.l.bf16 %v7627_v38  ;;  %6760 = vmatpush3.xpose.msk.msra.mxu1 %vm789_vm3, %v788_v20 }
 0x186   : > { %7375 = vmatprep.subr.bf16.mxu1 %v11411_v37 }
 0x187   : > { %v7388_v33 = vpack.c.bf16 %v7629_v48, %v7628_v21 }
 0x188   : > { %6762 = vmatmul.mubr.msk.f32.vlgmr.msra.gmra.mrb[28].mxu1 %vm789_vm3, %v8376_v46  ;;  %v7632_v43 = vpop.permute.xlu0 %7631  ;;  %v938_v47 = vpop.permute.xlu1 %937 }
 0x189   : > { %7378 = vmatpush3.bf16.xpose.msk.msra.mxu1 %vm8657_vm4, %v7376_v39  ;;  %7390 = vmatpush3.bf16.xpose.msk.msra.mxu0 %vm8657_vm4, %v7388_v33  ;;  %v7634_v60 = vunpack.i.h.bf16 %v7632_v43  ;;  %v7633_v42 = vunpack.i.l.bf16 %v7632_v43 }
 0x18a   : > { %6764 = vmatprep.mubr.msk.f32.mxu1 %vm8223_vm2, %v11413_v23  ;;  %7379 = vmatprep.subr.bf16.mxu1 %v11411_v37 }
 0x18b   : > { %7391 = vmatprep.subr.bf16.mxu0 %v11411_v37  ;;  %v7392_v46 = vpack.c.bf16 %v7634_v60, %v7633_v42 }
 0x18c   : > { %6765 = vmatmul.mubr.msk.f32.gmra.mrb[30].mxu1 %vm789_vm3, %v8373_v44  ;;  %v7642_v58 = vpop.permute.xlu1 %7641  ;;  %v7624_v44 = vunpack.i.h.bf16 %v7622_v59 }
 0x18d   : > { %6767 = vmatprep.mubr.msk.f32.mxu1 %vm8223_vm2, %v11413_v23  ;;  %v7644_v13 = vunpack.i.h.bf16 %v7642_v58  ;;  %v7643_v14 = vunpack.i.l.bf16 %v7642_v58 }
 0x18e   : > { %v7384_v27 = vpack.c.bf16 %v7624_v44, %v7623_v16 }
 0x18f   : > { %v7396_v26 = vpack.c.bf16 %v7644_v13, %v7643_v14 }
 0x190   : > { %6768 = vmatmul.mubr.msk.f32.gmra.mrb[32].mxu1 %vm789_vm3, %v8395_v56  ;;  %v1087_v56 = vpop.permute.xlu1 %1086 }
 0x191   : > { %7382 = vmatpush3.bf16.xpose.msk.msra.mxu1 %vm8657_vm4, %v7380_v63  ;;  %7394 = vmatpush3.bf16.xpose.msk.msra.mxu0 %vm8657_vm4, %v7392_v46 }
 0x192   : > { %6770 = vmatprep.mubr.msk.f32.mxu1 %vm8223_vm2, %v11413_v23  ;;  %7383 = vmatprep.subr.bf16.mxu1 %v11411_v37 }
 0x193   : > { %7395 = vmatprep.subr.bf16.mxu0 %v11411_v37 }
 0x194   : > { %v7637_v20 = vpop.permute.xlu0 %7636  ;;  %6771 = vmatmul.mubr.msk.f32.gmra.mrb[34].mxu1 %vm789_vm3, %v8390_v54 }
 0x195   : > { %6773 = vmatprep.mubr.msk.f32.mxu1 %vm8223_vm2, %v11413_v23  ;;  %v7638_v38 = vunpack.i.l.bf16 %v7637_v20 }
 0x198   : > { %v7647_v34 = vpop.permute.xlu0 %7646  ;;  %6774 = vmatmul.mubr.msk.f32.gmra.mrb[36].mxu1 %vm789_vm3, %v8413_v2  ;;  %v7639_v2 = vunpack.i.h.bf16 %v7637_v20 }
 0x199   : > { %7386 = vmatpush3.bf16.xpose.msk.msra.mxu1 %vm8657_vm4, %v7384_v27  ;;  %7398 = vmatpush3.bf16.xpose.msk.msra.mxu0 %vm8657_vm4, %v7396_v26  ;;  %v8713_v35 = vpop.permute.xlu1 %1235  ;;  %v7648_v49 = vunpack.i.l.bf16 %v7647_v34 }
 0x19a   : > { %6776 = vmatprep.mubr.msk.f32.mxu1 %vm8223_vm2, %v11413_v23  ;;  %6794 = vmatprep.subr.mxu1 %v11413_v23  ;;  %v7400_v21 = vpack.c.bf16 %v7639_v2, %v7638_v38 }
 0x19b   : > { %6829 = vmatprep.subr.mxu0 %v11413_v23 }
 0x19c   : > { %v7652_v54 = vpop.permute.xlu0 %7651  ;;  %6777 = vmatmul.mubr.msk.f32.gmra.mrb[38].mxu1 %vm789_vm3, %v8408_v0 }
 0x19d   : > { %6779 = vmatprep.mubr.msk.f32.mxu1 %vm8223_vm2, %v11413_v23  ;;  %v7662_v59 = vpop.permute.xlu1 %7661  ;;  %v7653_v13 = vunpack.i.l.bf16 %v7652_v54 }
 0x19e   : > { %v7664_v0 = vunpack.i.h.bf16 %v7662_v59  ;;  %v7663_v43 = vunpack.i.l.bf16 %v7662_v59 }
 0x1a0   : > { %6780 = vmatmul.mubr.msk.f32.gmra.mrb[40].mxu1 %vm789_vm3, %v8429_v11  ;;  %v7657_v48 = vpop.permute.xlu0 %7656  ;;  %v7415_v57 = vpack.c.bf16 %v7664_v0, %v7663_v43 }
 0x1a1   : > { %v7659_v39 = vunpack.i.h.bf16 %v7657_v48  ;;  %v7658_v33 = vunpack.i.l.bf16 %v7657_v48  ;;  %6795 = vmatpush3.xpose.msk.msra.mxu1 %vm789_vm3, %v938_v47  ;;  %6830 = vmatpush3.xpose.msk.msra.mxu0 %vm789_vm3, %v1087_v56  ;;  %v7649_v47 = vunpack.i.h.bf16 %v7647_v34 }
 0x1a2   : > { %6796 = vmatprep.mubr.msk.f32.mxu1 %vm8223_vm2, %v11413_v23  ;;  %7399 = vmatprep.subr.bf16.mxu1 %v11411_v37 }
 0x1a3   : > { %v7412_v60 = vpack.c.bf16 %v7659_v39, %v7658_v33  ;;  %7411 = vmatprep.subr.bf16.mxu0 %v11411_v37 }
 0x1a4   : > { %6797 = vmatmul.mubr.msk.f32.vlgmr.msra.gmra.mrb[42].mxu1 %vm789_vm3, %v8431_v12  ;;  %6832 = vmatmul.mubr.msk.f32.vlgmr.msra.gmra.mrb[0].mxu0 %vm789_vm3, %v8509_v53  ;;  %v7667_v42 = vpop.permute.xlu0 %7666  ;;  %v7404_v53 = vpack.c.bf16 %v7649_v47, %v7648_v49 }
 0x1a5   : > { %7402 = vmatpush3.bf16.xpose.msk.msra.mxu1 %vm8657_vm4, %v7400_v21  ;;  %7413 = vmatpush3.bf16.msra.mxu0 %v7412_v60  ;;  %v7669_v46 = vunpack.i.h.bf16 %v7667_v42  ;;  %v7668_v58 = vunpack.i.l.bf16 %v7667_v42 }
 0x1a6   : > { %6799 = vmatprep.mubr.msk.f32.mxu1 %vm8223_vm2, %v11413_v23  ;;  %6834 = vmatprep.mubr.msk.f32.mxu0 %vm8223_vm2, %v11413_v23 }
 0x1a7   : > { %7414 = vmatprep.subr.bf16.mxu0 %v11411_v37  ;;  %7403 = vmatprep.subr.bf16.mxu1 %v11411_v37  ;;  %v7418_v63 = vpack.c.bf16 %v7669_v46, %v7668_v58 }
 0x1a8   : > { %6800 = vmatmul.mubr.msk.f32.gmra.mrb[44].mxu1 %vm789_vm3, %v8442_v19  ;;  %6835 = vmatmul.mubr.msk.f32.gmra.mrb[2].mxu0 %vm789_vm3, %v8502_v51  ;;  %v7654_v19 = vunpack.i.h.bf16 %v7652_v54 }
 0x1a9   : > { %7416 = vmatpush3.bf16.msra.mxu0 %v7415_v57  ;;  %6802 = vmatprep.mubr.msk.f32.mxu1 %vm8223_vm2, %v11413_v23 }
 0x1aa   : > { %6837 = vmatprep.mubr.msk.f32.mxu0 %vm8223_vm2, %v11413_v23  ;;  %7417 = vmatprep.subr.bf16.mxu0 %v11411_v37  ;;  %v7408_v51 = vpack.c.bf16 %v7654_v19, %v7653_v13 }
 0x1ac   : > { %6803 = vmatmul.mubr.msk.f32.gmra.mrb[46].mxu1 %vm789_vm3, %v8440_v18  ;;  %6838 = vmatmul.mubr.msk.f32.gmra.mrb[4].mxu0 %vm789_vm3, %v8527_v7  ;;  %v1724_v18 = vpop.permute.xlu0 %1723 }
 0x1ad   : > { %7406 = vmatpush3.bf16.xpose.msk.msra.mxu1 %vm8657_vm4, %v7404_v53  ;;  %7419 = vmatpush3.bf16.msra.mxu0 %v7418_v63 }
 0x1ae   : > { %6805 = vmatprep.mubr.msk.f32.mxu1 %vm8223_vm2, %v11413_v23  ;;  %6840 = vmatprep.mubr.msk.f32.mxu0 %vm8223_vm2, %v11413_v23 }
 0x1af   : > { %6899 = vmatprep.subr.mxu0 %v11413_v23  ;;  %7407 = vmatprep.subr.bf16.mxu1 %v11411_v37 }
 0x1b0   : > { %6806 = vmatmul.mubr.msk.f32.gmra.mrb[48].mxu1 %vm789_vm3, %v8472_v29  ;;  %6841 = vmatmul.mubr.msk.f32.gmra.mrb[6].mxu0 %vm789_vm3, %v8522_v4  ;;  %v7672_v29 = vpop.permute.xlu1 %7671  ;;  %v7677_v7 = vpop.permute.xlu0 %7676 }
 0x1b1   : > { %6900 = vmatpush3.msra.mxu0 %v1724_v18  ;;  %6808 = vmatprep.mubr.msk.f32.mxu1 %vm8223_vm2, %v11413_v23  ;;  %v7673_v4 = vunpack.i.l.bf16 %v7672_v29 }
 0x1b2   : > { %6843 = vmatprep.mubr.msk.f32.mxu0 %vm8223_vm2, %v11413_v23  ;;  %7429 = vmatprep.subr.bf16.mxu0 %v11411_v37 }
 0x1b4   : > { %6809 = vmatmul.mubr.msk.f32.gmra.mrb[50].mxu1 %vm789_vm3, %v8474_v30  ;;  %6844 = vmatmul.mubr.msk.f32.gmra.mrb[8].mxu0 %vm789_vm3, %v8549_v25  ;;  %v7674_v30 = vunpack.i.h.bf16 %v7672_v29  ;;  %v7678_v25 = vunpack.i.l.bf16 %v7677_v7  ;;  %v7682_v14 = vpop.permute.xlu1 %7681  ;;  %v8812_v20 = vpop.permute.xlu0 %7686 }
 0x1b5   : > { %7410 = vmatpush3.bf16.xpose.msk.msra.mxu1 %vm8657_vm4, %v7408_v51  ;;  %6811 = vmatprep.mubr.msk.f32.mxu1 %vm8223_vm2, %v11413_v23  ;;  %v7683_v44 = vunpack.i.l.bf16 %v7682_v14 }
 0x1b6   : > { %6846 = vmatprep.mubr.msk.f32.mxu0 %vm8223_vm2, %v11413_v23  ;;  %6864 = vmatprep.subr.mxu1 %v11413_v23 }
 0x1b8   : > { %6812 = vmatmul.mubr.msk.f32.gmra.mrb[52].mxu1 %vm789_vm3, %v8492_v41  ;;  %6847 = vmatmul.mubr.msk.f32.gmra.mrb[10].mxu0 %vm789_vm3, %v8544_v22  ;;  %v7421_v41 = vpack.c.bf16 %v7674_v30, %v7673_v4  ;;  %v7679_v22 = vunpack.i.h.bf16 %v7677_v7  ;;  %v1873_v56 = vpop.permute.xlu0 %1872 }
 0x1b9   : > { %6814 = vmatprep.mubr.msk.f32.mxu1 %vm8223_vm2, %v11413_v23  ;;  %6849 = vmatprep.mubr.msk.f32.mxu0 %vm8223_vm2, %v11413_v23 }
 0x1ba   : > { %v7424_v16 = vpack.c.bf16 %v7679_v22, %v7678_v25 }
 0x1bc   : > { %6815 = vmatmul.mubr.msk.f32.gmra.mrb[54].mxu1 %vm789_vm3, %v8537_v17  ;;  %6850 = vmatmul.mubr.msk.f32.gmra.mrb[12].mxu0 %vm789_vm3, %v8558_v36  ;;  %v7684_v36 = vunpack.i.h.bf16 %v7682_v14 }
 0x1bd   : > { %6865 = vmatpush3.xpose.msk.msra.mxu1 %vm789_vm3, %v8713_v35  ;;  %6866 = vmatprep.mubr.msk.f32.mxu1 %vm8223_vm2, %v11413_v23 }
 0x1be   : > { %7420 = vmatprep.subr.bf16.mxu1 %v11411_v37  ;;  %6901 = vmatprep.mubr.msk.f32.mxu0 %vm8223_vm2, %v11413_v23 }
 0x1c0   : > { %6867 = vmatmul.mubr.msk.f32.vlgmr.msra.gmra.mrb[56].mxu1 %vm789_vm3, %v8562_v45  ;;  %v7427_v45 = vpack.c.bf16 %v7684_v36, %v7683_v44 }
 0x1c1   : > { %7422 = vmatpush3.bf16.msra.mxu1 %v7421_v41  ;;  %6869 = vmatprep.mubr.msk.f32.mxu1 %vm8223_vm2, %v11413_v23 }
 0x1c2   : > { %7423 = vmatprep.subr.bf16.mxu1 %v11411_v37 }
 0x1c4   : > { %6870 = vmatmul.mubr.msk.f32.gmra.mrb[58].mxu1 %vm789_vm3, %v8569_v50  ;;  %v11408_v50 = vlaneseq }
 0x1c5   : > { %7425 = vmatpush3.bf16.msra.mxu1 %v7424_v16  ;;  %6872 = vmatprep.mubr.msk.f32.mxu1 %vm8223_vm2, %v11413_v23 }
 0x1c6   : > { %7426 = vmatprep.subr.bf16.mxu1 %v11411_v37 }
 0x1c8   : > { %6873 = vmatmul.mubr.msk.f32.gmra.mrb[60].mxu1 %vm789_vm3, %v8575_v61  ;;  %v8838_v61 = vand.u32 127, %v11408_v50 }
 0x1c9   : > { %7428 = vmatpush3.bf16.msra.mxu1 %v7427_v45  ;;  %6875 = vmatprep.mubr.msk.f32.mxu1 %vm8223_vm2, %v11413_v23 }
 0x1ca   : > { %6934 = vmatprep.subr.mxu1 %v11413_v23  ;;  %11436 = vst [vmem:[#allocation10_spill] sm:$0xff] %v8838_v61  ;;  %vm711_vm5 = vcmp.lt.s32.totalorder %v8838_v61, 49 }
 0x1cc   : > { %6876 = vmatmul.mubr.msk.f32.gmra.mrb[62].mxu1 %vm789_vm3, %v8580_v62 }
 0x1cd   : > { %6935 = vmatpush3.msra.mxu1 %v1873_v56  ;;  %6878 = vmatprep.mubr.msk.f32.mxu1 %vm8223_vm2, %v11413_v23 }
 0x1ce   : > { %7438 = vmatprep.subr.bf16.mxu1 %v11411_v37 }
 0x1d0   : > { %6879 = vmatmul.mubr.msk.f32.gmra.mrb[64].mxu1 %vm789_vm3, %v8584_v3 }
 0x1d1   : > { %6881 = vmatprep.mubr.msk.f32.mxu1 %vm8223_vm2, %v11413_v23 }
 0x1d4   : > { %6882 = vmatmul.mubr.msk.f32.gmra.mrb[66].mxu1 %vm789_vm3, %v8591_v9 }
 0x1d5   : > { %6884 = vmatprep.mubr.msk.f32.mxu1 %vm8223_vm2, %v11413_v23 }
 0x1d8   : > { %6885 = vmatmul.mubr.msk.f32.gmra.mrb[68].mxu1 %vm789_vm3, %v8587_v8 }
 0x1d9   : > { %6936 = vmatprep.mubr.msk.f32.mxu1 %vm8223_vm2, %v11413_v23 }
 0x25b   : > { %v884_v62 = vpop.f32.mrb[28].mxu1 }
 0x25c   : > { %v8843_v3 = vsel %vm711_vm5, %v884_v62, -1e+30  ;;  %v6763_v9 = vpop.f32.mrb[29].mxu1 }
 0x25d   : > { %v1396_v26 = vsel %vm1395_vm6, %v8843_v3, -inf }
 0x25e   : > { %1397 = vmax.xlane.f32.xlu0 %v1396_v26 }
 0x25f   : > { %v889_v8 = vpop.f32.mrb[30].mxu1 }
 0x260   : > { %v8849_v27 = vsel %vm711_vm5, %v889_v8, -1e+30  ;;  %v6766_v34 = vpop.f32.mrb[31].mxu1 }
 0x261   : > { %v1399_v35 = vsel %vm1395_vm6, %v8849_v27, -inf }
 0x262   : > { %1400 = vmax.xlane.f32.xlu1 %v1399_v35 }
 0x263   : > { %v894_v54 = vpop.f32.mrb[32].mxu1 }
 0x264   : > { %v8855_v2 = vsel %vm711_vm5, %v894_v54, -1e+30  ;;  %v6769_v38 = vpop.f32.mrb[33].mxu1 }
 0x265   : > { %v1402_v59 = vsel %vm1395_vm6, %v8855_v2, -inf }
 0x266   : > { %1403 = vmax.xlane.f32.xlu0 %v1402_v59 }
 0x267   : > { %v899_v48 = vpop.f32.mrb[34].mxu1 }
 0x268   : > { %v8861_v21 = vsel %vm711_vm5, %v899_v48, -1e+30  ;;  %v6772_v39 = vpop.f32.mrb[35].mxu1 }
 0x269   : > { %v1405_v33 = vsel %vm1395_vm6, %v8861_v21, -inf }
 0x26a   : > { %1406 = vmax.xlane.f32.xlu0 %v1405_v33 }
 0x26b   : > { %v904_v0 = vpop.f32.mrb[36].mxu1 }
 0x26c   : > { %v8867_v43 = vsel %vm711_vm5, %v904_v0, -1e+30  ;;  %v6775_v60 = vpop.f32.mrb[37].mxu1 }
 0x26d   : > { %v1408_v42 = vsel %vm1395_vm6, %v8867_v43, -inf }
 0x26e   : > { %1409 = vmax.xlane.f32.xlu0 %v1408_v42 }
 0x26f   : > { %v909_v47 = vpop.f32.mrb[38].mxu1 }
 0x270   : > { %v8873_v49 = vsel %vm711_vm5, %v909_v47, -1e+30  ;;  %v6778_v57 = vpop.f32.mrb[39].mxu1 }
 0x271   : > { %v1411_v46 = vsel %vm1395_vm6, %v8873_v49, -inf }
 0x272   : > { %1412 = vmax.xlane.f32.xlu0 %v1411_v46 }
 0x273   : > { %v914_v58 = vpop.f32.mrb[40].mxu1 }
 0x274   : > { %v8879_v53 = vsel %vm711_vm5, %v914_v58, -1e+30  ;;  %v6781_v63 = vpop.f32.mrb[41].mxu1 }
 0x275   : > { %v1414_v19 = vsel %vm1395_vm6, %v8879_v53, -inf }
 0x276   : > { %1415 = vmax.xlane.f32.xlu0 %v1414_v19 }
 0x277   : > { %v1033_v13 = vpop.f32.mrb[42].mxu1  ;;  %v1182_v18 = vpop.f32.mrb[0].mxu0 }
 0x278   : > { %v8885_v51 = vsel %vm711_vm5, %v1033_v13, -1e+30  ;;  %v6798_v29 = vpop.f32.mrb[43].mxu1  ;;  %v6833_v30 = vpop.f32.mrb[1].mxu0  ;;  %v8891_v7 = vsel %vm711_vm5, %v1182_v18, -1e+30 }
 0x279   : > { %v1417_v4 = vsel %vm1395_vm6, %v8885_v51, -inf  ;;  %v1438_v36 = vsel %vm1395_vm6, %v8891_v7, -inf }
 0x27a   : > { %1418 = vmax.xlane.f32.xlu1 %v1417_v4 }
 0x27b   : > { %v1038_v41 = vpop.f32.mrb[44].mxu1  ;;  %v1187_v22 = vpop.f32.mrb[2].mxu0 }
 0x27c   : > { %v6801_v25 = vpop.f32.mrb[45].mxu1  ;;  %v6836_v14 = vpop.f32.mrb[3].mxu0  ;;  %v8897_v44 = vsel %vm711_vm5, %v1038_v41, -1e+30  ;;  %v8903_v26 = vsel %vm711_vm5, %v1187_v22, -1e+30 }
 0x27d   : > { %v1420_v9 = vsel %vm1395_vm6, %v8897_v44, -inf  ;;  %v1441_v59 = vsel %vm1395_vm6, %v8903_v26, -inf }
 0x27e   : > { %1439 = vmax.xlane.f32.xlu1 %v1438_v36 }
 0x27f   : > { %v1043_v16 = vpop.f32.mrb[46].mxu1  ;;  %v1192_v45 = vpop.f32.mrb[4].mxu0 }
 0x280   : > { %v6804_v56 = vpop.f32.mrb[47].mxu1  ;;  %v6839_v62 = vpop.f32.mrb[5].mxu0  ;;  %v8915_v39 = vsel %vm711_vm5, %v1043_v16, -1e+30  ;;  %v8927_v58 = vsel %vm711_vm5, %v1192_v45, -1e+30 }
 0x281   : > { %v1423_v57 = vsel %vm1395_vm6, %v8915_v39, -inf  ;;  %v1444_v30 = vsel %vm1395_vm6, %v8927_v58, -inf }
 0x282   : > { %1421 = vmax.xlane.f32.xlu1 %v1420_v9 }
 0x283   : > { %v1048_v8 = vpop.f32.mrb[48].mxu1  ;;  %v1197_v34 = vpop.f32.mrb[6].mxu0 }
 0x284   : > { %v8907_v35 = vsel %vm711_vm5, %v1197_v34, -1e+30  ;;  %v6807_v54 = vpop.f32.mrb[49].mxu1  ;;  %v6842_v38 = vpop.f32.mrb[7].mxu0  ;;  %v8939_v41 = vsel %vm711_vm5, %v1048_v8, -1e+30 }
 0x285   : > { %v1447_v48 = vsel %vm1395_vm6, %v8907_v35, -inf  ;;  %v1426_v45 = vsel %vm1395_vm6, %v8939_v41, -inf }
 0x286   : > { %1442 = vmax.xlane.f32.xlu1 %v1441_v59  ;;  %1448 = vmax.xlane.f32.xlu0 %v1447_v48 }
 0x287   : > { %v1053_v33 = vpop.f32.mrb[50].mxu1  ;;  %v1202_v0 = vpop.f32.mrb[8].mxu0 }
 0x288   : > { %v8919_v60 = vsel %vm711_vm5, %v1053_v33, -1e+30  ;;  %v6810_v42 = vpop.f32.mrb[51].mxu1  ;;  %v6845_v47 = vpop.f32.mrb[9].mxu0  ;;  %v8931_v63 = vsel %vm711_vm5, %v1202_v0, -1e+30 }
 0x289   : > { %v1429_v46 = vsel %vm1395_vm6, %v8919_v60, -inf  ;;  %v1450_v4 = vsel %vm1395_vm6, %v8931_v63, -inf }
 0x28a   : > { %1424 = vmax.xlane.f32.xlu1 %v1423_v57  ;;  %1430 = vmax.xlane.f32.xlu0 %v1429_v46 }
 0x28b   : > { %v1058_v19 = vpop.f32.mrb[52].mxu1  ;;  %v1207_v13 = vpop.f32.mrb[10].mxu0 }
 0x28c   : > { %v6813_v18 = vpop.f32.mrb[53].mxu1  ;;  %v6848_v29 = vpop.f32.mrb[11].mxu0  ;;  %v8943_v22 = vsel %vm711_vm5, %v1058_v19, -1e+30  ;;  %v8951_v62 = vsel %vm711_vm5, %v1207_v13, -1e+30 }
 0x28d   : > { %v1432_v56 = vsel %vm1395_vm6, %v8943_v22, -inf  ;;  %v1453_v38 = vsel %vm1395_vm6, %v8951_v62, -inf }
 0x28e   : > { %1445 = vmax.xlane.f32.xlu1 %v1444_v30  ;;  %1451 = vmax.xlane.f32.xlu0 %v1450_v4  ;;  %v8985_v30 = vpop.permute.xlu0 %7696 }
 0x28f   : > { %v1063_v25 = vpop.f32.mrb[54].mxu1  ;;  %v1212_v14 = vpop.f32.mrb[12].mxu0 }
 0x290   : > { %v6816_v36 = vpop.f32.mrb[55].mxu1  ;;  %v6851_v16 = vpop.f32.mrb[13].mxu0  ;;  %v8963_v59 = vsel %vm711_vm5, %v1063_v25, -1e+30  ;;  %v8975_v57 = vsel %vm711_vm5, %v1212_v14, -1e+30 }
 0x291   : > { %v1435_v47 = vsel %vm1395_vm6, %v8963_v59, -inf  ;;  %v1456_v29 = vsel %vm1395_vm6, %v8975_v57, -inf }
 0x292   : > { %1427 = vmax.xlane.f32.xlu1 %v1426_v45  ;;  %1433 = vmax.xlane.f32.xlu0 %v1432_v56 }
 0x293   : > { %v1331_v9 = vpop.f32.mrb[56].mxu1 }
 0x294   : > { %v8955_v8 = vsel %vm711_vm5, %v1331_v9, -1e+30  ;;  %v6868_v34 = vpop.f32.mrb[57].mxu1  ;;  %v8997_v9 = vpop.permute.xlu0 %7701 }
 0x295   : > { %v1459_v54 = vsel %vm1395_vm6, %v8955_v8, -inf }
 0x296   : > { %1460 = vmax.xlane.f32.xlu1 %v1459_v54  ;;  %1454 = vmax.xlane.f32.xlu0 %v1453_v38 }
 0x297   : > { %v1336_v48 = vpop.f32.mrb[58].mxu1 }
 0x298   : > { %v8967_v33 = vsel %vm711_vm5, %v1336_v48, -1e+30  ;;  %v6871_v0 = vpop.f32.mrb[59].mxu1  ;;  %v9001_v48 = vpop.permute.xlu0 %7711 }
 0x299   : > { %v1462_v42 = vsel %vm1395_vm6, %v8967_v33, -inf }
 0x29a   : > { %1463 = vmax.xlane.f32.xlu1 %v1462_v42  ;;  %1436 = vmax.xlane.f32.xlu0 %v1435_v47 }
 0x29b   : > { %v1341_v46 = vpop.f32.mrb[60].mxu1 }
 0x29c   : > { %v8979_v19 = vsel %vm711_vm5, %v1341_v46, -1e+30  ;;  %v6874_v13 = vpop.f32.mrb[61].mxu1  ;;  %v9003_v47 = vpop.permute.xlu0 %7721 }
 0x29d   : > { %v1465_v18 = vsel %vm1395_vm6, %v8979_v19, -inf  ;;  %v8187_v13 = vld [vmem:[#allocation2 + $0x18] sm:$0xff] }
 0x29e   : > { %1466 = vmax.xlane.f32.xlu1 %v1465_v18  ;;  %1457 = vmax.xlane.f32.xlu0 %v1456_v29  ;;  %v9012_v29 = vpop.permute.xlu1 %7691 }
 0x29f   : > { %v1346_v4 = vpop.f32.mrb[62].mxu1 }
 0x2a0   : > { %v8989_v25 = vsel %vm711_vm5, %v1346_v4, -1e+30  ;;  %v6877_v14 = vpop.f32.mrb[63].mxu1  ;;  %v9007_v46 = vpop.permute.xlu0 %7726 }
 0x2a1   : > { %v1468_v36 = vsel %vm1395_vm6, %v8989_v25, -inf }
 0x2a2   : > { %1469 = vmax.xlane.f32.xlu1 %v1468_v36  ;;  %v9016_v14 = vpop.permute.xlu1 %2021 }
 0x2a3   : > { %v1351_v16 = vpop.f32.mrb[64].mxu1 }
 0x2a4   : > { %v8995_v45 = vsel %vm711_vm5, %v1351_v16, -1e+30  ;;  %v6880_v56 = vpop.f32.mrb[65].mxu1  ;;  %v9010_v18 = vpop.permute.xlu0 %7731 }
 0x2a5   : > { %v1471_v34 = vsel %vm1395_vm6, %v8995_v45, -inf  ;;  %11437 = vst [vmem:[#allocation11_spill] sm:$0xff] %v9010_v18 }
 0x2a6   : > { %1472 = vmax.xlane.f32.xlu0 %v1471_v34  ;;  %v9020_v16 = vpop.permute.xlu1 %7706 }
 0x2a7   : > { %v1356_v54 = vpop.f32.mrb[66].mxu1 }
 0x2a8   : > { %v6883_v38 = vpop.f32.mrb[67].mxu1  ;;  %v9014_v4 = vpop.permute.xlu0 %7736  ;;  %v9028_v34 = vsel %vm711_vm5, %v1356_v54, -1e+30 }
 0x2a9   : > { %11438 = vst [vmem:[#allocation12_spill] sm:$0xff] %v9014_v4 }
 0x2ab   : > { %v1361_v0 = vpop.f32.mrb[68].mxu1 }
 0x2ac   : > { %v6886_v42 = vpop.f32.mrb[69].mxu1  ;;  %v9018_v36 = vpop.permute.xlu0 %7741 }
 0x2ad   : > { %v1474_v42 = vsel %vm1395_vm6, %v9028_v34, -inf }
 0x2b0   : > { %v9022_v56 = vpop.permute.xlu0 %2391 }
 0x2b3   : > { %2554 = vrot.lane.b32.xlu1 %v8431_v12, %s8226_s24  ;;  %v9024_v12 = vpop.permute.xlu1 %7716 }
 0x2b4   : > { %v9030_v38 = vpop.permute.xlu0 %2393 }
 0x2b5   : > { %11439 = vst [vmem:[#allocation13_spill] sm:$0xff] %v9030_v38 }
 0x2b7   : > { %v9038_v50 = vpop.permute.xlu1 %2417 }
 0x2b8   : > { %v9042_v15 = vpop.permute.xlu0 %7746 }
 0x2b9   : > { %11440 = vst [vmem:[#allocation14_spill] sm:$0xff] %v9042_v15 }
 0x2bb   : > { %v9044_v54 = vpop.permute.xlu1 %2395 }
 0x2bc   : > { %2397 = vrot.lane.b32.xlu0 %v8187_v13, %s8226_s24  ;;  %v9036_v13 = vsel %vm711_vm5, %v1361_v0, -1e+30  ;;  %11441 = vst [vmem:[#allocation15_spill] sm:$0xff] %v9044_v54  ;;  %v9046_v37 = vpop.permute.xlu0 %2580 }
 0x2bd   : > { %v1477_v32 = vsel %vm1395_vm6, %v9036_v13, -inf  ;;  %11442 = vst [vmem:[#allocation16_spill] sm:$0xff] %v9046_v37 }
 0x2bf   : > { %v9048_v23 = vpop.permute.xlu1 %7751 }
 0x2c0   : > { %11443 = vst [vmem:[#allocation17_spill] sm:$0xff] %v9048_v23  ;;  %v9050_v31 = vpop.permute.xlu0 %7756 }
 0x2c3   : > { %v9052_v61 = vpop.permute.xlu1 %2170 }
 0x2d7   : > { %1475 = vmax.xlane.f32.xlu1 %v1474_v42 }
 0x2db   : > { %1478 = vmax.xlane.f32.xlu0 %v1477_v32 }
 0x2eb   : > { %v1398_v0 = vpop.xlane.xlu0 %1397 }
 0x2ec   : > { %v1480_v42 = vsub.f32 %v8843_v3, %v1398_v0 }
 0x2ee   : > { %v1508_v6 = vmul.f32 1.442695, %v1480_v42 }
 0x2ef   : > { %v1401_v52 = vpop.xlane.xlu1 %1400 }
 0x2f0   : > { %7835 = vpow2.f32 %v1508_v6  ;;  %v1481_v28 = vsub.f32 %v8849_v27, %v1401_v52 }
 0x2f2   : > { %v1510_v1 = vmul.f32 1.442695, %v1481_v28 }
 0x2f3   : > { %v1404_v32 = vpop.xlane.xlu0 %1403 }
 0x2f4   : > { %7837 = vpow2.f32 %v1510_v1  ;;  %v1482_v4 = vsub.f32 %v8855_v2, %v1404_v32 }
 0x2f6   : > { %v1512_v37 = vmul.f32 1.442695, %v1482_v4 }
 0x2f7   : > { %v1407_v54 = vpop.xlane.xlu0 %1406 }
 0x2f8   : > { %7839 = vpow2.f32 %v1512_v37  ;;  %v1483_v23 = vsub.f32 %v8861_v21, %v1407_v54 }
 0x2fa   : > { %v9058_v38 = vpop.eup %7835  ;;  %v1514_v15 = vmul.f32 1.442695, %v1483_v23 }
 0x2fb   : > { %v1410_v18 = vpop.xlane.xlu0 %1409  ;;  %v1564_v3 = vsel %vm1395_vm6, %v9058_v38, 0.0 }
 0x2fc   : > { %7841 = vpow2.f32 %v1514_v15  ;;  %v1484_v52 = vsub.f32 %v8867_v43, %v1410_v18  ;;  %1565 = vadd.xlane.f32.xlu1 %v1564_v3 }
 0x2fe   : > { %v9063_v28 = vpop.eup %7837  ;;  %v1516_v1 = vmul.f32 1.442695, %v1484_v52 }
 0x2ff   : > { %v1413_v6 = vpop.xlane.xlu0 %1412  ;;  %v1567_v37 = vsel %vm1395_vm6, %v9063_v28, 0.0 }
 0x300   : > { %7843 = vpow2.f32 %v1516_v1  ;;  %v1485_v27 = vsub.f32 %v8873_v49, %v1413_v6  ;;  %1568 = vadd.xlane.f32.xlu0 %v1567_v37 }
 0x302   : > { %v9068_v23 = vpop.eup %7839  ;;  %v1518_v2 = vmul.f32 1.442695, %v1485_v27 }
 0x303   : > { %v1416_v21 = vpop.xlane.xlu0 %1415  ;;  %v1570_v15 = vsel %vm1395_vm6, %v9068_v23, 0.0 }
 0x304   : > { %7845 = vpow2.f32 %v1518_v2  ;;  %v1486_v43 = vsub.f32 %v8879_v53, %v1416_v21  ;;  %1571 = vadd.xlane.f32.xlu1 %v1570_v15 }
 0x306   : > { %v9073_v18 = vpop.eup %7841  ;;  %v1520_v4 = vmul.f32 1.442695, %v1486_v43 }
 0x307   : > { %v1419_v54 = vpop.xlane.xlu1 %1418  ;;  %v1573_v0 = vsel %vm1395_vm6, %v9073_v18, 0.0 }
 0x308   : > { %7847 = vpow2.f32 %v1520_v4  ;;  %v1487_v49 = vsub.f32 %v8885_v51, %v1419_v54  ;;  %1574 = vadd.xlane.f32.xlu0 %v1573_v0 }
 0x30a   : > { %v9078_v42 = vpop.eup %7843  ;;  %v1522_v32 = vmul.f32 1.442695, %v1487_v49 }
 0x30b   : > { %v1440_v3 = vpop.xlane.xlu1 %1439  ;;  %v1576_v52 = vsel %vm1395_vm6, %v9078_v42, 0.0 }
 0x30c   : > { %7849 = vpow2.f32 %v1522_v32  ;;  %v1494_v53 = vsub.f32 %v8891_v7, %v1440_v3  ;;  %1577 = vadd.xlane.f32.xlu1 %v1576_v52 }
 0x30e   : > { %v9083_v1 = vpop.eup %7845  ;;  %v1536_v6 = vmul.f32 1.442695, %v1494_v53 }
 0x30f   : > { %v1422_v37 = vpop.xlane.xlu1 %1421  ;;  %v1579_v27 = vsel %vm1395_vm6, %v9083_v1, 0.0 }
 0x310   : > { %7851 = vpow2.f32 %v1536_v6  ;;  %v1488_v51 = vsub.f32 %v8897_v44, %v1422_v37  ;;  %1580 = vadd.xlane.f32.xlu0 %v1579_v27 }
 0x312   : > { %v9088_v2 = vpop.eup %7847  ;;  %v1524_v21 = vmul.f32 1.442695, %v1488_v51 }
 0x313   : > { %v1443_v15 = vpop.xlane.xlu1 %1442  ;;  %v1449_v43 = vpop.xlane.xlu0 %1448  ;;  %v1582_v7 = vsel %vm1395_vm6, %v9088_v2, 0.0 }
 0x314   : > { %7853 = vpow2.f32 %v1524_v21  ;;  %v1495_v4 = vsub.f32 %v8903_v26, %v1443_v15  ;;  %v1497_v54 = vsub.f32 %v8907_v35, %v1449_v43  ;;  %1583 = vadd.xlane.f32.xlu1 %v1582_v7 }
 0x316   : > { %v9094_v0 = vpop.eup %7849  ;;  %v1538_v49 = vmul.f32 1.442695, %v1495_v4  ;;  %v1542_v32 = vmul.f32 1.442695, %v1497_v54 }
 0x317   : > { %v1425_v44 = vpop.xlane.xlu1 %1424  ;;  %v1431_v3 = vpop.xlane.xlu0 %1430  ;;  %v1585_v52 = vsel %vm1395_vm6, %v9094_v0, 0.0 }
 0x318   : > { %7855 = vpow2.f32 %v1538_v49  ;;  %v1489_v53 = vsub.f32 %v8915_v39, %v1425_v44  ;;  %v1491_v6 = vsub.f32 %v8919_v60, %v1431_v3  ;;  %1586 = vadd.xlane.f32.xlu1 %v1585_v52 }
 0x319   : > { %7857 = vpow2.f32 %v1542_v32 }
 0x31a   : > { %v9100_v26 = vpop.eup %7851  ;;  %v1526_v35 = vmul.f32 1.442695, %v1489_v53  ;;  %v1530_v37 = vmul.f32 1.442695, %v1491_v6 }
 0x31b   : > { %v1446_v27 = vpop.xlane.xlu1 %1445  ;;  %v1452_v51 = vpop.xlane.xlu0 %1451  ;;  %v1606_v21 = vsel %vm1395_vm6, %v9100_v26, 0.0 }
 0x31c   : > { %7859 = vpow2.f32 %v1526_v35  ;;  %v1496_v15 = vsub.f32 %v8927_v58, %v1446_v27  ;;  %1607 = vadd.xlane.f32.xlu1 %v1606_v21  ;;  %v1498_v60 = vsub.f32 %v8931_v63, %v1452_v51 }
 0x31d   : > { %7861 = vpow2.f32 %v1530_v37 }
 0x31e   : > { %v9105_v43 = vpop.eup %7853  ;;  %v1540_v39 = vmul.f32 1.442695, %v1496_v15  ;;  %v1544_v44 = vmul.f32 1.442695, %v1498_v60 }
 0x31f   : > { %v1428_v7 = vpop.xlane.xlu1 %1427  ;;  %v1434_v4 = vpop.xlane.xlu0 %1433  ;;  %v1588_v54 = vsel %vm1395_vm6, %v9105_v43, 0.0 }
 0x320   : > { %7863 = vpow2.f32 %v1540_v39  ;;  %v1490_v49 = vsub.f32 %v8939_v41, %v1428_v7  ;;  %1589 = vadd.xlane.f32.xlu1 %v1588_v54  ;;  %v1492_v3 = vsub.f32 %v8943_v22, %v1434_v4 }
 0x322   : > { %v9111_v32 = vpop.eup %7855  ;;  %v1528_v58 = vmul.f32 1.442695, %v1490_v49  ;;  %v1532_v37 = vmul.f32 1.442695, %v1492_v3 }
 0x323   : > { %v9114_v52 = vpop.eup %7857  ;;  %v1461_v53 = vpop.xlane.xlu1 %1460  ;;  %v1609_v63 = vsel %vm1395_vm6, %v9111_v32, 0.0 }
 0x324   : > { %v1455_v6 = vpop.xlane.xlu0 %1454  ;;  %7865 = vpow2.f32 %v1528_v58  ;;  %1610 = vadd.xlane.f32.xlu1 %v1609_v63  ;;  %v1615_v35 = vsel %vm1395_vm6, %v9114_v52, 0.0 }
 0x325   : > { %1616 = vadd.xlane.f32.xlu0 %v1615_v35  ;;  %7867 = vpow2.f32 %v1544_v44  ;;  %v1499_v27 = vsub.f32 %v8951_v62, %v1455_v6  ;;  %v1501_v6 = vsub.f32 %v8955_v8, %v1461_v53 }
 0x326   : > { %v9120_v41 = vpop.eup %7859  ;;  %7869 = vpow2.f32 %v1532_v37 }
 0x327   : > { %v9123_v22 = vpop.eup %7861  ;;  %v1464_v51 = vpop.xlane.xlu1 %1463  ;;  %v1591_v15 = vsel %vm1395_vm6, %v9120_v41, 0.0  ;;  %v1546_v4 = vmul.f32 1.442695, %v1499_v27 }
 0x328   : > { %v1437_v21 = vpop.xlane.xlu0 %1436  ;;  %1592 = vadd.xlane.f32.xlu1 %v1591_v15  ;;  %v1597_v60 = vsel %vm1395_vm6, %v9123_v22, 0.0  ;;  %v1502_v15 = vsub.f32 %v8967_v33, %v1464_v51 }
 0x329   : > { %v1493_v39 = vsub.f32 %v8963_v59, %v1437_v21  ;;  %1598 = vadd.xlane.f32.xlu0 %v1597_v60 }
 0x32a   : > { %v9130_v7 = vpop.eup %7863  ;;  %v1552_v60 = vmul.f32 1.442695, %v1502_v15 }
 0x32b   : > { %v1534_v54 = vmul.f32 1.442695, %v1493_v39  ;;  %v1467_v62 = vpop.xlane.xlu1 %1466  ;;  %v1612_v44 = vsel %vm1395_vm6, %v9130_v7, 0.0 }
 0x32c   : > { %v1458_v49 = vpop.xlane.xlu0 %1457  ;;  %v1503_v58 = vsub.f32 %v8979_v19, %v1467_v62  ;;  %1613 = vadd.xlane.f32.xlu1 %v1612_v44 }
 0x32d   : > { %v1500_v3 = vsub.f32 %v8975_v57, %v1458_v49  ;;  %7871 = vpow2.f32 %v1534_v54  ;;  %v1550_v57 = vmul.f32 1.442695, %v1501_v6 }
 0x32e   : > { %v9136_v59 = vpop.eup %7865  ;;  %7873 = vpow2.f32 %v1546_v4  ;;  %v1554_v63 = vmul.f32 1.442695, %v1503_v58 }
 0x32f   : > { %v1548_v35 = vmul.f32 1.442695, %v1500_v3  ;;  %v1470_v37 = vpop.xlane.xlu1 %1469  ;;  %v1594_v27 = vsel %vm1395_vm6, %v9136_v59, 0.0  ;;  %v9141_v21 = vpop.eup %7867 }
 0x330   : > { %7875 = vpow2.f32 %v1554_v63  ;;  %v1504_v19 = vsub.f32 %v8989_v25, %v1470_v37  ;;  %1595 = vadd.xlane.f32.xlu1 %v1594_v27  ;;  %v1618_v8 = vsel %vm1395_vm6, %v9141_v21, 0.0  ;;  %v9147_v53 = vpop.eup %7869 }
 0x331   : > { %7877 = vpow2.f32 %v1548_v35  ;;  %v1600_v25 = vsel %vm1395_vm6, %v9147_v53, 0.0 }
 0x332   : > { %v1556_v39 = vmul.f32 1.442695, %v1504_v19  ;;  %v9179_v19 = vld [vmem:[#allocation2 + $0x90] sm:$0xff] }
 0x334   : > { %7879 = vpow2.f32 %v1556_v39  ;;  %1619 = vadd.xlane.f32.xlu1 %v1618_v8  ;;  %v8188_v39 = vld [vmem:[#allocation2 + $0x20] sm:$0xff]  ;;  %v9187_v8 = vpop.permute.xlu1 %2554 }
 0x335   : > { %7881 = vpow2.f32 %v1550_v57  ;;  %v9181_v57 = vld [vmem:[#allocation2 + $0x98] sm:$0xff]  ;;  %11445 = vst [vmem:[#allocation19_spill] sm:$0xff] %v9187_v8  ;;  %v7688_v8 = vunpack.i.l.bf16 %v8812_v20 }
 0x336   : > { %7883 = vpow2.f32 %v1552_v60  ;;  %v7760_v15 = vpack.i.bf16 %v9181_v57, %v9179_v19  ;;  %v1473_v60 = vpop.xlane.xlu0 %1472 }
 0x337   : > { %v9149_v4 = vpop.eup %7871 }
 0x338   : > { %v9153_v54 = vpop.eup %7873  ;;  %1601 = vadd.xlane.f32.xlu1 %v1600_v25  ;;  %v1603_v33 = vsel %vm1395_vm6, %v9149_v4, 0.0 }
 0x339   : > { %1604 = vadd.xlane.f32.xlu0 %v1603_v33  ;;  %v1621_v62 = vsel %vm1395_vm6, %v9153_v54, 0.0 }
 0x33a   : > { %v9157_v51 = vpop.eup %7875 }
 0x33b   : > { %v1633_v49 = vsel %vm1395_vm6, %v9157_v51, 0.0  ;;  %v9163_v44 = vpop.eup %7877 }
 0x33c   : > { %1622 = vadd.xlane.f32.xlu1 %v1621_v62  ;;  %v1624_v6 = vsel %vm1395_vm6, %v9163_v44, 0.0  ;;  %v1505_v62 = vsub.f32 %v8995_v45, %v1473_v60  ;;  %v9201_v60 = vld [vmem:[#allocation2 + $0xb8] sm:$0xff] }
 0x33d   : > { %1634 = vadd.xlane.f32.xlu0 %v1633_v49 }
 0x33e   : > { %v9165_v58 = vpop.eup %7879 }
 0x33f   : > { %11444 = vst [vmem:[#allocation18_spill] sm:$0xff] %v9165_v58  ;;  %v1636_v3 = vsel %vm1395_vm6, %v9165_v58, 0.0  ;;  %v9171_v63 = vpop.eup %7881 }
 0x340   : > { %1625 = vadd.xlane.f32.xlu1 %v1624_v6  ;;  %v1627_v35 = vsel %vm1395_vm6, %v9171_v63, 0.0  ;;  %v9175_v37 = vpop.eup %7883 }
 0x341   : > { %1637 = vadd.xlane.f32.xlu0 %v1636_v3  ;;  %v1630_v27 = vsel %vm1395_vm6, %v9175_v37, 0.0  ;;  %v1558_v3 = vmul.f32 1.442695, %v1505_v62 }
 0x344   : > { %1628 = vadd.xlane.f32.xlu1 %v1627_v35 }
 0x348   : > { %1631 = vadd.xlane.f32.xlu1 %v1630_v27 }
 0x357   : > { %7761 = vrot.lane.b32.xlu0 %v7760_v15, %s8225_s23 }
 0x359   : > { %2399 = vrot.lane.b32.xlu1 %v8188_v39, %s8226_s24  ;;  %v9199_v39 = vpop.permute.xlu0 %2397 }
 0x35a   : > { %11448 = vst [vmem:[#allocation22_spill] sm:$0xff] %v9199_v39 }
 0x364   : > { %v1476_v25 = vpop.xlane.xlu1 %1475 }
 0x365   : > { %v1506_v33 = vsub.f32 %v9028_v34, %v1476_v25  ;;  %v9203_v25 = vld [vmem:[#allocation2 + $0xc0] sm:$0xff] }
 0x366   : > { %v7765_v62 = vpack.i.bf16 %v9203_v25, %v9201_v60 }
 0x367   : > { %v1560_v49 = vmul.f32 1.442695, %v1506_v33  ;;  %v8189_v33 = vld [vmem:[#allocation2 + $0x40] sm:$0xff] }
 0x368   : > { %v1479_v34 = vpop.xlane.xlu0 %1478 }
 0x369   : > { %7885 = vpow2.f32 %v1560_v49 }
 0x36a   : > { %7887 = vpow2.f32 %v1558_v3  ;;  %v8190_v3 = vld [vmem:[#allocation2 + $0x28] sm:$0xff] }
 0x373   : > { %v9191_v6 = vpop.eup %7885 }
 0x374   : > { %11446 = vst [vmem:[#allocation20_spill] sm:$0xff] %v9191_v6  ;;  %v1642_v35 = vsel %vm1395_vm6, %v9191_v6, 0.0  ;;  %v9195_v27 = vpop.eup %7887  ;;  %v8191_v6 = vld [vmem:[#allocation2 + $0x30] sm:$0xff] }
 0x375   : > { %11447 = vst [vmem:[#allocation21_spill] sm:$0xff] %v9195_v27  ;;  %v1639_v15 = vsel %vm1395_vm6, %v9195_v27, 0.0 }
 0x376   : > { %1643 = vadd.xlane.f32.xlu0 %v1642_v35 }
 0x37d   : > { %1640 = vadd.xlane.f32.xlu1 %v1639_v15  ;;  %v7689_v15 = vunpack.i.h.bf16 %v8812_v20 }
 0x37f   : > { %v7430_v39 = vpack.c.bf16 %v7689_v15, %v7688_v8  ;;  %v7699_v8 = vunpack.i.h.bf16 %v8985_v30 }
 0x389   : > { %v1566_v45 = vpop.xlane.xlu1 %1565 }
 0x38a   : > { %7889 = vrcp.f32 %v1566_v45 }
 0x38c   : > { %2556 = vrot.lane.b32.xlu0 %v8189_v33, %s8226_s24 }
 0x38d   : > { %v1569_v49 = vpop.xlane.xlu0 %1568 }
 0x38e   : > { %7891 = vrcp.f32 %v1569_v49  ;;  %7766 = vrot.lane.b32.xlu1 %v7765_v62, %s8225_s23  ;;  %v7694_v49 = vunpack.i.h.bf16 %v9012_v29  ;;  %v7693_v62 = vunpack.i.l.bf16 %v9012_v29 }
 0x390   : > { %2401 = vrot.lane.b32.xlu0 %v8190_v3, %s8226_s24  ;;  %v9216_v3 = vld [vmem:[#allocation2 + $0xa0] sm:$0xff]  ;;  %v7433_v29 = vpack.c.bf16 %v7694_v49, %v7693_v62 }
 0x391   : > { %v1572_v35 = vpop.xlane.xlu1 %1571  ;;  %v8193_v62 = vld [vmem:[#allocation2 + $0x60] sm:$0xff] }
 0x392   : > { %7893 = vrcp.f32 %v1572_v35 }
 0x394   : > { %v7890_v45 = vpop.eup %7889  ;;  %2403 = vrot.lane.b32.xlu0 %v8191_v6, %s8226_s24  ;;  %v11449_v6 = vmov 0.0  }
 0x395   : > { %v1676_v33 = vmul.f32 %v7890_v45, %v9058_v38  ;;  %v1575_v27 = vpop.xlane.xlu0 %1574  ;;  %v11450_v38 = vmov 0.0|0.0   ;;  %v1507_v45 = vsub.f32 %v9036_v13, %v1479_v34 }
 0x396   : > { %7895 = vrcp.f32 %v1575_v27  ;;  %v7698_v27 = vunpack.i.l.bf16 %v8985_v30 }
 0x397   : > { %6902 = vmatmul.mubr.msk.f32.vlgmr.msra.gmra.mrb[14].mxu0 %vm1395_vm6, %v1676_v33  ;;  %v1562_v49 = vmul.f32 1.442695, %v1507_v45 }
 0x398   : > { %v7892_v58 = vpop.eup %7891  ;;  %2743 = vrot.lane.b32.xlu0 %v9216_v3, %s8225_s23  ;;  %7431 = vmatpush3.bf16.msra.mxu0 %v7430_v39  ;;  %v8192_v39 = vld [vmem:[#allocation2 + $0x58] sm:$0xff] }
 0x399   : > { %v1578_v20 = vpop.xlane.xlu1 %1577  ;;  %6904 = vmatprep.mubr.msk.f32.mxu0 %vm8223_vm2, %v11449_v6  ;;  %7432 = vmatprep.subr.bf16.mxu0 %v11450_v38  ;;  %v1677_v35 = vmul.f32 %v7892_v58, %v9063_v28  ;;  %v7436_v58 = vpack.c.bf16 %v7699_v8, %v7698_v27 }
 0x39a   : > { %7897 = vrcp.f32 %v1578_v20  ;;  %v8194_v20 = vld [vmem:[#allocation2 + $0x68] sm:$0xff] }
 0x39b   : > { %6905 = vmatmul.mubr.msk.f32.gmra.mrb[16].mxu0 %vm1395_vm6, %v1677_v35 }
 0x39c   : > { %v7894_v15 = vpop.eup %7893  ;;  %2562 = vrot.lane.b32.xlu0 %v8192_v39, %s8226_s24  ;;  %7434 = vmatpush3.bf16.msra.mxu0 %v7433_v29 }
 0x39d   : > { %v1581_v33 = vpop.xlane.xlu0 %1580  ;;  %6907 = vmatprep.mubr.msk.f32.mxu0 %vm8223_vm2, %v11449_v6  ;;  %7435 = vmatprep.subr.bf16.mxu0 %v11450_v38  ;;  %v1678_v28 = vmul.f32 %v7894_v15, %v9068_v23  ;;  %v8195_v15 = vld [vmem:[#allocation2 + $0xa8] sm:$0xff] }
 0x39e   : > { %7899 = vrcp.f32 %v1581_v33 }
 0x39f   : > { %6908 = vmatmul.mubr.msk.f32.gmra.mrb[18].mxu0 %vm1395_vm6, %v1678_v28  ;;  %v7704_v28 = vunpack.i.h.bf16 %v8997_v9 }
 0x3a0   : > { %v7896_v30 = vpop.eup %7895  ;;  %2564 = vrot.lane.b32.xlu0 %v8193_v62, %s8226_s24  ;;  %7437 = vmatpush3.bf16.msra.mxu0 %v7436_v58  ;;  %v7703_v58 = vunpack.i.l.bf16 %v8997_v9  ;;  %v7708_v9 = vunpack.i.l.bf16 %v9020_v16 }
 0x3a1   : > { %v1584_v13 = vpop.xlane.xlu1 %1583  ;;  %6910 = vmatprep.mubr.msk.f32.mxu0 %vm8223_vm2, %v11449_v6  ;;  %6969 = vmatprep.subr.mxu0 %v11449_v6  ;;  %v1679_v34 = vmul.f32 %v7896_v30, %v9073_v18  ;;  %v9247_v18 = vld [vmem:[#allocation2 + $0xd8] sm:$0xff]  ;;  %v8196_v30 = vld [vmem:[#allocation2 + $0xb0] sm:$0xff] }
 0x3a2   : > { %7901 = vrcp.f32 %v1584_v13  ;;  %v7709_v13 = vunpack.i.h.bf16 %v9020_v16 }
 0x3a3   : > { %6911 = vmatmul.mubr.msk.f32.gmra.mrb[20].mxu0 %vm1395_vm6, %v1679_v34  ;;  %7903 = vpow2.f32 %v1562_v49  ;;  %v7439_v34 = vpack.c.bf16 %v7704_v28, %v7703_v58 }
 0x3a4   : > { %v7898_v23 = vpop.eup %7897  ;;  %2566 = vrot.lane.b32.xlu0 %v8194_v20, %s8226_s24  ;;  %6970 = vmatpush3.msra.mxu0 %v9016_v14  ;;  %v7713_v20 = vunpack.i.l.bf16 %v9001_v48  ;;  %v7442_v16 = vpack.c.bf16 %v7709_v13, %v7708_v9  ;;  %v9322_v13 = vld [vmem:[#allocation2 + $0xc8] sm:$0xff] }
 0x3a5   : > { %v1587_v35 = vpop.xlane.xlu1 %1586  ;;  %6913 = vmatprep.mubr.msk.f32.mxu0 %vm8223_vm2, %v11449_v6  ;;  %v1680_v29 = vmul.f32 %v7898_v23, %v9078_v42  ;;  %7447 = vmatprep.subr.bf16.mxu0 %v11450_v38  ;;  %v7714_v23 = vunpack.i.h.bf16 %v9001_v48  ;;  %v7758_v48 = vunpack.i.l.bf16 %v9050_v31 }
 0x3a6   : > { %7905 = vrcp.f32 %v1587_v35 }
 0x3a7   : > { %6914 = vmatmul.mubr.msk.f32.gmra.mrb[22].mxu0 %vm1395_vm6, %v1680_v29 }
 0x3a8   : > { %v7900_v8 = vpop.eup %7899  ;;  %2906 = vrot.lane.b32.xlu0 %v9247_v18, %s8225_s23  ;;  %6916 = vmatprep.mubr.msk.f32.mxu0 %vm8223_vm2, %v11449_v6 }
 0x3a9   : > { %v1608_v14 = vpop.xlane.xlu1 %1607  ;;  %v1681_v27 = vmul.f32 %v7900_v8, %v9083_v1  ;;  %v7759_v8 = vunpack.i.h.bf16 %v9050_v31  ;;  %v7719_v31 = vunpack.i.h.bf16 %v9024_v12 }
 0x3aa   : > { %7907 = vrcp.f32 %v1608_v14  ;;  %v7448_v14 = vpack.c.bf16 %v7714_v23, %v7713_v20  ;;  %v8198_v23 = vld [vmem:[#allocation2 + $0x50] sm:$0xff] }
 0x3ab   : > { %6917 = vmatmul.mubr.msk.f32.gmra.mrb[24].mxu0 %vm1395_vm6, %v1681_v27 }
 0x3ac   : > { %v7902_v42 = vpop.eup %7901  ;;  %2880 = vrot.lane.b32.xlu0 %v8195_v15, %s8226_s24  ;;  %6919 = vmatprep.mubr.msk.f32.mxu0 %vm8223_vm2, %v11449_v6  ;;  %v7445_v15 = vpack.c.bf16 %v7759_v8, %v7758_v48  ;;  %v8199_v48 = vld [vmem:[#allocation2 + $0x70] sm:$0xff] }
 0x3ad   : > { %v1590_v45 = vpop.xlane.xlu1 %1589  ;;  %v1682_v39 = vmul.f32 %v7902_v42, %v9088_v2  ;;  %v9260_v33 = vpop.eup %7903 }
 0x3ae   : > { %7909 = vrcp.f32 %v1590_v45  ;;  %v1645_v2 = vsel %vm1395_vm6, %v9260_v33, 0.0  ;;  %v2354_v45 = vld [vmem:[#allocation2 + $0xd0] sm:$0xff] }
 0x3af   : > { %6920 = vmatmul.mubr.msk.f32.gmra.mrb[26].mxu0 %vm1395_vm6, %v1682_v39 }
 0x3b0   : > { %v7906_v1 = vpop.eup %7905  ;;  %2882 = vrot.lane.b32.xlu0 %v8196_v30, %s8226_s24  ;;  %6971 = vmatprep.mubr.msk.f32.mxu0 %vm8223_vm2, %v11449_v6 }
 0x3b1   : > { %v1683_v49 = vmul.f32 %v7906_v1, %v9094_v0  ;;  %v1611_v62 = vpop.xlane.xlu1 %1610 }
 0x3b2   : > { %7911 = vrcp.f32 %v1611_v62  ;;  %1646 = vadd.xlane.f32.xlu1 %v1645_v2  ;;  %v1617_v27 = vpop.xlane.xlu0 %1616  ;;  %v8197_v62 = vld [vmem:[#allocation2 + $0x48] sm:$0xff] }
 0x3b3   : > { %6937 = vmatmul.mubr.msk.f32.vlgmr.msra.gmra.mrb[70].mxu1 %vm1395_vm6, %v1683_v49  ;;  %v7729_v49 = vunpack.i.h.bf16 %v9007_v46 }
 0x3b4   : > { %v7908_v35 = vpop.eup %7907  ;;  %2884 = vrot.lane.b32.xlu0 %v9201_v60, %s8226_s24  ;;  %7440 = vmatpush3.bf16.msra.mxu1 %v7439_v34 }
 0x3b5   : > { %v1690_v0 = vmul.f32 %v7908_v35, %v9100_v26  ;;  %v1593_v29 = vpop.xlane.xlu1 %1592  ;;  %7441 = vmatprep.subr.bf16.mxu1 %v11450_v38  ;;  %6939 = vmatprep.mubr.msk.f32.mxu1 %vm8223_vm2, %v11449_v6 }
 0x3b6   : > { %7913 = vrcp.f32 %v1593_v29 }
 0x3b7   : > { %6972 = vmatmul.mubr.msk.f32.vlgmr.msra.gmra.mrb[28].mxu0 %vm1395_vm6, %v1690_v0 }
 0x3b8   : > { %v7910_v60 = vpop.eup %7909  ;;  %2886 = vrot.lane.b32.xlu0 %v9203_v25, %s8226_s24  ;;  %7443 = vmatpush3.bf16.msra.mxu1 %v7442_v16  ;;  %v7718_v25 = vunpack.i.l.bf16 %v9024_v12 }
 0x3b9   : > { %7450 = vmatpush3.bf16.xpose.msk.msra.mxu0 %vm8657_vm4, %v7448_v14  ;;  %v1614_v26 = vpop.xlane.xlu1 %1613  ;;  %7444 = vmatprep.subr.bf16.mxu1 %v11450_v38  ;;  %v1684_v42 = vmul.f32 %v7910_v60, %v9105_v43  ;;  %v1599_v43 = vpop.xlane.xlu0 %1598  ;;  %v11452_v14 = vmax.f32 %v8537_v17, 0.0  ;;  %v8200_v60 = vld [vmem:[#allocation2 + $0x78] sm:$0xff] }
 0x3ba   : > { %7915 = vrcp.f32 %v1614_v26  ;;  %6974 = vmatprep.mubr.msk.f32.mxu0 %vm8223_vm2, %v11449_v6  ;;  %7451 = vmatprep.subr.bf16.mxu0 %v11450_v38  ;;  %v7452_v1 = vpack.c.bf16 %v7719_v31, %v7718_v25  ;;  %v7723_v25 = vunpack.i.l.bf16 %v9003_v47 }
 0x3bb   : > { %6940 = vmatmul.mubr.msk.f32.gmra.mrb[72].mxu1 %vm1395_vm6, %v1684_v42  ;;  %7917 = vrcp.f32 %v1617_v27 }
 0x3bc   : > { %v7912_v39 = vpop.eup %7911  ;;  %2890 = vrot.lane.b32.xlu0 %v2354_v45, %s8226_s24  ;;  %7446 = vmatpush3.bf16.msra.mxu1 %v7445_v15  ;;  %v8201_v15 = vld [vmem:[#allocation2 + $0x80] sm:$0xff] }
 0x3bd   : > { %v1596_v28 = vpop.xlane.xlu1 %1595  ;;  %7004 = vmatprep.subr.mxu1 %v11449_v6  ;;  %v1691_v58 = vmul.f32 %v7912_v39, %v9111_v32  ;;  %6942 = vmatprep.mubr.msk.f32.mxu1 %vm8223_vm2, %v11449_v6  ;;  %v7743_v39 = vunpack.i.l.bf16 %v9018_v36 }
 0x3be   : > { %7919 = vrcp.f32 %v1596_v28 }
 0x3bf   : > { %6975 = vmatmul.mubr.msk.f32.gmra.mrb[30].mxu0 %vm1395_vm6, %v1691_v58  ;;  %7921 = vrcp.f32 %v1599_v43  ;;  %v8202_v43 = vld [vmem:[#allocation2 + $0x88] sm:$0xff] }
 0x3c0   : > { %v7914_v12 = vpop.eup %7913  ;;  %7776 = vrot.lane.b32.xlu0 %v8392_v55, %s8227_s25  ;;  %7005 = vmatpush3.msra.mxu1 %v9052_v61  ;;  %v7728_v55 = vunpack.i.l.bf16 %v9007_v46 }
 0x3c1   : > { %7454 = vmatpush3.bf16.xpose.msk.msra.mxu0 %vm8657_vm4, %v7452_v1  ;;  %v1620_v30 = vpop.xlane.xlu1 %1619  ;;  %v1685_v32 = vmul.f32 %v7914_v12, %v9120_v41  ;;  %6977 = vmatprep.mubr.msk.f32.mxu0 %vm8223_vm2, %v11449_v6  ;;  %v11453_v12 = vld [vmem:[#allocation11_spill] sm:$0xff] }
 0x3c2   : > { %7923 = vrcp.f32 %v1620_v30  ;;  %7455 = vmatprep.subr.bf16.mxu0 %v11450_v38  ;;  %7459 = vmatprep.subr.bf16.mxu1 %v11450_v38  ;;  %v7456_v34 = vpack.c.bf16 %v7729_v49, %v7728_v55  ;;  %v7734_v30 = vunpack.i.h.bf16 %v11453_v12 }
 0x3c3   : > { %2558 = vrot.lane.b32.xlu1 %v8197_v62, %s8226_s24  ;;  %6943 = vmatmul.mubr.msk.f32.gmra.mrb[74].mxu1 %vm1395_vm6, %v1685_v32  ;;  %v7733_v32 = vunpack.i.l.bf16 %v11453_v12 }
 0x3c4   : > { %v7916_v61 = vpop.eup %7915  ;;  %7786 = vrot.lane.b32.xlu0 %v8426_v10, %s8227_s25  ;;  %6945 = vmatprep.mubr.msk.f32.mxu1 %vm8223_vm2, %v11449_v6  ;;  %v11451_v10 = vmax.f32 %v8429_v11, 0.0 }
 0x3c5   : > { %v1602_v41 = vpop.xlane.xlu1 %1601  ;;  %v1692_v2 = vmul.f32 %v7916_v61, %v9130_v7  ;;  %v7918_v46 = vpop.eup %7917  ;;  %v7770_v7 = vpack.i.bf16 %v2354_v45, %v9322_v13  ;;  %v7744_v45 = vunpack.i.h.bf16 %v9018_v36 }
 0x3c6   : > { %7925 = vrcp.f32 %v1602_v41  ;;  %v1605_v9 = vpop.xlane.xlu0 %1604  ;;  %v1693_v16 = vmul.f32 %v7918_v46, %v9114_v52  ;;  %v7464_v41 = vpack.c.bf16 %v7734_v30, %v7733_v32  ;;  %v11456_v46 = vld [vmem:[#allocation15_spill] sm:$0xff] }
 0x3c7   : > { %2560 = vrot.lane.b32.xlu1 %v8198_v23, %s8226_s24  ;;  %6978 = vmatmul.mubr.msk.f32.gmra.mrb[32].mxu0 %vm1395_vm6, %v1692_v2  ;;  %7927 = vrcp.f32 %v1605_v9  ;;  %v7472_v1 = vpack.c.bf16 %v7744_v45, %v7743_v39  ;;  %v11458_v23 = vld [vmem:[#allocation12_spill] sm:$0xff] }
 0x3c8   : > { %v7920_v20 = vpop.eup %7919  ;;  %3391 = vrot.lane.b32.xlu0 %v11451_v10, %s8227_s25  ;;  %6980 = vmatprep.mubr.msk.f32.mxu0 %vm8223_vm2, %v11449_v6 }
 0x3c9   : > { %7458 = vmatpush3.bf16.xpose.msk.msra.mxu0 %vm8657_vm4, %v7456_v34  ;;  %v1623_v35 = vpop.xlane.xlu1 %1622  ;;  %v1686_v0 = vmul.f32 %v7920_v20, %v9136_v59  ;;  %v7922_v29 = vpop.eup %7921  ;;  %v7739_v20 = vunpack.i.h.bf16 %v11458_v23 }
 0x3ca   : > { %7929 = vrcp.f32 %v1623_v35  ;;  %7039 = vmatprep.subr.mxu0 %v11449_v6  ;;  %v1687_v52 = vmul.f32 %v7922_v29, %v9123_v22  ;;  %v1635_v17 = vpop.xlane.xlu0 %1634  ;;  %v11459_v35 = vld [vmem:[#allocation22_spill] sm:$0xff] }
 0x3cb   : > { %7771 = vrot.lane.b32.xlu1 %v7770_v7, %s8225_s23  ;;  %6946 = vmatmul.mubr.msk.f32.gmra.mrb[76].mxu1 %vm1395_vm6, %v1686_v0 }
 0x3cc   : > { %v7924_v11 = vpop.eup %7923  ;;  %7796 = vrot.lane.b32.xlu0 %v8489_v40, %s8227_s25  ;;  %6981 = vmatmul.mubr.msk.f32.gmra.mrb[34].mxu0 %vm1395_vm6, %v1693_v16 }
 0x3cd   : > { %v1626_v8 = vpop.xlane.xlu1 %1625  ;;  %6948 = vmatprep.mubr.msk.f32.mxu1 %vm8223_vm2, %v11449_v6  ;;  %6983 = vmatprep.mubr.msk.f32.mxu0 %vm8223_vm2, %v11449_v6  ;;  %v1694_v59 = vmul.f32 %v7924_v11, %v9141_v21  ;;  %v11462_v11 = vld [vmem:[#allocation16_spill] sm:$0xff] }
 0x3ce   : > { %7931 = vrcp.f32 %v1626_v8  ;;  %v11463_v8 = vld [vmem:[#allocation7_spill] sm:$0xff] }
 0x3cf   : > { %2717 = vrot.lane.b32.xlu1 %v8199_v48, %s8226_s24  ;;  %6949 = vmatmul.mubr.msk.f32.gmra.mrb[78].mxu1 %vm1395_vm6, %v1687_v52  ;;  %v2374_v52 = vmax.f32 %v9179_v19, 0.0  ;;  %v11464_v48 = vld [vmem:[#allocation8_spill] sm:$0xff] }
 0x3d0   : > { %v7926_v40 = vpop.eup %7925  ;;  %3540 = vrot.lane.b32.xlu0 %v11452_v14, %s8227_s25  ;;  %6984 = vmatmul.mubr.msk.f32.gmra.mrb[36].mxu0 %vm1395_vm6, %v1694_v59  ;;  %v2375_v59 = vmax.f32 %v9181_v57, 0.0 }
 0x3d1   : > { %7040 = vmatpush3.xpose.msk.msra.mxu0 %vm789_vm3, %v9038_v50  ;;  %v1629_v27 = vpop.xlane.xlu1 %1628  ;;  %6951 = vmatprep.mubr.msk.f32.mxu1 %vm8223_vm2, %v11449_v6  ;;  %v1688_v22 = vmul.f32 %v7926_v40, %v9147_v53  ;;  %v7928_v21 = vpop.eup %7927 }
 0x3d2   : > { %7933 = vrcp.f32 %v1629_v27  ;;  %6986 = vmatprep.mubr.msk.f32.mxu0 %vm8223_vm2, %v11449_v6  ;;  %7471 = vmatprep.subr.bf16.mxu0 %v11450_v38  ;;  %v1689_v26 = vmul.f32 %v7928_v21, %v9149_v4  ;;  %v7815_v40 = vpack.i.bf16 %v2375_v59, %v2374_v52 }
 0x3d3   : > { %2719 = vrot.lane.b32.xlu1 %v8200_v60, %s8226_s24  ;;  %6952 = vmatmul.mubr.msk.f32.gmra.mrb[80].mxu1 %vm1395_vm6, %v1688_v22  ;;  %v11465_v60 = vld [vmem:[#allocation21_spill] sm:$0xff] }
 0x3d4   : > { %v7930_v50 = vpop.eup %7929  ;;  %7811 = vrot.lane.b32.xlu0 %v8546_v24, %s8227_s25  ;;  %6954 = vmatprep.mubr.msk.f32.mxu1 %vm8223_vm2, %v11449_v6  ;;  %v1638_v24 = vpop.xlane.xlu0 %1637 }
 0x3d5   : > { %v1632_v53 = vpop.xlane.xlu1 %1631  ;;  %v1695_v42 = vmul.f32 %v7930_v50, %v9153_v54  ;;  %v7724_v54 = vunpack.i.h.bf16 %v9003_v47 }
 0x3d6   : > { %7935 = vrcp.f32 %v1632_v53 }
 0x3d7   : > { %2721 = vrot.lane.b32.xlu1 %v8201_v15, %s8226_s24  ;;  %6955 = vmatmul.mubr.msk.f32.gmra.mrb[82].mxu1 %vm1395_vm6, %v1689_v26  ;;  %7937 = vrcp.f32 %v1635_v17 }
 0x3d8   : > { %v7932_v31 = vpop.eup %7931  ;;  %6987 = vmatmul.mubr.msk.f32.gmra.mrb[38].mxu0 %vm1395_vm6, %v1695_v42  ;;  %7006 = vmatprep.mubr.msk.f32.mxu1 %vm8223_vm2, %v11449_v6  ;;  %7939 = vrcp.f32 %v1638_v24  ;;  %v7762_v9 = vpop.permute.xlu0 %7761  ;;  %v11466_v42 = vld [vmem:[#allocation20_spill] sm:$0xff] }
 0x3d9   : > { %6989 = vmatprep.mubr.msk.f32.mxu0 %vm8223_vm2, %v11449_v6  ;;  %v1696_v4 = vmul.f32 %v7932_v31, %v9163_v44  ;;  %v7460_v44 = vpack.c.bf16 %v7724_v54, %v7723_v25  ;;  %v7764_v10 = vunpack.i.h.bf16 %v7762_v9  ;;  %v7763_v7 = vunpack.i.l.bf16 %v7762_v9  ;;  %v2400_v16 = vpop.permute.xlu1 %2399 }
 0x3db   : > { %2723 = vrot.lane.b32.xlu1 %v8202_v43, %s8226_s24  ;;  %v7480_v29 = vpack.c.bf16 %v7764_v10, %v7763_v7 }
 0x3dc   : > { %v7934_v28 = vpop.eup %7933  ;;  %6990 = vmatmul.mubr.msk.f32.gmra.mrb[40].mxu0 %vm1395_vm6, %v1696_v4 }
 0x3dd   : > { %v1697_v58 = vmul.f32 %v7934_v28, %v9171_v63  ;;  %7041 = vmatprep.mubr.msk.f32.mxu0 %vm8223_vm2, %v11449_v6 }
 0x3df   : > { %2725 = vrot.lane.b32.xlu1 %v9179_v19, %s8226_s24  ;;  %7007 = vmatmul.mubr.msk.f32.vlgmr.msra.gmra.mrb[84].mxu1 %vm1395_vm6, %v1697_v58 }
 0x3e0   : > { %v7936_v47 = vpop.eup %7935  ;;  %7042 = vmatmul.mubr.msk.f32.vlgmr.msra.gmra.mrb[42].mxu0 %vm789_vm3, %v9022_v56  ;;  %7462 = vmatpush3.bf16.xpose.msk.msra.mxu1 %vm8657_vm4, %v7460_v44  ;;  %v11454_v56 = vld [vmem:[#allocation14_spill] sm:$0xff] }
 0x3e1   : > { %7474 = vmatpush3.bf16.xpose.msk.msra.mxu0 %vm8657_vm4, %v7472_v1  ;;  %7009 = vmatprep.mubr.msk.f32.mxu1 %vm8223_vm2, %v11449_v6  ;;  %v1698_v36 = vmul.f32 %v7936_v47, %v9175_v37  ;;  %v7938_v63 = vpop.eup %7937  ;;  %v7749_v49 = vunpack.i.h.bf16 %v11454_v56  ;;  %v7748_v55 = vunpack.i.l.bf16 %v11454_v56  ;;  %v11455_v37 = vld [vmem:[#allocation13_spill] sm:$0xff] }
 0x3e2   : > { %7044 = vmatprep.mubr.msk.f32.mxu0 %vm8223_vm2, %v11449_v6  ;;  %7463 = vmatprep.subr.bf16.mxu1 %v11450_v38  ;;  %v1699_v62 = vmul.f32 %v7938_v63, %v9157_v51  ;;  %v7940_v61 = vpop.eup %7939  ;;  %v11457_v51 = vld [vmem:[#allocation18_spill] sm:$0xff]  ;;  %v11467_v56 = vld [vmem:[#allocation17_spill] sm:$0xff] }
 0x3e3   : > { %2727 = vrot.lane.b32.xlu1 %v9181_v57, %s8226_s24  ;;  %7010 = vmatmul.mubr.msk.f32.gmra.mrb[86].mxu1 %vm1395_vm6, %v1698_v36  ;;  %v7476_v2 = vpack.c.bf16 %v7749_v49, %v7748_v55  ;;  %v1700_v34 = vmul.f32 %v7940_v61, %v11457_v51  ;;  %v7754_v49 = vunpack.i.h.bf16 %v11467_v56  ;;  %v7753_v55 = vunpack.i.l.bf16 %v11467_v56 }
 0x3e4   : > { %7045 = vmatmul.mubr.msk.f32.gmra.mrb[44].mxu0 %vm789_vm3, %v11455_v37  ;;  %7012 = vmatprep.mubr.msk.f32.mxu1 %vm8223_vm2, %v11449_v6 }
 0x3e5   : > { %7047 = vmatprep.mubr.msk.f32.mxu0 %vm8223_vm2, %v11449_v6  ;;  %7475 = vmatprep.subr.bf16.mxu0 %v11450_v38  ;;  %v7484_v61 = vpack.c.bf16 %v7754_v49, %v7753_v55 }
 0x3e7   : > { %2729 = vrot.lane.b32.xlu1 %v9216_v3, %s8226_s24  ;;  %7013 = vmatmul.mubr.msk.f32.gmra.mrb[88].mxu1 %vm1395_vm6, %v1699_v62  ;;  %v7738_v3 = vunpack.i.l.bf16 %v11458_v23 }
 0x3e8   : > { %7048 = vmatmul.mubr.msk.f32.gmra.mrb[46].mxu0 %vm789_vm3, %v11456_v46  ;;  %7466 = vmatpush3.bf16.xpose.msk.msra.mxu1 %vm8657_vm4, %v7464_v41  ;;  %v11468_v41 = vld [vmem:[#allocation19_spill] sm:$0xff] }
 0x3e9   : > { %7478 = vmatpush3.bf16.xpose.msk.msra.mxu0 %vm8657_vm4, %v7476_v2  ;;  %7015 = vmatprep.mubr.msk.f32.mxu1 %vm8223_vm2, %v11449_v6  ;;  %v7468_v0 = vpack.c.bf16 %v7739_v20, %v7738_v3 }
 0x3ea   : > { %7050 = vmatprep.mubr.msk.f32.mxu0 %vm8223_vm2, %v11449_v6  ;;  %7467 = vmatprep.subr.bf16.mxu1 %v11450_v38 }
 0x3eb   : > { %2888 = vrot.lane.b32.xlu1 %v9322_v13, %s8226_s24  ;;  %7016 = vmatmul.mubr.msk.f32.gmra.mrb[90].mxu1 %vm1395_vm6, %v1700_v34  ;;  %v11460_v13 = vld [vmem:[#allocation5_spill] sm:$0xff] }
 0x3ec   : > { %7051 = vmatmul.mubr.msk.f32.gmra.mrb[48].mxu0 %vm789_vm3, %v11459_v35  ;;  %7479 = vmatprep.subr.bf16.mxu0 %v11450_v38 }
 0x3ed   : > { %7053 = vmatprep.mubr.msk.f32.mxu0 %vm8223_vm2, %v11449_v6  ;;  %7018 = vmatprep.mubr.msk.f32.mxu1 %vm8223_vm2, %v11449_v6 }
 0x3ef   : > { %2892 = vrot.lane.b32.xlu1 %v9247_v18, %s8226_s24  ;;  %v11461_v18 = vld [vmem:[#allocation6_spill] sm:$0xff]  ;;  %s11292_s24 = scalar_lea.vmem %s11399_s1, %s6411_s21 }
 0x3f0   : > { %7054 = vmatmul.mubr.msk.f32.gmra.mrb[50].mxu0 %vm789_vm3, %v2400_v16  ;;  %7470 = vmatpush3.bf16.xpose.msk.msra.mxu1 %vm8657_vm4, %v7468_v0 }
 0x3f1   : > { %7482 = vmatpush3.bf16.xpose.msk.msra.mxu0 %vm8657_vm4, %v7480_v29  ;;  %7074 = vmatprep.subr.mxu1 %v11449_v6 }
 0x3f2   : > { %7056 = vmatprep.mubr.msk.f32.mxu0 %vm8223_vm2, %v11449_v6  ;;  %7109 = vmatprep.subr.mxu0 %v11449_v6 }
 0x3f3   : > { %7781 = vrot.lane.b32.xlu1 %v11460_v13, %s8227_s25 }
 0x3f7   : > { %7791 = vrot.lane.b32.xlu1 %v11461_v18, %s8227_s25 }
 0x3f8   : > { %7075 = vmatpush3.xpose.msk.msra.mxu1 %vm789_vm3, %v11462_v11 }
 0x3f9   : > { %7483 = vmatprep.subr.bf16.mxu1 %v11450_v38 }
 0x3fb   : > { %7801 = vrot.lane.b32.xlu1 %v11463_v8, %s8227_s25 }
 0x3ff   : > { %7806 = vrot.lane.b32.xlu1 %v11464_v48, %s8227_s25 }
 0x403   : > { %v1644_v14 = vpop.xlane.xlu0 %1643  ;;  %7816 = vrot.lane.b32.xlu1 %v7815_v40, %s8227_s25 }
 0x407   : > { %v2557_v27 = vpop.permute.xlu0 %2556 }
 0x40a   : > { %v1641_v22 = vpop.xlane.xlu1 %1640 }
 0x40b   : > { %7941 = vrcp.f32 %v1641_v22  ;;  %v2402_v21 = vpop.permute.xlu0 %2401 }
 0x40c   : > { %7057 = vmatmul.mubr.msk.f32.gmra.mrb[52].mxu0 %vm789_vm3, %v2402_v21  ;;  %7943 = vrcp.f32 %v1644_v14 }
 0x40d   : > { %7059 = vmatprep.mubr.msk.f32.mxu0 %vm8223_vm2, %v11449_v6 }
 0x40e   : > { %v7767_v39 = vpop.permute.xlu1 %7766 }
 0x40f   : > { %v2404_v19 = vpop.permute.xlu0 %2403  ;;  %v7769_v2 = vunpack.i.h.bf16 %v7767_v39  ;;  %v7768_v9 = vunpack.i.l.bf16 %v7767_v39 }
 0x410   : > { %7060 = vmatmul.mubr.msk.f32.gmra.mrb[54].mxu0 %vm789_vm3, %v2404_v19 }
 0x411   : > { %7111 = vmatprep.mubr.msk.f32.mxu0 %vm8223_vm2, %v11449_v6  ;;  %v7488_v51 = vpack.c.bf16 %v7769_v2, %v7768_v9 }
 0x413   : > { %v2744_v57 = vpop.permute.xlu0 %2743 }
 0x414   : > { %7110 = vmatpush3.xpose.msk.msra.mxu0 %vm789_vm3, %v2744_v57 }
 0x415   : > { %v7942_v17 = vpop.eup %7941  ;;  %7495 = vmatprep.subr.bf16.mxu0 %v11450_v38 }
 0x416   : > { %v1701_v50 = vmul.f32 %v7942_v17, %v11465_v60  ;;  %v7944_v53 = vpop.eup %7943 }
 0x417   : > { %v9478_v26 = vpop.permute.xlu0 %2562  ;;  %v1702_v15 = vmul.f32 %v7944_v53, %v11466_v42 }
 0x418   : > { %7019 = vmatmul.mubr.msk.f32.gmra.mrb[92].mxu1 %vm1395_vm6, %v1701_v50 }
 0x419   : > { %7021 = vmatprep.mubr.msk.f32.mxu1 %vm8223_vm2, %v11449_v6 }
 0x41b   : > { %v9484_v31 = vpop.permute.xlu0 %2564 }
 0x41c   : > { %7022 = vmatmul.mubr.msk.f32.gmra.mrb[94].mxu1 %vm1395_vm6, %v1702_v15 }
 0x41d   : > { %7024 = vmatprep.mubr.msk.f32.mxu1 %vm8223_vm2, %v11449_v6 }
 0x41f   : > { %v9489_v24 = vpop.permute.xlu0 %2566 }
 0x423   : > { %v9491_v4 = vpop.permute.xlu0 %2906 }
 0x427   : > { %v9493_v54 = vpop.permute.xlu0 %2880 }
 0x42b   : > { %v9495_v25 = vpop.permute.xlu0 %2882 }
 0x42f   : > { %v9497_v45 = vpop.permute.xlu0 %2884 }
 0x433   : > { %v9499_v43 = vpop.permute.xlu0 %2886 }
 0x437   : > { %v9501_v58 = vpop.permute.xlu0 %2890 }
 0x43b   : > { %v7777_v47 = vpop.permute.xlu0 %7776 }
 0x43c   : > { %v7779_v63 = vunpack.i.h.bf16 %v7777_v47  ;;  %v7778_v12 = vunpack.i.l.bf16 %v7777_v47 }
 0x43e   : > { %v7496_v37 = vpack.c.bf16 %v7779_v63, %v7778_v12 }
 0x43f   : > { %v1647_v28 = vpop.xlane.xlu1 %1646  ;;  %v7787_v5 = vpop.permute.xlu0 %7786 }
 0x440   : > { %7945 = vrcp.f32 %v1647_v28  ;;  %v7788_v22 = vunpack.i.l.bf16 %v7787_v5 }
 0x443   : > { %v2559_v44 = vpop.permute.xlu1 %2558  ;;  %v3392_v8 = vpop.permute.xlu0 %3391 }
 0x447   : > { %v2561_v1 = vpop.permute.xlu1 %2560  ;;  %v7797_v21 = vpop.permute.xlu0 %7796 }
 0x448   : > { %v7799_v42 = vunpack.i.h.bf16 %v7797_v21  ;;  %v7798_v15 = vunpack.i.l.bf16 %v7797_v21 }
 0x44a   : > { %v7946_v36 = vpop.eup %7945 }
 0x44b   : > { %v7772_v30 = vpop.permute.xlu1 %7771  ;;  %v1703_v32 = vmul.f32 %v7946_v36, %v9260_v33 }
 0x44c   : > { %v7774_v23 = vunpack.i.h.bf16 %v7772_v30  ;;  %v7773_v20 = vunpack.i.l.bf16 %v7772_v30 }
 0x44d   : > { %7025 = vmatmul.mubr.msk.f32.gmra.mrb[96].mxu1 %vm1395_vm6, %v1703_v32 }
 0x44e   : > { %7076 = vmatprep.mubr.msk.f32.mxu1 %vm8223_vm2, %v11449_v6  ;;  %v7492_v10 = vpack.c.bf16 %v7774_v23, %v7773_v20 }
 0x44f   : > { %v2718_v62 = vpop.permute.xlu1 %2717 }
 0x450   : > { %7112 = vmatmul.mubr.msk.f32.vlgmr.msra.gmra.mrb[56].mxu0 %vm789_vm3, %v2718_v62 }
 0x451   : > { %7497 = vmatpush3.bf16.msra.mxu0 %v7496_v37  ;;  %7077 = vmatmul.mubr.msk.f32.vlgmr.msra.gmra.mrb[98].mxu1 %vm789_vm3, %v11468_v41 }
 0x452   : > { %7486 = vmatpush3.bf16.xpose.msk.msra.mxu1 %vm8657_vm4, %v7484_v61  ;;  %7114 = vmatprep.mubr.msk.f32.mxu0 %vm8223_vm2, %v11449_v6 }
 0x453   : > { %v2720_v33 = vpop.permute.xlu1 %2719  ;;  %7079 = vmatprep.mubr.msk.f32.mxu1 %vm8223_vm2, %v11449_v6  ;;  %7487 = vmatprep.subr.bf16.mxu1 %v11450_v38 }
 0x454   : > { %7115 = vmatmul.mubr.msk.f32.gmra.mrb[58].mxu0 %vm789_vm3, %v2720_v33  ;;  %7498 = vmatprep.subr.bf16.mxu0 %v11450_v38 }
 0x455   : > { %7080 = vmatmul.mubr.msk.f32.gmra.mrb[100].mxu1 %vm789_vm3, %v2557_v27  ;;  %7117 = vmatprep.mubr.msk.f32.mxu0 %vm8223_vm2, %v11449_v6  ;;  %v7789_v27 = vunpack.i.h.bf16 %v7787_v5 }
 0x456   : > { %7082 = vmatprep.mubr.msk.f32.mxu1 %vm8223_vm2, %v11449_v6 }
 0x457   : > { %v2722_v46 = vpop.permute.xlu1 %2721 }
 0x458   : > { %7118 = vmatmul.mubr.msk.f32.gmra.mrb[60].mxu0 %vm789_vm3, %v2722_v46 }
 0x459   : > { %7083 = vmatmul.mubr.msk.f32.gmra.mrb[102].mxu1 %vm789_vm3, %v2559_v44  ;;  %7120 = vmatprep.mubr.msk.f32.mxu0 %vm8223_vm2, %v11449_v6 }
 0x45a   : > { %7490 = vmatpush3.bf16.xpose.msk.msra.mxu1 %vm8657_vm4, %v7488_v51  ;;  %7085 = vmatprep.mubr.msk.f32.mxu1 %vm8223_vm2, %v11449_v6 }
 0x45b   : > { %v2724_v34 = vpop.permute.xlu1 %2723  ;;  %7491 = vmatprep.subr.bf16.mxu1 %v11450_v38 }
 0x45c   : > { %7121 = vmatmul.mubr.msk.f32.gmra.mrb[62].mxu0 %vm789_vm3, %v2724_v34 }
 0x45d   : > { %7086 = vmatmul.mubr.msk.f32.gmra.mrb[104].mxu1 %vm789_vm3, %v2561_v1  ;;  %7123 = vmatprep.mubr.msk.f32.mxu0 %vm8223_vm2, %v11449_v6 }
 0x45e   : > { %7088 = vmatprep.mubr.msk.f32.mxu1 %vm8223_vm2, %v11449_v6 }
 0x45f   : > { %v2726_v3 = vpop.permute.xlu1 %2725 }
 0x460   : > { %7124 = vmatmul.mubr.msk.f32.gmra.mrb[64].mxu0 %vm789_vm3, %v2726_v3 }
 0x461   : > { %7089 = vmatmul.mubr.msk.f32.gmra.mrb[106].mxu1 %vm789_vm3, %v9478_v26  ;;  %7126 = vmatprep.mubr.msk.f32.mxu0 %vm8223_vm2, %v11449_v6  ;;  %v7502_v26 = vpack.c.bf16 %v7789_v27, %v7788_v22 }
 0x462   : > { %7494 = vmatpush3.bf16.xpose.msk.msra.mxu1 %vm8657_vm4, %v7492_v10  ;;  %7091 = vmatprep.mubr.msk.f32.mxu1 %vm8223_vm2, %v11449_v6 }
 0x463   : > { %v2728_v7 = vpop.permute.xlu1 %2727  ;;  %7144 = vmatprep.subr.mxu1 %v11449_v6 }
 0x464   : > { %7127 = vmatmul.mubr.msk.f32.gmra.mrb[66].mxu0 %vm789_vm3, %v2728_v7 }
 0x465   : > { %7092 = vmatmul.mubr.msk.f32.gmra.mrb[108].mxu1 %vm789_vm3, %v9484_v31  ;;  %7129 = vmatprep.mubr.msk.f32.mxu0 %vm8223_vm2, %v11449_v6 }
 0x466   : > { %7094 = vmatprep.mubr.msk.f32.mxu1 %vm8223_vm2, %v11449_v6 }
 0x467   : > { %v2730_v35 = vpop.permute.xlu1 %2729 }
 0x468   : > { %7130 = vmatmul.mubr.msk.f32.gmra.mrb[68].mxu0 %vm789_vm3, %v2730_v35 }
 0x469   : > { %7095 = vmatmul.mubr.msk.f32.gmra.mrb[110].mxu1 %vm789_vm3, %v9489_v24  ;;  %7181 = vmatprep.mubr.msk.f32.mxu0 %vm8223_vm2, %v11449_v6 }
 0x46a   : > { %7145 = vmatpush3.xpose.msk.msra.mxu1 %vm789_vm3, %v9491_v4  ;;  %v1819_v0 = vpop.f32.mrb[14].mxu0  ;;  %7146 = vmatprep.mubr.msk.f32.mxu1 %vm8223_vm2, %v11449_v6 }
 0x46b   : > { %2300 = vst.msk [vmem:[#allocation3] sm:$0xff] %vm789_vm3, %v1819_v0  ;;  %v2889_v29 = vpop.permute.xlu1 %2888  ;;  %v6903_v16 = vpop.f32.mrb[15].mxu0  ;;  %7504 = vmatprep.subr.bf16.mxu1 %v11450_v38 }
 0x46d   : > { %7147 = vmatmul.mubr.msk.f32.vlgmr.msra.gmra.mrb[112].mxu1 %vm789_vm3, %v9493_v54 }
 0x46e   : > { %v1824_v13 = vpop.f32.mrb[16].mxu0  ;;  %7149 = vmatprep.mubr.msk.f32.mxu1 %vm8223_vm2, %v11449_v6 }
 0x46f   : > { %2301 = vst.msk [vmem:[#allocation3 + $0x8] sm:$0xff] %vm789_vm3, %v1824_v13  ;;  %v2893_v18 = vpop.permute.xlu1 %2892  ;;  %v6906_v11 = vpop.f32.mrb[17].mxu0 }
 0x471   : > { %7150 = vmatmul.mubr.msk.f32.gmra.mrb[114].mxu1 %vm789_vm3, %v9495_v25  ;;  %v7508_v25 = vpack.c.bf16 %v7799_v42, %v7798_v15 }
 0x472   : > { %v1829_v52 = vpop.f32.mrb[18].mxu0  ;;  %7152 = vmatprep.mubr.msk.f32.mxu1 %vm8223_vm2, %v11449_v6 }
 0x473   : > { %2302 = vst.msk [vmem:[#allocation3 + $0x10] sm:$0xff] %vm789_vm3, %v1829_v52  ;;  %v7782_v59 = vpop.permute.xlu1 %7781  ;;  %v6909_v48 = vpop.f32.mrb[19].mxu0 }
 0x474   : > { %v7784_v40 = vunpack.i.h.bf16 %v7782_v59  ;;  %v7783_v14 = vunpack.i.l.bf16 %v7782_v59 }
 0x475   : > { %7153 = vmatmul.mubr.msk.f32.gmra.mrb[116].mxu1 %vm789_vm3, %v9497_v45 }
 0x476   : > { %v7499_v19 = vpack.c.bf16 %v7784_v40, %v7783_v14  ;;  %v1834_v57 = vpop.f32.mrb[20].mxu0  ;;  %7155 = vmatprep.mubr.msk.f32.mxu1 %vm8223_vm2, %v11449_v6 }
 0x477   : > { %2303 = vst.msk [vmem:[#allocation3 + $0x18] sm:$0xff] %vm789_vm3, %v1834_v57  ;;  %v7792_v17 = vpop.permute.xlu1 %7791  ;;  %v6912_v60 = vpop.f32.mrb[21].mxu0 }
 0x478   : > { %v7794_v50 = vunpack.i.h.bf16 %v7792_v17  ;;  %v7793_v53 = vunpack.i.l.bf16 %v7792_v17  ;;  %7500 = vmatpush3.bf16.msra.mxu0 %v7499_v19 }
 0x479   : > { %7156 = vmatmul.mubr.msk.f32.gmra.mrb[118].mxu1 %vm789_vm3, %v9499_v43  ;;  %7501 = vmatprep.subr.bf16.mxu0 %v11450_v38 }
 0x47a   : > { %v7505_v31 = vpack.c.bf16 %v7794_v50, %v7793_v53  ;;  %v1839_v24 = vpop.f32.mrb[22].mxu0  ;;  %7158 = vmatprep.mubr.msk.f32.mxu1 %vm8223_vm2, %v11449_v6 }
 0x47b   : > { %2304 = vst.msk [vmem:[#allocation3 + $0x20] sm:$0xff] %vm789_vm3, %v1839_v24  ;;  %v7802_v4 = vpop.permute.xlu1 %7801  ;;  %v6915_v54 = vpop.f32.mrb[23].mxu0 }
 0x47c   : > { %7503 = vmatpush3.bf16.msra.mxu0 %v7502_v26  ;;  %7506 = vmatpush3.bf16.msra.mxu1 %v7505_v31  ;;  %v7804_v45 = vunpack.i.h.bf16 %v7802_v4  ;;  %v7803_v39 = vunpack.i.l.bf16 %v7802_v4 }
 0x47d   : > { %7159 = vmatmul.mubr.msk.f32.gmra.mrb[120].mxu1 %vm789_vm3, %v2889_v29  ;;  %7179 = vmatprep.subr.mxu0 %v11449_v6 }
 0x47e   : > { %v1844_v43 = vpop.f32.mrb[24].mxu0  ;;  %7507 = vmatprep.subr.bf16.mxu1 %v11450_v38  ;;  %7161 = vmatprep.mubr.msk.f32.mxu1 %vm8223_vm2, %v11449_v6  ;;  %v7511_v44 = vpack.c.bf16 %v7804_v45, %v7803_v39 }
 0x47f   : > { %2305 = vst.msk [vmem:[#allocation3 + $0x28] sm:$0xff] %vm789_vm3, %v1844_v43  ;;  %v6918_v28 = vpop.f32.mrb[25].mxu0 }
 0x480   : > { %7180 = vmatpush3.msra.mxu0 %v3392_v8  ;;  %7509 = vmatpush3.bf16.msra.mxu1 %v7508_v25 }
 0x481   : > { %7162 = vmatmul.mubr.msk.f32.gmra.mrb[122].mxu1 %vm789_vm3, %v9501_v58  ;;  %7510 = vmatprep.subr.bf16.mxu1 %v11450_v38  ;;  %v3541_v58 = vpop.permute.xlu0 %3540 }
 0x482   : > { %v1849_v1 = vpop.f32.mrb[26].mxu0  ;;  %7164 = vmatprep.mubr.msk.f32.mxu1 %vm8223_vm2, %v11449_v6  ;;  %7513 = vmatprep.subr.bf16.mxu0 %v11450_v38 }
 0x483   : > { %2306 = vst.msk [vmem:[#allocation3 + $0x30] sm:$0xff] %vm789_vm3, %v1849_v1  ;;  %v6921_v47 = vpop.f32.mrb[27].mxu0 }
 0x484   : > { %7512 = vmatpush3.bf16.msra.mxu1 %v7511_v44 }
 0x485   : > { %7165 = vmatmul.mubr.msk.f32.gmra.mrb[124].mxu1 %vm789_vm3, %v2893_v18  ;;  %7214 = vmatprep.subr.mxu1 %v11449_v6 }
 0x486   : > { %v1968_v36 = vpop.f32.mrb[70].mxu1  ;;  %7216 = vmatprep.mubr.msk.f32.mxu1 %vm8223_vm2, %v11449_v6 }
 0x487   : > { %2307 = vst.msk [vmem:[#allocation3 + $0x38] sm:$0xff] %vm789_vm3, %v1968_v36  ;;  %v6938_v63 = vpop.f32.mrb[71].mxu1 }
 0x488   : > { %7215 = vmatpush3.msra.mxu1 %v3541_v58 }
 0x489   : > { %7522 = vmatprep.subr.bf16.mxu1 %v11450_v38 }
 0x48a   : > { %v2117_v12 = vpop.f32.mrb[28].mxu0 }
 0x48b   : > { %2314 = vst.msk [vmem:[#allocation3 + $0x70] sm:$0xff] %vm789_vm3, %v2117_v12  ;;  %v6973_v30 = vpop.f32.mrb[29].mxu0 }
 0x48e   : > { %v1973_v32 = vpop.f32.mrb[72].mxu1 }
 0x48f   : > { %2308 = vst.msk [vmem:[#allocation3 + $0x40] sm:$0xff] %vm789_vm3, %v1973_v32  ;;  %v6941_v56 = vpop.f32.mrb[73].mxu1 }
 0x492   : > { %v2122_v49 = vpop.f32.mrb[30].mxu0 }
 0x493   : > { %2315 = vst.msk [vmem:[#allocation3 + $0x78] sm:$0xff] %vm789_vm3, %v2122_v49  ;;  %v6976_v55 = vpop.f32.mrb[31].mxu0 }
 0x496   : > { %v1978_v37 = vpop.f32.mrb[74].mxu1 }
 0x497   : > { %2309 = vst.msk [vmem:[#allocation3 + $0x48] sm:$0xff] %vm789_vm3, %v1978_v37  ;;  %v6944_v62 = vpop.f32.mrb[75].mxu1 }
 0x49a   : > { %v2127_v61 = vpop.f32.mrb[32].mxu0 }
 0x49b   : > { %2316 = vst.msk [vmem:[#allocation3 + $0x80] sm:$0xff] %vm789_vm3, %v2127_v61  ;;  %v6979_v41 = vpop.f32.mrb[33].mxu0 }
 0x49e   : > { %v1983_v33 = vpop.f32.mrb[76].mxu1 }
 0x49f   : > { %2310 = vst.msk [vmem:[#allocation3 + $0x50] sm:$0xff] %vm789_vm3, %v1983_v33  ;;  %v2132_v2 = vpop.f32.mrb[34].mxu0  ;;  %v6947_v9 = vpop.f32.mrb[77].mxu1 }
 0x4a0   : > { %2317 = vst.msk [vmem:[#allocation3 + $0x88] sm:$0xff] %vm789_vm3, %v2132_v2  ;;  %v6982_v46 = vpop.f32.mrb[35].mxu0 }
 0x4a2   : > { %v1988_v51 = vpop.f32.mrb[78].mxu1 }
 0x4a3   : > { %2311 = vst.msk [vmem:[#allocation3 + $0x58] sm:$0xff] %vm789_vm3, %v1988_v51  ;;  %v2137_v34 = vpop.f32.mrb[36].mxu0  ;;  %v6950_v23 = vpop.f32.mrb[79].mxu1 }
 0x4a4   : > { %2318 = vst.msk [vmem:[#allocation3 + $0x90] sm:$0xff] %vm789_vm3, %v2137_v34  ;;  %v6985_v20 = vpop.f32.mrb[37].mxu0 }
 0x4a6   : > { %v1993_v3 = vpop.f32.mrb[80].mxu1 }
 0x4a7   : > { %2312 = vst.msk [vmem:[#allocation3 + $0x60] sm:$0xff] %vm789_vm3, %v1993_v3  ;;  %v6953_v10 = vpop.f32.mrb[81].mxu1 }
 0x4aa   : > { %v1998_v7 = vpop.f32.mrb[82].mxu1 }
 0x4ab   : > { %2313 = vst.msk [vmem:[#allocation3 + $0x68] sm:$0xff] %vm789_vm3, %v1998_v7  ;;  %v2142_v35 = vpop.f32.mrb[38].mxu0  ;;  %v6956_v5 = vpop.f32.mrb[83].mxu1 }
 0x4ac   : > { %2319 = vst.msk [vmem:[#allocation3 + $0x98] sm:$0xff] %vm789_vm3, %v2142_v35  ;;  %v6988_v0 = vpop.f32.mrb[39].mxu0 }
 0x4af   : > { %v2147_v29 = vpop.f32.mrb[40].mxu0 }
 0x4b0   : > { %2320 = vst.msk [vmem:[#allocation3 + $0xa0] sm:$0xff] %vm789_vm3, %v2147_v29  ;;  %v6991_v16 = vpop.f32.mrb[41].mxu0 }
 0x4b2   : > { %v2266_v13 = vpop.f32.mrb[84].mxu1 }
 0x4b3   : > { %2321 = vst.msk [vmem:[#allocation3 + $0xa8] sm:$0xff] %vm789_vm3, %v2266_v13  ;;  %v2513_v18 = vpop.f32.mrb[42].mxu0  ;;  %v7008_v11 = vpop.f32.mrb[85].mxu1 }
 0x4b4   : > { %v9625_v52 = vsel %vm711_vm5, %v2513_v18, -1e+30  ;;  %v7043_v59 = vpop.f32.mrb[43].mxu0 }
 0x4b5   : > { %v3064_v48 = vsel %vm1395_vm6, %v9625_v52, -inf }
 0x4b6   : > { %3065 = vmax.xlane.f32.xlu0 %v3064_v48  ;;  %v2271_v40 = vpop.f32.mrb[86].mxu1 }
 0x4b7   : > { %2322 = vst.msk [vmem:[#allocation3 + $0xb0] sm:$0xff] %vm789_vm3, %v2271_v40  ;;  %v2518_v14 = vpop.f32.mrb[44].mxu0  ;;  %v7011_v27 = vpop.f32.mrb[87].mxu1 }
 0x4b8   : > { %v9632_v22 = vsel %vm711_vm5, %v2518_v14, -1e+30  ;;  %v7046_v21 = vpop.f32.mrb[45].mxu0 }
 0x4b9   : > { %v3067_v19 = vsel %vm1395_vm6, %v9632_v22, -inf }
 0x4ba   : > { %3068 = vmax.xlane.f32.xlu1 %v3067_v19  ;;  %v2276_v57 = vpop.f32.mrb[88].mxu1 }
 0x4bb   : > { %2323 = vst.msk [vmem:[#allocation3 + $0xb8] sm:$0xff] %vm789_vm3, %v2276_v57  ;;  %v2523_v17 = vpop.f32.mrb[46].mxu0  ;;  %v7014_v60 = vpop.f32.mrb[89].mxu1 }
 0x4bc   : > { %v9639_v50 = vsel %vm711_vm5, %v2523_v17, -1e+30  ;;  %v7049_v53 = vpop.f32.mrb[47].mxu0 }
 0x4bd   : > { %v3070_v26 = vsel %vm1395_vm6, %v9639_v50, -inf }
 0x4be   : > { %3071 = vmax.xlane.f32.xlu0 %v3070_v26  ;;  %v2281_v42 = vpop.f32.mrb[90].mxu1 }
 0x4bf   : > { %2324 = vst.msk [vmem:[#allocation3 + $0xc0] sm:$0xff] %vm789_vm3, %v2281_v42  ;;  %v2528_v15 = vpop.f32.mrb[48].mxu0  ;;  %v7017_v31 = vpop.f32.mrb[91].mxu1 }
 0x4c0   : > { %v9646_v24 = vsel %vm711_vm5, %v2528_v15, -1e+30  ;;  %v7052_v4 = vpop.f32.mrb[49].mxu0 }
 0x4c1   : > { %v3073_v54 = vsel %vm1395_vm6, %v9646_v24, -inf }
 0x4c2   : > { %3074 = vmax.xlane.f32.xlu0 %v3073_v54 }
 0x4c3   : > { %v2533_v25 = vpop.f32.mrb[50].mxu0 }
 0x4c4   : > { %v9652_v45 = vsel %vm711_vm5, %v2533_v25, -1e+30  ;;  %v7055_v39 = vpop.f32.mrb[51].mxu0 }
 0x4c5   : > { %v3076_v43 = vsel %vm1395_vm6, %v9652_v45, -inf }
 0x4c6   : > { %3077 = vmax.xlane.f32.xlu0 %v3076_v43 }
 0x4df   : > { %v2538_v28 = vpop.f32.mrb[52].mxu0 }
 0x4e0   : > { %v9658_v44 = vsel %vm711_vm5, %v2538_v28, -1e+30  ;;  %v7058_v1 = vpop.f32.mrb[53].mxu0 }
 0x4e1   : > { %v3079_v47 = vsel %vm1395_vm6, %v9658_v44, -inf }
 0x4e2   : > { %3080 = vmax.xlane.f32.xlu0 %v3079_v47 }
 0x4e3   : > { %v2543_v36 = vpop.f32.mrb[54].mxu0 }
 0x4e4   : > { %v9664_v58 = vsel %vm711_vm5, %v2543_v36, -1e+30  ;;  %v7061_v63 = vpop.f32.mrb[55].mxu0 }
 0x4e5   : > { %v3082_v12 = vsel %vm1395_vm6, %v9664_v58, -inf }
 0x4e6   : > { %3083 = vmax.xlane.f32.xlu0 %v3082_v12 }
 0x4eb   : > { %v2286_v30 = vpop.f32.mrb[92].mxu1 }
 0x4ec   : > { %2325 = vst.msk [vmem:[#allocation3 + $0xc8] sm:$0xff] %vm789_vm3, %v2286_v30  ;;  %v7020_v32 = vpop.f32.mrb[93].mxu1 }
 0x4ef   : > { %v2291_v56 = vpop.f32.mrb[94].mxu1 }
 0x4f0   : > { %2326 = vst.msk [vmem:[#allocation3 + $0xd0] sm:$0xff] %vm789_vm3, %v2291_v56  ;;  %v7023_v49 = vpop.f32.mrb[95].mxu1 }
 0x520   : > { %v2296_v55 = vpop.f32.mrb[96].mxu1 }
 0x521   : > { %2327 = vst.msk [vmem:[#allocation3 + $0xd8] sm:$0xff] %vm789_vm3, %v2296_v55  ;;  %v7026_v37 = vpop.f32.mrb[97].mxu1 }
 0x523   : > { %v2839_v62 = vpop.f32.mrb[56].mxu0 }
 0x524   : > { %v2676_v61 = vpop.f32.mrb[98].mxu1  ;;  %v7113_v41 = vpop.f32.mrb[57].mxu0  ;;  %v9679_v46 = vsel %vm711_vm5, %v2839_v62, -1e+30 }
 0x525   : > { %v9673_v33 = vsel %vm711_vm5, %v2676_v61, -1e+30  ;;  %v7078_v2 = vpop.f32.mrb[99].mxu1  ;;  %v3106_v3 = vsel %vm1395_vm6, %v9679_v46, -inf }
 0x526   : > { %v3085_v9 = vsel %vm1395_vm6, %v9673_v33, -inf }
 0x527   : > { %3086 = vmax.xlane.f32.xlu1 %v3085_v9  ;;  %v2844_v51 = vpop.f32.mrb[58].mxu0 }
 0x528   : > { %v2681_v34 = vpop.f32.mrb[100].mxu1  ;;  %v7116_v23 = vpop.f32.mrb[59].mxu0  ;;  %v9691_v16 = vsel %vm711_vm5, %v2844_v51, -1e+30 }
 0x529   : > { %v7081_v20 = vpop.f32.mrb[101].mxu1  ;;  %v9685_v10 = vsel %vm711_vm5, %v2681_v34, -1e+30  ;;  %v3109_v14 = vsel %vm1395_vm6, %v9691_v16, -inf }
 0x52a   : > { %v3088_v29 = vsel %vm1395_vm6, %v9685_v10, -inf  ;;  %v8203_v20 = vld [vmem:[#allocation2 + $0xa0] sm:$0xff] }
 0x52b   : > { %3107 = vmax.xlane.f32.xlu1 %v3106_v3  ;;  %v2849_v7 = vpop.f32.mrb[60].mxu0  ;;  %v2376_v3 = vmax.f32 %v8203_v20, 0.0 }
 0x52c   : > { %v2686_v35 = vpop.f32.mrb[102].mxu1  ;;  %v7119_v5 = vpop.f32.mrb[61].mxu0  ;;  %v9715_v42 = vsel %vm711_vm5, %v2849_v7, -1e+30  ;;  %v8204_v7 = vld [vmem:[#allocation2 + $0xb8] sm:$0xff] }
 0x52d   : > { %v7084_v0 = vpop.f32.mrb[103].mxu1  ;;  %v9703_v27 = vsel %vm711_vm5, %v2686_v35, -1e+30  ;;  %v3112_v39 = vsel %vm1395_vm6, %v9715_v42, -inf  ;;  %v2379_v35 = vmax.f32 %v8204_v7, 0.0  ;;  %v8205_v5 = vld [vmem:[#allocation2 + $0xc0] sm:$0xff] }
 0x52e   : > { %v3091_v53 = vsel %vm1395_vm6, %v9703_v27, -inf  ;;  %v2380_v0 = vmax.f32 %v8205_v5, 0.0 }
 0x52f   : > { %3089 = vmax.xlane.f32.xlu1 %v3088_v29  ;;  %v2854_v13 = vpop.f32.mrb[62].mxu0 }
 0x530   : > { %v9695_v18 = vsel %vm711_vm5, %v2854_v13, -1e+30  ;;  %v2691_v11 = vpop.f32.mrb[104].mxu1  ;;  %v7122_v59 = vpop.f32.mrb[63].mxu0 }
 0x531   : > { %v3115_v48 = vsel %vm1395_vm6, %v9695_v18, -inf  ;;  %v7087_v40 = vpop.f32.mrb[105].mxu1  ;;  %v9727_v28 = vsel %vm711_vm5, %v2691_v11, -1e+30  ;;  %v7825_v11 = vpack.i.bf16 %v2380_v0, %v2379_v35 }
 0x532   : > { %3116 = vmax.xlane.f32.xlu0 %v3115_v48  ;;  %v3094_v30 = vsel %vm1395_vm6, %v9727_v28, -inf }
 0x533   : > { %3110 = vmax.xlane.f32.xlu1 %v3109_v14  ;;  %v2859_v21 = vpop.f32.mrb[64].mxu0 }
 0x534   : > { %v2696_v19 = vpop.f32.mrb[106].mxu1  ;;  %v7125_v57 = vpop.f32.mrb[65].mxu0  ;;  %v9719_v15 = vsel %vm711_vm5, %v2859_v21, -1e+30  ;;  %v11470_v21 = vld [vmem:[#allocation9_spill] sm:$0xff] }
 0x535   : > { %v9707_v17 = vsel %vm711_vm5, %v2696_v19, -1e+30  ;;  %v7090_v60 = vpop.f32.mrb[107].mxu1  ;;  %v3118_v43 = vsel %vm1395_vm6, %v9719_v15, -inf  ;;  %v9753_v19 = vpop.permute.xlu0 %7811 }
 0x536   : > { %v3097_v26 = vsel %vm1395_vm6, %v9707_v17, -inf  ;;  %v9755_v60 = vpop.permute.xlu1 %7806 }
 0x537   : > { %3092 = vmax.xlane.f32.xlu1 %v3091_v53  ;;  %3098 = vmax.xlane.f32.xlu0 %v3097_v26  ;;  %v2864_v31 = vpop.f32.mrb[66].mxu0 }
 0x538   : > { %v2701_v4 = vpop.f32.mrb[108].mxu1  ;;  %v7128_v54 = vpop.f32.mrb[67].mxu0  ;;  %v9739_v56 = vsel %vm711_vm5, %v2864_v31, -1e+30 }
 0x539   : > { %v7093_v25 = vpop.f32.mrb[109].mxu1  ;;  %v9731_v1 = vsel %vm711_vm5, %v2701_v4, -1e+30  ;;  %v3121_v37 = vsel %vm1395_vm6, %v9739_v56, -inf }
 0x53a   : > { %v3100_v32 = vsel %vm1395_vm6, %v9731_v1, -inf  ;;  %v9757_v26 = vpop.permute.xlu1 %7816 }
 0x53b   : > { %3113 = vmax.xlane.f32.xlu1 %v3112_v39  ;;  %3119 = vmax.xlane.f32.xlu0 %v3118_v43  ;;  %v2869_v47 = vpop.f32.mrb[68].mxu0 }
 0x53c   : > { %v2706_v36 = vpop.f32.mrb[110].mxu1  ;;  %v7131_v63 = vpop.f32.mrb[69].mxu0 }
 0x53d   : > { %v7096_v12 = vpop.f32.mrb[111].mxu1  ;;  %v9745_v62 = vsel %vm711_vm5, %v2706_v36, -1e+30 }
 0x53e   : > { %v3103_v2 = vsel %vm1395_vm6, %v9745_v62, -inf }
 0x53f   : > { %3095 = vmax.xlane.f32.xlu1 %v3094_v30  ;;  %3101 = vmax.xlane.f32.xlu0 %v3100_v32  ;;  %v9770_v32 = vsel %vm711_vm5, %v2869_v47, -1e+30 }
 0x540   : > { %v3002_v49 = vpop.f32.mrb[112].mxu1 }
 0x541   : > { %v7148_v55 = vpop.f32.mrb[113].mxu1  ;;  %v9762_v39 = vsel %vm711_vm5, %v3002_v49, -1e+30 }
 0x542   : > { %v3127_v12 = vsel %vm1395_vm6, %v9762_v39, -inf }
 0x543   : > { %3122 = vmax.xlane.f32.xlu0 %v3121_v37  ;;  %v3066_v57 = vpop.xlane.xlu0 %3065  ;;  %v3124_v37 = vsel %vm1395_vm6, %v9770_v32, -inf }
 0x544   : > { %v3007_v61 = vpop.f32.mrb[114].mxu1  ;;  %v3148_v43 = vsub.f32 %v9625_v52, %v3066_v57 }
 0x545   : > { %v7151_v41 = vpop.f32.mrb[115].mxu1 }
 0x546   : > { %v3176_v49 = vmul.f32 1.442695, %v3148_v43 }
 0x547   : > { %3104 = vmax.xlane.f32.xlu0 %v3103_v2  ;;  %v3069_v4 = vpop.xlane.xlu1 %3068 }
 0x548   : > { %v3012_v9 = vpop.f32.mrb[116].mxu1  ;;  %v3149_v54 = vsub.f32 %v9632_v22, %v3069_v4  ;;  %v9774_v22 = vsel %vm711_vm5, %v3007_v61, -1e+30 }
 0x549   : > { %v7154_v51 = vpop.f32.mrb[117].mxu1  ;;  %v3130_v41 = vsel %vm1395_vm6, %v9774_v22, -inf  ;;  %v9784_v47 = vsel %vm711_vm5, %v3012_v9, -1e+30 }
 0x54a   : > { %v3178_v36 = vmul.f32 1.442695, %v3149_v54  ;;  %v3133_v51 = vsel %vm1395_vm6, %v9784_v47, -inf }
 0x54b   : > { %v3072_v53 = vpop.xlane.xlu0 %3071 }
 0x54c   : > { %v3017_v34 = vpop.f32.mrb[118].mxu1  ;;  %v3150_v55 = vsub.f32 %v9639_v50, %v3072_v53  ;;  %7947 = vpow2.f32 %v3178_v36 }
 0x54d   : > { %v7157_v23 = vpop.f32.mrb[119].mxu1  ;;  %7949 = vpow2.f32 %v3176_v49  ;;  %v9797_v20 = vsel %vm711_vm5, %v3017_v34, -1e+30 }
 0x54e   : > { %v3180_v50 = vmul.f32 1.442695, %v3150_v55  ;;  %v3136_v35 = vsel %vm1395_vm6, %v9797_v20, -inf }
 0x54f   : > { %v3075_v31 = vpop.xlane.xlu0 %3074 }
 0x550   : > { %v3022_v29 = vpop.f32.mrb[120].mxu1  ;;  %3689 = vrot.lane.b32.xlu1 %v2376_v3, %s8227_s25  ;;  %v3151_v63 = vsub.f32 %v9646_v24, %v3075_v31 }
 0x551   : > { %v7160_v13 = vpop.f32.mrb[121].mxu1  ;;  %v9788_v61 = vsel %vm711_vm5, %v3022_v29, -1e+30 }
 0x552   : > { %v3182_v52 = vmul.f32 1.442695, %v3151_v63  ;;  %v3139_v23 = vsel %vm1395_vm6, %v9788_v61, -inf }
 0x553   : > { %v3078_v25 = vpop.xlane.xlu0 %3077 }
 0x554   : > { %v3027_v59 = vpop.f32.mrb[122].mxu1  ;;  %7826 = vrot.lane.b32.xlu1 %v7825_v11, %s8227_s25  ;;  %7951 = vpow2.f32 %v3182_v52 }
 0x555   : > { %v7163_v48 = vpop.f32.mrb[123].mxu1  ;;  %7953 = vpow2.f32 %v3180_v50  ;;  %v9812_v34 = vsel %vm711_vm5, %v3027_v59, -1e+30 }
 0x556   : > { %v9808_v0 = vpop.eup %7947 }
 0x557   : > { %v9814_v13 = vpop.eup %7949  ;;  %v3235_v11 = vsel %vm1395_vm6, %v9808_v0, 0.0 }
 0x558   : > { %v3032_v40 = vpop.f32.mrb[124].mxu1  ;;  %v3232_v59 = vsel %vm1395_vm6, %v9814_v13, 0.0 }
 0x559   : > { %v7166_v14 = vpop.f32.mrb[125].mxu1  ;;  %v9801_v3 = vsel %vm711_vm5, %v3032_v40, -1e+30 }
 0x55a   : > { %v3145_v5 = vsel %vm1395_vm6, %v9801_v3, -inf }
 0x55d   : > { %7821 = vrot.lane.b32.xlu0 %v11470_v21, %s8227_s25 }
 0x55e   : > { %v9820_v48 = vpop.eup %7951 }
 0x55f   : > { %v9822_v8 = vpop.eup %7953  ;;  %v3241_v40 = vsel %vm1395_vm6, %v9820_v48, 0.0 }
 0x560   : > { %v3238_v21 = vsel %vm1395_vm6, %v9822_v8, 0.0 }
 0x56f   : > { %v3081_v30 = vpop.xlane.xlu0 %3080 }
 0x570   : > { %v3153_v24 = vsub.f32 %v9658_v44, %v3081_v30  ;;  %v3152_v44 = vsub.f32 %v9652_v45, %v3078_v25 }
 0x572   : > { %v3186_v2 = vmul.f32 1.442695, %v3153_v24  ;;  %v3184_v45 = vmul.f32 1.442695, %v3152_v44 }
 0x573   : > { %v3084_v9 = vpop.xlane.xlu0 %3083 }
 0x574   : > { %7955 = vpow2.f32 %v3186_v2  ;;  %v3154_v7 = vsub.f32 %v9664_v58, %v3084_v9  ;;  %v3142_v58 = vsel %vm1395_vm6, %v9812_v34, -inf }
 0x575   : > { %7957 = vpow2.f32 %v3184_v45 }
 0x576   : > { %v3188_v29 = vmul.f32 1.442695, %v3154_v7 }
 0x578   : > { %3128 = vmax.xlane.f32.xlu1 %v3127_v12  ;;  %7959 = vpow2.f32 %v3188_v29 }
 0x57c   : > { %3131 = vmax.xlane.f32.xlu1 %v3130_v41  ;;  %3125 = vmax.xlane.f32.xlu0 %v3124_v37 }
 0x57e   : > { %v9828_v14 = vpop.eup %7955 }
 0x57f   : > { %v3247_v57 = vsel %vm1395_vm6, %v9828_v14, 0.0  ;;  %v9834_v53 = vpop.eup %7957 }
 0x580   : > { %3134 = vmax.xlane.f32.xlu1 %v3133_v51  ;;  %3140 = vmax.xlane.f32.xlu0 %v3139_v23  ;;  %v3244_v31 = vsel %vm1395_vm6, %v9834_v53, 0.0 }
 0x582   : > { %v9838_v4 = vpop.eup %7959 }
 0x583   : > { %v3250_v54 = vsel %vm1395_vm6, %v9838_v4, 0.0 }
 0x584   : > { %3137 = vmax.xlane.f32.xlu1 %v3136_v35  ;;  %3146 = vmax.xlane.f32.xlu0 %v3145_v5 }
 0x588   : > { %3143 = vmax.xlane.f32.xlu1 %v3142_v58  ;;  %3236 = vadd.xlane.f32.xlu0 %v3235_v11 }
 0x58c   : > { %3233 = vadd.xlane.f32.xlu1 %v3232_v59  ;;  %3242 = vadd.xlane.f32.xlu0 %v3241_v40 }
 0x590   : > { %3239 = vadd.xlane.f32.xlu1 %v3238_v21  ;;  %3248 = vadd.xlane.f32.xlu0 %v3247_v57 }
 0x594   : > { %3245 = vadd.xlane.f32.xlu1 %v3244_v31 }
 0x598   : > { %3251 = vadd.xlane.f32.xlu1 %v3250_v54 }
 0x5b4   : > { %v3087_v25 = vpop.xlane.xlu1 %3086 }
 0x5b5   : > { %v3155_v43 = vsub.f32 %v9673_v33, %v3087_v25 }
 0x5b7   : > { %v3190_v36 = vmul.f32 1.442695, %v3155_v43 }
 0x5b8   : > { %v3108_v63 = vpop.xlane.xlu1 %3107 }
 0x5b9   : > { %7961 = vpow2.f32 %v3190_v36  ;;  %v3162_v12 = vsub.f32 %v9679_v46, %v3108_v63 }
 0x5bb   : > { %v3204_v30 = vmul.f32 1.442695, %v3162_v12 }
 0x5bc   : > { %v3090_v49 = vpop.xlane.xlu1 %3089 }
 0x5bd   : > { %7963 = vpow2.f32 %v3204_v30  ;;  %v3156_v55 = vsub.f32 %v9685_v10, %v3090_v49 }
 0x5bf   : > { %v3192_v52 = vmul.f32 1.442695, %v3156_v55  ;;  %v3117_v24 = vpop.xlane.xlu0 %3116 }
 0x5c0   : > { %v3111_v37 = vpop.xlane.xlu1 %3110 }
 0x5c1   : > { %7965 = vpow2.f32 %v3192_v52  ;;  %v3163_v41 = vsub.f32 %v9691_v16, %v3111_v37 }
 0x5c3   : > { %v9846_v50 = vpop.eup %7961  ;;  %v3206_v44 = vmul.f32 1.442695, %v3163_v41 }
 0x5c4   : > { %v3093_v33 = vpop.xlane.xlu1 %3092  ;;  %v3099_v2 = vpop.xlane.xlu0 %3098  ;;  %v3253_v51 = vsel %vm1395_vm6, %v9846_v50, 0.0 }
 0x5c5   : > { %7967 = vpow2.f32 %v3206_v44  ;;  %v3157_v46 = vsub.f32 %v9703_v27, %v3093_v33  ;;  %v3159_v23 = vsub.f32 %v9707_v17, %v3099_v2  ;;  %3254 = vadd.xlane.f32.xlu1 %v3253_v51  ;;  %v3165_v27 = vsub.f32 %v9695_v18, %v3117_v24 }
 0x5c7   : > { %v9852_v10 = vpop.eup %7963  ;;  %v3194_v9 = vmul.f32 1.442695, %v3157_v46  ;;  %v3198_v45 = vmul.f32 1.442695, %v3159_v23  ;;  %v3210_v57 = vmul.f32 1.442695, %v3165_v27 }
 0x5c8   : > { %v3114_v7 = vpop.xlane.xlu1 %3113  ;;  %v3120_v16 = vpop.xlane.xlu0 %3119  ;;  %v3274_v35 = vsel %vm1395_vm6, %v9852_v10, 0.0 }
 0x5c9   : > { %7969 = vpow2.f32 %v3194_v9  ;;  %v3164_v5 = vsub.f32 %v9715_v42, %v3114_v7  ;;  %3275 = vadd.xlane.f32.xlu1 %v3274_v35  ;;  %v3166_v42 = vsub.f32 %v9719_v15, %v3120_v16 }
 0x5ca   : > { %7971 = vpow2.f32 %v3198_v45 }
 0x5cb   : > { %v9857_v29 = vpop.eup %7965  ;;  %v3208_v17 = vmul.f32 1.442695, %v3164_v5  ;;  %v3212_v43 = vmul.f32 1.442695, %v3166_v42 }
 0x5cc   : > { %v3096_v58 = vpop.xlane.xlu1 %3095  ;;  %v3102_v11 = vpop.xlane.xlu0 %3101  ;;  %v3256_v59 = vsel %vm1395_vm6, %v9857_v29, 0.0 }
 0x5cd   : > { %7973 = vpow2.f32 %v3208_v17  ;;  %v3158_v40 = vsub.f32 %v9727_v28, %v3096_v58  ;;  %3257 = vadd.xlane.f32.xlu1 %v3256_v59  ;;  %v3160_v36 = vsub.f32 %v9731_v1, %v3102_v11 }
 0x5cf   : > { %v9863_v21 = vpop.eup %7967  ;;  %v3196_v31 = vmul.f32 1.442695, %v3158_v40  ;;  %v3200_v55 = vmul.f32 1.442695, %v3160_v36 }
 0x5d0   : > { %v3123_v54 = vpop.xlane.xlu0 %3122  ;;  %v3277_v18 = vsel %vm1395_vm6, %v9863_v21, 0.0  ;;  %v9907_v16 = vpop.permute.xlu1 %3689 }
 0x5d1   : > { %7975 = vpow2.f32 %v3196_v31  ;;  %3278 = vadd.xlane.f32.xlu1 %v3277_v18  ;;  %v3167_v52 = vsub.f32 %v9739_v56, %v3123_v54 }
 0x5d2   : > { %7977 = vpow2.f32 %v3210_v57 }
 0x5d3   : > { %v9868_v25 = vpop.eup %7969  ;;  %7979 = vpow2.f32 %v3212_v43 }
 0x5d4   : > { %v9871_v28 = vpop.eup %7971  ;;  %v3105_v63 = vpop.xlane.xlu0 %3104  ;;  %v3259_v12 = vsel %vm1395_vm6, %v9868_v25, 0.0 }
 0x5d5   : > { %v3161_v15 = vsub.f32 %v9745_v62, %v3105_v63  ;;  %3260 = vadd.xlane.f32.xlu1 %v3259_v12  ;;  %v3265_v30 = vsel %vm1395_vm6, %v9871_v28, 0.0  ;;  %v3214_v62 = vmul.f32 1.442695, %v3167_v52  ;;  %v9909_v35 = vpop.permute.xlu1 %7826 }
 0x5d6   : > { %3266 = vadd.xlane.f32.xlu0 %v3265_v30 }
 0x5d7   : > { %v9878_v49 = vpop.eup %7973  ;;  %v3202_v24 = vmul.f32 1.442695, %v3161_v15 }
 0x5d8   : > { %v3280_v1 = vsel %vm1395_vm6, %v9878_v49, 0.0  ;;  %v9911_v5 = vpop.permute.xlu0 %7821 }
 0x5d9   : > { %7981 = vpow2.f32 %v3202_v24  ;;  %3281 = vadd.xlane.f32.xlu1 %v3280_v1 }
 0x5da   : > { %7983 = vpow2.f32 %v3200_v55 }
 0x5db   : > { %v9883_v37 = vpop.eup %7975  ;;  %7985 = vpow2.f32 %v3214_v62 }
 0x5dc   : > { %v3262_v41 = vsel %vm1395_vm6, %v9883_v37, 0.0  ;;  %v9887_v44 = vpop.eup %7977 }
 0x5dd   : > { %3263 = vadd.xlane.f32.xlu1 %v3262_v41  ;;  %v3283_v56 = vsel %vm1395_vm6, %v9887_v44, 0.0  ;;  %v9891_v33 = vpop.eup %7979 }
 0x5de   : > { %v3286_v51 = vsel %vm1395_vm6, %v9891_v33, 0.0 }
 0x5e1   : > { %3284 = vadd.xlane.f32.xlu1 %v3283_v56 }
 0x5e3   : > { %v9893_v2 = vpop.eup %7981 }
 0x5e4   : > { %v3271_v46 = vsel %vm1395_vm6, %v9893_v2, 0.0  ;;  %v9899_v23 = vpop.eup %7983 }
 0x5e5   : > { %3287 = vadd.xlane.f32.xlu1 %v3286_v51  ;;  %3272 = vadd.xlane.f32.xlu0 %v3271_v46  ;;  %v3268_v9 = vsel %vm1395_vm6, %v9899_v23, 0.0  ;;  %v9903_v45 = vpop.eup %7985 }
 0x5e6   : > { %v3289_v7 = vsel %vm1395_vm6, %v9903_v45, 0.0 }
 0x5e9   : > { %3269 = vadd.xlane.f32.xlu1 %v3268_v9 }
 0x5ed   : > { %3290 = vadd.xlane.f32.xlu1 %v3289_v7 }
 0x605   : > { %v3129_v27 = vpop.xlane.xlu1 %3128 }
 0x606   : > { %v3169_v17 = vsub.f32 %v9762_v39, %v3129_v27 }
 0x608   : > { %v3218_v58 = vmul.f32 1.442695, %v3169_v17 }
 0x609   : > { %v3132_v11 = vpop.xlane.xlu1 %3131  ;;  %v3126_v59 = vpop.xlane.xlu0 %3125 }
 0x60a   : > { %7987 = vpow2.f32 %v3218_v58  ;;  %v3170_v40 = vsub.f32 %v9774_v22, %v3132_v11  ;;  %v3168_v57 = vsub.f32 %v9770_v32, %v3126_v59  ;;  %v7809_v58 = vunpack.i.h.bf16 %v9755_v60 }
 0x60b   : > { %v7808_v11 = vunpack.i.l.bf16 %v9755_v60  ;;  %v7813_v60 = vunpack.i.l.bf16 %v9753_v19 }
 0x60c   : > { %v3220_v42 = vmul.f32 1.442695, %v3170_v40  ;;  %v3216_v31 = vmul.f32 1.442695, %v3168_v57 }
 0x60d   : > { %v3135_v54 = vpop.xlane.xlu1 %3134  ;;  %v3141_v18 = vpop.xlane.xlu0 %3140 }
 0x60e   : > { %7989 = vpow2.f32 %v3220_v42  ;;  %v3171_v43 = vsub.f32 %v9784_v47, %v3135_v54  ;;  %v3173_v63 = vsub.f32 %v9788_v61, %v3141_v18 }
 0x60f   : > { %7991 = vpow2.f32 %v3216_v31 }
 0x610   : > { %v3222_v36 = vmul.f32 1.442695, %v3171_v43  ;;  %v3226_v22 = vmul.f32 1.442695, %v3173_v63  ;;  %v7814_v43 = vunpack.i.h.bf16 %v9753_v19 }
 0x611   : > { %v3138_v39 = vpop.xlane.xlu1 %3137  ;;  %v9921_v32 = vpop.xlane.xlu0 %3146 }
 0x612   : > { %7993 = vpow2.f32 %v3222_v36  ;;  %v3172_v12 = vsub.f32 %v9797_v20, %v3138_v39  ;;  %v7514_v36 = vpack.c.bf16 %v7809_v58, %v7808_v11 }
 0x614   : > { %v9919_v15 = vpop.eup %7987  ;;  %v3224_v30 = vmul.f32 1.442695, %v3172_v12  ;;  %v7517_v12 = vpack.c.bf16 %v7814_v43, %v7813_v60  ;;  %v7828_v43 = vunpack.i.l.bf16 %v9909_v35 }
 0x615   : > { %v3144_v55 = vpop.xlane.xlu1 %3143  ;;  %v3295_v52 = vsel %vm1395_vm6, %v9919_v15, 0.0  ;;  %v3237_v41 = vpop.xlane.xlu0 %3236 }
 0x616   : > { %7995 = vpow2.f32 %v3224_v30  ;;  %v3174_v47 = vsub.f32 %v9812_v34, %v3144_v55  ;;  %3296 = vadd.xlane.f32.xlu0 %v3295_v52  ;;  %v7818_v30 = vunpack.i.l.bf16 %v9757_v26 }
 0x617   : > { %7997 = vpow2.f32 %v3226_v22  ;;  %v7819_v22 = vunpack.i.h.bf16 %v9757_v26 }
 0x618   : > { %v9926_v24 = vpop.eup %7989  ;;  %v3228_v61 = vmul.f32 1.442695, %v3174_v47 }
 0x619   : > { %v9928_v1 = vpop.eup %7991  ;;  %v3234_v20 = vpop.xlane.xlu1 %3233  ;;  %v3298_v62 = vsel %vm1395_vm6, %v9926_v24, 0.0 }
 0x61a   : > { %7999 = vpow2.f32 %v3228_v61  ;;  %3299 = vadd.xlane.f32.xlu0 %v3298_v62  ;;  %v3292_v56 = vsel %vm1395_vm6, %v9928_v1, 0.0  ;;  %v3243_v17 = vpop.xlane.xlu0 %3242  ;;  %v8206_v61 = vld [vmem:[#allocation2 + $0xd8] sm:$0xff] }
 0x61b   : > { %8001 = vrcp.f32 %v3234_v20  ;;  %3293 = vadd.xlane.f32.xlu1 %v3292_v56  ;;  %v2383_v20 = vmax.f32 %v8206_v61, 0.0  ;;  %v8208_v56 = vld [vmem:[#allocation2 + $0xc8] sm:$0xff] }
 0x61c   : > { %v9934_v34 = vpop.eup %7993  ;;  %8003 = vrcp.f32 %v3237_v41 }
 0x61d   : > { %v3301_v51 = vsel %vm1395_vm6, %v9934_v34, 0.0  ;;  %v3240_v46 = vpop.xlane.xlu1 %3239 }
 0x61e   : > { %3302 = vadd.xlane.f32.xlu0 %v3301_v51  ;;  %8005 = vrcp.f32 %v3240_v46  ;;  %v3249_v63 = vpop.xlane.xlu0 %3248  ;;  %v2381_v51 = vmax.f32 %v8208_v56, 0.0 }
 0x61f   : > { %8007 = vrcp.f32 %v3243_v17  ;;  %v3175_v17 = vsub.f32 %v9801_v3, %v9921_v32 }
 0x620   : > { %v9938_v9 = vpop.eup %7995 }
 0x621   : > { %v3304_v7 = vsel %vm1395_vm6, %v9938_v9, 0.0  ;;  %v9942_v27 = vpop.eup %7997  ;;  %v3246_v54 = vpop.xlane.xlu1 %3245 }
 0x622   : > { %3305 = vadd.xlane.f32.xlu0 %v3304_v7  ;;  %v3307_v42 = vsel %vm1395_vm6, %v9942_v27, 0.0  ;;  %8009 = vrcp.f32 %v3246_v54 }
 0x623   : > { %8011 = vrcp.f32 %v3249_v63 }
 0x624   : > { %v9946_v59 = vpop.eup %7999 }
 0x625   : > { %v8002_v40 = vpop.eup %8001  ;;  %v3310_v57 = vsel %vm1395_vm6, %v9946_v59, 0.0  ;;  %v3252_v19 = vpop.xlane.xlu1 %3251 }
 0x626   : > { %v3344_v31 = vmul.f32 %v8002_v40, %v9814_v13  ;;  %3311 = vadd.xlane.f32.xlu1 %v3310_v57  ;;  %3308 = vadd.xlane.f32.xlu0 %v3307_v42  ;;  %v8004_v18 = vpop.eup %8003  ;;  %8013 = vrcp.f32 %v3252_v19  ;;  %v7824_v42 = vunpack.i.h.bf16 %v9911_v5 }
 0x627   : > { %v3345_v13 = vmul.f32 %v8004_v18, %v9808_v0  ;;  %v7520_v0 = vpack.c.bf16 %v7819_v22, %v7818_v30  ;;  %v7829_v18 = vunpack.i.h.bf16 %v9909_v35 }
 0x628   : > { %7182 = vmatmul.mubr.msk.f32.vlgmr.msra.gmra.mrb[70].mxu0 %vm1395_vm6, %v3344_v31  ;;  %v8006_v39 = vpop.eup %8005  ;;  %v7823_v31 = vunpack.i.l.bf16 %v9911_v5 }
 0x629   : > { %7515 = vmatpush3.bf16.msra.mxu0 %v7514_v36  ;;  %7184 = vmatprep.mubr.msk.f32.mxu0 %vm8223_vm2, %v11449_v6  ;;  %v3346_v55 = vmul.f32 %v8006_v39, %v9822_v8  ;;  %v8008_v52 = vpop.eup %8007  ;;  %v8207_v8 = vld [vmem:[#allocation2 + $0xd0] sm:$0xff] }
 0x62a   : > { %7516 = vmatprep.subr.bf16.mxu0 %v11450_v38  ;;  %v3347_v26 = vmul.f32 %v8008_v52, %v9820_v48  ;;  %v2382_v62 = vmax.f32 %v8207_v8, 0.0  ;;  %v7523_v60 = vpack.c.bf16 %v7824_v42, %v7823_v31 }
 0x62c   : > { %7185 = vmatmul.mubr.msk.f32.gmra.mrb[72].mxu0 %vm1395_vm6, %v3345_v13  ;;  %v8010_v47 = vpop.eup %8009 }
 0x62d   : > { %7518 = vmatpush3.bf16.msra.mxu0 %v7517_v12  ;;  %7187 = vmatprep.mubr.msk.f32.mxu0 %vm8223_vm2, %v11449_v6  ;;  %v3348_v41 = vmul.f32 %v8010_v47, %v9834_v53  ;;  %v8012_v46 = vpop.eup %8011 }
 0x62e   : > { %7519 = vmatprep.subr.bf16.mxu0 %v11450_v38  ;;  %v3349_v48 = vmul.f32 %v8012_v46, %v9828_v14  ;;  %v3230_v14 = vmul.f32 1.442695, %v3175_v17 }
 0x630   : > { %7188 = vmatmul.mubr.msk.f32.gmra.mrb[74].mxu0 %vm1395_vm6, %v3346_v55  ;;  %v8014_v7 = vpop.eup %8013  ;;  %8015 = vpow2.f32 %v3230_v14 }
 0x631   : > { %7521 = vmatpush3.bf16.msra.mxu0 %v7520_v0  ;;  %7190 = vmatprep.mubr.msk.f32.mxu0 %vm8223_vm2, %v11449_v6  ;;  %v3350_v53 = vmul.f32 %v8014_v7, %v9838_v4 }
 0x632   : > { %7249 = vmatprep.subr.mxu0 %v11449_v6 }
 0x634   : > { %7191 = vmatmul.mubr.msk.f32.gmra.mrb[76].mxu0 %vm1395_vm6, %v3347_v26 }
 0x635   : > { %7250 = vmatpush3.msra.mxu0 %v9907_v16  ;;  %7193 = vmatprep.mubr.msk.f32.mxu0 %vm8223_vm2, %v11449_v6  ;;  %v7830_v16 = vpack.i.bf16 %v2382_v62, %v2381_v51 }
 0x636   : > { %7531 = vmatprep.subr.bf16.mxu0 %v11450_v38 }
 0x637   : > { %3838 = vrot.lane.b32.xlu1 %v2383_v20, %s8227_s25 }
 0x638   : > { %7194 = vmatmul.mubr.msk.f32.gmra.mrb[78].mxu0 %vm1395_vm6, %v3348_v41 }
 0x639   : > { %7196 = vmatprep.mubr.msk.f32.mxu0 %vm8223_vm2, %v11449_v6 }
 0x63a   : > { %v9993_v40 = vpop.eup %8015 }
 0x63b   : > { %v3313_v4 = vsel %vm1395_vm6, %v9993_v40, 0.0 }
 0x63c   : > { %7197 = vmatmul.mubr.msk.f32.gmra.mrb[80].mxu0 %vm1395_vm6, %v3349_v48  ;;  %7831 = vrot.lane.b32.xlu0 %v7830_v16, %s8227_s25 }
 0x63d   : > { %7199 = vmatprep.mubr.msk.f32.mxu0 %vm8223_vm2, %v11449_v6 }
 0x640   : > { %7200 = vmatmul.mubr.msk.f32.gmra.mrb[82].mxu0 %vm1395_vm6, %v3350_v53 }
 0x641   : > { %7251 = vmatprep.mubr.msk.f32.mxu0 %vm8223_vm2, %v11449_v6 }
 0x652   : > { %v3255_v58 = vpop.xlane.xlu1 %3254 }
 0x653   : > { %8017 = vrcp.f32 %v3255_v58 }
 0x656   : > { %v3276_v11 = vpop.xlane.xlu1 %3275 }
 0x657   : > { %8019 = vrcp.f32 %v3276_v11 }
 0x65a   : > { %v3258_v57 = vpop.xlane.xlu1 %3257 }
 0x65b   : > { %8021 = vrcp.f32 %v3258_v57  ;;  %3314 = vadd.xlane.f32.xlu0 %v3313_v4 }
 0x65d   : > { %v8018_v54 = vpop.eup %8017 }
 0x65e   : > { %v3351_v3 = vmul.f32 %v8018_v54, %v9846_v50  ;;  %v3279_v32 = vpop.xlane.xlu1 %3278  ;;  %v7526_v50 = vpack.c.bf16 %v7829_v18, %v7828_v43 }
 0x65f   : > { %8023 = vrcp.f32 %v3279_v32 }
 0x660   : > { %7217 = vmatmul.mubr.msk.f32.vlgmr.msra.gmra.mrb[126].mxu1 %vm1395_vm6, %v3351_v3 }
 0x661   : > { %v8020_v36 = vpop.eup %8019  ;;  %7524 = vmatpush3.bf16.msra.mxu1 %v7523_v60  ;;  %7219 = vmatprep.mubr.msk.f32.mxu1 %vm8223_vm2, %v11449_v6 }
 0x662   : > { %v3358_v5 = vmul.f32 %v8020_v36, %v9852_v10  ;;  %v3261_v63 = vpop.xlane.xlu1 %3260  ;;  %7525 = vmatprep.subr.bf16.mxu1 %v11450_v38 }
 0x663   : > { %8025 = vrcp.f32 %v3261_v63  ;;  %v3267_v12 = vpop.xlane.xlu0 %3266 }
 0x664   : > { %7252 = vmatmul.mubr.msk.f32.vlgmr.msra.gmra.mrb[84].mxu0 %vm1395_vm6, %v3358_v5 }
 0x665   : > { %v8022_v13 = vpop.eup %8021  ;;  %7527 = vmatpush3.bf16.msra.mxu1 %v7526_v50  ;;  %7254 = vmatprep.mubr.msk.f32.mxu0 %vm8223_vm2, %v11449_v6 }
 0x666   : > { %v3282_v35 = vpop.xlane.xlu1 %3281  ;;  %v3352_v39 = vmul.f32 %v8022_v13, %v9857_v29  ;;  %7528 = vmatprep.subr.bf16.mxu1 %v11450_v38 }
 0x667   : > { %8027 = vrcp.f32 %v3282_v35 }
 0x668   : > { %7220 = vmatmul.mubr.msk.f32.gmra.mrb[128].mxu1 %vm1395_vm6, %v3352_v39 }
 0x669   : > { %v8024_v10 = vpop.eup %8023  ;;  %7222 = vmatprep.mubr.msk.f32.mxu1 %vm8223_vm2, %v11449_v6 }
 0x66a   : > { %v3264_v22 = vpop.xlane.xlu1 %3263  ;;  %v3359_v30 = vmul.f32 %v8024_v10, %v9863_v21 }
 0x66b   : > { %8029 = vrcp.f32 %v3264_v22 }
 0x66c   : > { %7255 = vmatmul.mubr.msk.f32.gmra.mrb[86].mxu0 %vm1395_vm6, %v3359_v30  ;;  %8031 = vrcp.f32 %v3267_v12 }
 0x66d   : > { %v8026_v19 = vpop.eup %8025  ;;  %7257 = vmatprep.mubr.msk.f32.mxu0 %vm8223_vm2, %v11449_v6 }
 0x66e   : > { %v3285_v29 = vpop.xlane.xlu1 %3284  ;;  %v3353_v55 = vmul.f32 %v8026_v19, %v9868_v25 }
 0x66f   : > { %8033 = vrcp.f32 %v3285_v29 }
 0x670   : > { %7223 = vmatmul.mubr.msk.f32.gmra.mrb[130].mxu1 %vm1395_vm6, %v3353_v55 }
 0x671   : > { %v8028_v52 = vpop.eup %8027  ;;  %7225 = vmatprep.mubr.msk.f32.mxu1 %vm8223_vm2, %v11449_v6 }
 0x672   : > { %v3288_v0 = vpop.xlane.xlu1 %3287  ;;  %v3360_v21 = vmul.f32 %v8028_v52, %v9878_v49  ;;  %v3273_v47 = vpop.xlane.xlu0 %3272 }
 0x673   : > { %8035 = vrcp.f32 %v3288_v0 }
 0x674   : > { %7258 = vmatmul.mubr.msk.f32.gmra.mrb[88].mxu0 %vm1395_vm6, %v3360_v21 }
 0x675   : > { %v8030_v26 = vpop.eup %8029  ;;  %7260 = vmatprep.mubr.msk.f32.mxu0 %vm8223_vm2, %v11449_v6 }
 0x676   : > { %v3270_v61 = vpop.xlane.xlu1 %3269  ;;  %v3354_v25 = vmul.f32 %v8030_v26, %v9883_v37  ;;  %v8032_v20 = vpop.eup %8031 }
 0x677   : > { %8037 = vrcp.f32 %v3270_v61  ;;  %v3355_v62 = vmul.f32 %v8032_v20, %v9871_v28 }
 0x678   : > { %7226 = vmatmul.mubr.msk.f32.gmra.mrb[132].mxu1 %vm1395_vm6, %v3354_v25  ;;  %8039 = vrcp.f32 %v3273_v47 }
 0x679   : > { %v8034_v8 = vpop.eup %8033  ;;  %7228 = vmatprep.mubr.msk.f32.mxu1 %vm8223_vm2, %v11449_v6 }
 0x67a   : > { %v3291_v49 = vpop.xlane.xlu1 %3290  ;;  %v3361_v41 = vmul.f32 %v8034_v8, %v9887_v44 }
 0x67b   : > { %8041 = vrcp.f32 %v3291_v49 }
 0x67c   : > { %7229 = vmatmul.mubr.msk.f32.gmra.mrb[134].mxu1 %vm1395_vm6, %v3355_v62  ;;  %7261 = vmatmul.mubr.msk.f32.gmra.mrb[90].mxu0 %vm1395_vm6, %v3361_v41 }
 0x67d   : > { %v8036_v37 = vpop.eup %8035  ;;  %7263 = vmatprep.mubr.msk.f32.mxu0 %vm8223_vm2, %v11449_v6  ;;  %7231 = vmatprep.mubr.msk.f32.mxu1 %vm8223_vm2, %v11449_v6 }
 0x67e   : > { %v3362_v56 = vmul.f32 %v8036_v37, %v9891_v33 }
 0x680   : > { %7264 = vmatmul.mubr.msk.f32.gmra.mrb[92].mxu0 %vm1395_vm6, %v3362_v56 }
 0x681   : > { %v8038_v51 = vpop.eup %8037  ;;  %7266 = vmatprep.mubr.msk.f32.mxu0 %vm8223_vm2, %v11449_v6 }
 0x682   : > { %v3356_v28 = vmul.f32 %v8038_v51, %v9899_v23  ;;  %v8040_v44 = vpop.eup %8039 }
 0x683   : > { %v3357_v48 = vmul.f32 %v8040_v44, %v9893_v2 }
 0x684   : > { %7232 = vmatmul.mubr.msk.f32.gmra.mrb[136].mxu1 %vm1395_vm6, %v3356_v28 }
 0x685   : > { %v8042_v46 = vpop.eup %8041  ;;  %7234 = vmatprep.mubr.msk.f32.mxu1 %vm8223_vm2, %v11449_v6 }
 0x686   : > { %v3363_v16 = vmul.f32 %v8042_v46, %v9903_v45 }
 0x688   : > { %7235 = vmatmul.mubr.msk.f32.gmra.mrb[138].mxu1 %vm1395_vm6, %v3357_v48  ;;  %7267 = vmatmul.mubr.msk.f32.gmra.mrb[94].mxu0 %vm1395_vm6, %v3363_v16 }
 0x689   : > { %7269 = vmatprep.mubr.msk.f32.mxu0 %vm8223_vm2, %v11449_v6  ;;  %7286 = vmatprep.mubr.msk.f32.mxu1 %vm8223_vm2, %v11449_v6 }
 0x6a3   : > { %v3297_v33 = vpop.xlane.xlu0 %3296 }
 0x6a7   : > { %v3300_v23 = vpop.xlane.xlu0 %3299 }
 0x6a8   : > { %v3294_v7 = vpop.xlane.xlu1 %3293 }
 0x6a9   : > { %8043 = vrcp.f32 %v3294_v7 }
 0x6aa   : > { %8045 = vrcp.f32 %v3297_v33 }
 0x6ab   : > { %v3303_v53 = vpop.xlane.xlu0 %3302  ;;  %8047 = vrcp.f32 %v3300_v23 }
 0x6ac   : > { %8049 = vrcp.f32 %v3303_v53 }
 0x6af   : > { %v3306_v17 = vpop.xlane.xlu0 %3305 }
 0x6b0   : > { %8051 = vrcp.f32 %v3306_v17 }
 0x6b3   : > { %v8044_v2 = vpop.eup %8043  ;;  %v3309_v14 = vpop.xlane.xlu0 %3308 }
 0x6b4   : > { %v3364_v45 = vmul.f32 %v8044_v2, %v9928_v1  ;;  %v3312_v4 = vpop.xlane.xlu1 %3311  ;;  %v8046_v31 = vpop.eup %8045  ;;  %8053 = vrcp.f32 %v3309_v14 }
 0x6b5   : > { %v3365_v54 = vmul.f32 %v8046_v31, %v9919_v15  ;;  %v8048_v32 = vpop.eup %8047  ;;  %8055 = vrcp.f32 %v3312_v4 }
 0x6b6   : > { %7270 = vmatmul.mubr.msk.f32.gmra.mrb[96].mxu0 %vm1395_vm6, %v3364_v45  ;;  %v3366_v1 = vmul.f32 %v8048_v32, %v9926_v24  ;;  %v8050_v18 = vpop.eup %8049 }
 0x6b7   : > { %v7832_v58 = vpop.permute.xlu0 %7831  ;;  %v3367_v15 = vmul.f32 %v8050_v18, %v9934_v34 }
 0x6b8   : > { %v7834_v11 = vunpack.i.h.bf16 %v7832_v58  ;;  %v7833_v57 = vunpack.i.l.bf16 %v7832_v58  ;;  %v3839_v3 = vpop.permute.xlu1 %3838 }
 0x6ba   : > { %v7529_v42 = vpack.c.bf16 %v7834_v11, %v7833_v57  ;;  %v8052_v43 = vpop.eup %8051 }
 0x6bb   : > { %v3368_v60 = vmul.f32 %v8052_v43, %v9938_v9 }
 0x6bc   : > { %7530 = vmatpush3.bf16.msra.mxu1 %v7529_v42 }
 0x6bd   : > { %7284 = vmatprep.subr.mxu1 %v11449_v6 }
 0x6be   : > { %v8054_v36 = vpop.eup %8053 }
 0x6bf   : > { %v3369_v24 = vmul.f32 %v8054_v36, %v9942_v27  ;;  %v8056_v5 = vpop.eup %8055 }
 0x6c0   : > { %7285 = vmatpush3.msra.mxu1 %v3839_v3  ;;  %v3370_v34 = vmul.f32 %v8056_v5, %v9946_v59 }
 0x6c1   : > { %7287 = vmatmul.mubr.msk.f32.vlgmr.msra.gmra.mrb[140].mxu1 %vm1395_vm6, %v3365_v54 }
 0x6c2   : > { %7289 = vmatprep.mubr.msk.f32.mxu1 %vm8223_vm2, %v11449_v6 }
 0x6c5   : > { %7290 = vmatmul.mubr.msk.f32.gmra.mrb[142].mxu1 %vm1395_vm6, %v3366_v1 }
 0x6c6   : > { %7292 = vmatprep.mubr.msk.f32.mxu1 %vm8223_vm2, %v11449_v6 }
 0x6c9   : > { %7293 = vmatmul.mubr.msk.f32.gmra.mrb[144].mxu1 %vm1395_vm6, %v3367_v15 }
 0x6ca   : > { %7295 = vmatprep.mubr.msk.f32.mxu1 %vm8223_vm2, %v11449_v6 }
 0x6cd   : > { %7296 = vmatmul.mubr.msk.f32.gmra.mrb[146].mxu1 %vm1395_vm6, %v3368_v60 }
 0x6ce   : > { %7298 = vmatprep.mubr.msk.f32.mxu1 %vm8223_vm2, %v11449_v6 }
 0x6d1   : > { %7299 = vmatmul.mubr.msk.f32.gmra.mrb[148].mxu1 %vm1395_vm6, %v3369_v24 }
 0x6d2   : > { %7301 = vmatprep.mubr.msk.f32.mxu1 %vm8223_vm2, %v11449_v6 }
 0x6d5   : > { %7302 = vmatmul.mubr.msk.f32.gmra.mrb[150].mxu1 %vm1395_vm6, %v3370_v34 }
 0x6d6   : > { %7304 = vmatprep.mubr.msk.f32.mxu1 %vm8223_vm2, %v11449_v6 }
 0x6e8   : > { %v3315_v9 = vpop.xlane.xlu0 %3314 }
 0x6e9   : > { %8057 = vrcp.f32 %v3315_v9 }
 0x6f3   : > { %v8058_v63 = vpop.eup %8057 }
 0x6f4   : > { %v3371_v50 = vmul.f32 %v8058_v63, %v9993_v40 }
 0x6f6   : > { %7305 = vmatmul.mubr.msk.f32.gmra.mrb[152].mxu1 %vm1395_vm6, %v3371_v50 }
 0x6fb   : > { %v3487_v27 = vpop.f32.mrb[70].mxu0 }
 0x6fc   : > { %3996 = vrot.lane.b32.xlu1 %v3487_v27, %s8228_s26  ;;  %v7183_v13 = vpop.f32.mrb[71].mxu0 }
 0x6ff   : > { %v3492_v35 = vpop.f32.mrb[72].mxu0 }
 0x700   : > { %3998 = vrot.lane.b32.xlu1 %v3492_v35, %s8228_s26  ;;  %v7186_v59 = vpop.f32.mrb[73].mxu0 }
 0x703   : > { %v3497_v39 = vpop.f32.mrb[74].mxu0 }
 0x704   : > { %4000 = vrot.lane.b32.xlu1 %v3497_v39, %s8228_s26  ;;  %v7189_v6 = vpop.f32.mrb[75].mxu0 }
 0x707   : > { %v3502_v10 = vpop.f32.mrb[76].mxu0 }
 0x708   : > { %4002 = vrot.lane.b32.xlu0 %v3502_v10, %s8228_s26  ;;  %v7192_v12 = vpop.f32.mrb[77].mxu0 }
 0x70b   : > { %v3507_v40 = vpop.f32.mrb[78].mxu0 }
 0x70c   : > { %4004 = vrot.lane.b32.xlu1 %v3507_v40, %s8228_s26  ;;  %v7195_v22 = vpop.f32.mrb[79].mxu0 }
 0x70f   : > { %v3512_v30 = vpop.f32.mrb[80].mxu0 }
 0x710   : > { %4006 = vrot.lane.b32.xlu1 %v3512_v30, %s8228_s26  ;;  %v7198_v19 = vpop.f32.mrb[81].mxu0 }
 0x713   : > { %v3517_v29 = vpop.f32.mrb[82].mxu0 }
 0x714   : > { %4008 = vrot.lane.b32.xlu1 %v3517_v29, %s8228_s26  ;;  %v7201_v55 = vpop.f32.mrb[83].mxu0 }
 0x733   : > { %v3636_v52 = vpop.f32.mrb[126].mxu1 }
 0x734   : > { %v7218_v0 = vpop.f32.mrb[127].mxu1  ;;  %4010 = vrot.lane.b32.xlu1 %v3636_v52, %s8228_s26 }
 0x737   : > { %v3785_v21 = vpop.f32.mrb[84].mxu0 }
 0x738   : > { %v7253_v26 = vpop.f32.mrb[85].mxu0 }
 0x73b   : > { %v3641_v47 = vpop.f32.mrb[128].mxu1 }
 0x73c   : > { %v7221_v61 = vpop.f32.mrb[129].mxu1  ;;  %4012 = vrot.lane.b32.xlu1 %v3641_v47, %s8228_s26  ;;  %v4116_v47 = vld [vmem:[%s11400_s2 + $0x8] sm:$0xff] }
 0x73d   : > { %6310 = vmatprep.mubr.msk.f32.mxu0 %vm4207_vm8, %v4116_v47  ;;  %v4133_v47 = vld [vmem:[%s11400_s2 + $0x90] sm:$0xff] }
 0x73f   : > { %v3790_v25 = vpop.f32.mrb[86].mxu0 }
 0x740   : > { %v7256_v20 = vpop.f32.mrb[87].mxu0 }
 0x743   : > { %v3646_v8 = vpop.f32.mrb[130].mxu1 }
 0x744   : > { %v7224_v49 = vpop.f32.mrb[131].mxu1  ;;  %4014 = vrot.lane.b32.xlu1 %v3646_v8, %s8228_s26 }
 0x747   : > { %v3795_v62 = vpop.f32.mrb[88].mxu0 }
 0x748   : > { %v7259_v41 = vpop.f32.mrb[89].mxu0 }
 0x74b   : > { %v3651_v37 = vpop.f32.mrb[132].mxu1 }
 0x74c   : > { %v7227_v56 = vpop.f32.mrb[133].mxu1  ;;  %4016 = vrot.lane.b32.xlu0 %v3651_v37, %s8228_s26 }
 0x74f   : > { %v3656_v51 = vpop.f32.mrb[134].mxu1  ;;  %v3800_v28 = vpop.f32.mrb[90].mxu0 }
 0x750   : > { %v7230_v44 = vpop.f32.mrb[135].mxu1  ;;  %4018 = vrot.lane.b32.xlu1 %v3656_v51, %s8228_s26  ;;  %v7262_v46 = vpop.f32.mrb[91].mxu0 }
 0x753   : > { %v3805_v48 = vpop.f32.mrb[92].mxu0 }
 0x754   : > { %v7265_v16 = vpop.f32.mrb[93].mxu0 }
 0x757   : > { %v3661_v33 = vpop.f32.mrb[136].mxu1 }
 0x758   : > { %v7233_v23 = vpop.f32.mrb[137].mxu1  ;;  %4020 = vrot.lane.b32.xlu0 %v3661_v33, %s8228_s26 }
 0x75b   : > { %v3666_v7 = vpop.f32.mrb[138].mxu1  ;;  %v3810_v53 = vpop.f32.mrb[94].mxu0 }
 0x75c   : > { %v7236_v17 = vpop.f32.mrb[139].mxu1  ;;  %4022 = vrot.lane.b32.xlu1 %v3666_v7, %s8228_s26  ;;  %4024 = vrot.lane.b32.xlu0 %v3785_v21, %s8228_s26  ;;  %v7268_v2 = vpop.f32.mrb[95].mxu0 }
 0x760   : > { %4026 = vrot.lane.b32.xlu1 %v3790_v25, %s8228_s26  ;;  %4028 = vrot.lane.b32.xlu0 %v3795_v62, %s8228_s26 }
 0x764   : > { %4030 = vrot.lane.b32.xlu1 %v3800_v28, %s8228_s26  ;;  %4032 = vrot.lane.b32.xlu0 %v3805_v48, %s8228_s26 }
 0x768   : > { %4034 = vrot.lane.b32.xlu1 %v3810_v53, %s8228_s26 }
 0x76e   : > { %v3997_v14 = vpop.permute.xlu1 %3996 }
 0x76f   : > { %4081 = vst.msk [vmem:[#allocation3] sm:$0xff] %vm4080_vm7, %v3997_v14 }
 0x772   : > { %v3999_v45 = vpop.permute.xlu1 %3998 }
 0x773   : > { %4082 = vst.msk [vmem:[#allocation3 + $0x8] sm:$0xff] %vm4080_vm7, %v3999_v45 }
 0x776   : > { %v4001_v58 = vpop.permute.xlu1 %4000  ;;  %v4179_v57 = vld [vmem:[#allocation3] sm:$0xff] }
 0x777   : > { %4083 = vst.msk [vmem:[#allocation3 + $0x10] sm:$0xff] %vm4080_vm7, %v4001_v58 }
 0x77a   : > { %v4003_v11 = vpop.permute.xlu0 %4002  ;;  %v4180_v4 = vld [vmem:[#allocation3 + $0x8] sm:$0xff] }
 0x77b   : > { %4084 = vst.msk [vmem:[#allocation3 + $0x18] sm:$0xff] %vm4080_vm7, %v4003_v11  ;;  %v7532_v42 = vpack.c.bf16 %v4180_v4, %v4179_v57 }
 0x77d   : > { %7533 = vmatpush1.bf16.msra.mxu0 %v7532_v42 }
 0x77e   : > { %v4005_v31 = vpop.permute.xlu1 %4004  ;;  %7534 = vmatprep.subr.bf16.mxu0 %v11450_v38  ;;  %v4181_v3 = vld [vmem:[#allocation3 + $0x10] sm:$0xff] }
 0x77f   : > { %4085 = vst.msk [vmem:[#allocation3 + $0x20] sm:$0xff] %vm4080_vm7, %v4005_v31 }
 0x782   : > { %v4007_v54 = vpop.permute.xlu1 %4006  ;;  %v4182_v32 = vld [vmem:[#allocation3 + $0x18] sm:$0xff] }
 0x783   : > { %4086 = vst.msk [vmem:[#allocation3 + $0x28] sm:$0xff] %vm4080_vm7, %v4007_v54  ;;  %v7535_v1 = vpack.c.bf16 %v4182_v32, %v4181_v3 }
 0x785   : > { %7536 = vmatpush1.bf16.msra.mxu0 %v7535_v1 }
 0x786   : > { %v4009_v18 = vpop.permute.xlu1 %4008  ;;  %7537 = vmatprep.subr.bf16.mxu0 %v11450_v38  ;;  %v4183_v60 = vld [vmem:[#allocation3 + $0x20] sm:$0xff] }
 0x787   : > { %4087 = vst.msk [vmem:[#allocation3 + $0x30] sm:$0xff] %vm4080_vm7, %v4009_v18 }
 0x789   : > { %v3815_v15 = vpop.f32.mrb[96].mxu0 }
 0x78a   : > { %4036 = vrot.lane.b32.xlu0 %v3815_v15, %s8228_s26  ;;  %v7271_v43 = vpop.f32.mrb[97].mxu0  ;;  %v4184_v36 = vld [vmem:[#allocation3 + $0x28] sm:$0xff] }
 0x78b   : > { %v7538_v24 = vpack.c.bf16 %v4184_v36, %v4183_v60 }
 0x78d   : > { %7539 = vmatpush1.bf16.msra.mxu0 %v7538_v24 }
 0x78e   : > { %7540 = vmatprep.subr.bf16.mxu0 %v11450_v38  ;;  %v4185_v22 = vld [vmem:[#allocation3 + $0x30] sm:$0xff] }
 0x794   : > { %v3934_v5 = vpop.f32.mrb[140].mxu1 }
 0x795   : > { %v7288_v34 = vpop.f32.mrb[141].mxu1  ;;  %4038 = vrot.lane.b32.xlu1 %v3934_v5, %s8228_s26 }
 0x798   : > { %v3939_v9 = vpop.f32.mrb[142].mxu1 }
 0x799   : > { %v7291_v63 = vpop.f32.mrb[143].mxu1  ;;  %4040 = vrot.lane.b32.xlu0 %v3939_v9, %s8228_s26 }
 0x79c   : > { %v3944_v50 = vpop.f32.mrb[144].mxu1 }
 0x79d   : > { %v7294_v27 = vpop.f32.mrb[145].mxu1  ;;  %4042 = vrot.lane.b32.xlu1 %v3944_v50, %s8228_s26 }
 0x7a0   : > { %v3949_v13 = vpop.f32.mrb[146].mxu1 }
 0x7a1   : > { %v7297_v35 = vpop.f32.mrb[147].mxu1  ;;  %4044 = vrot.lane.b32.xlu0 %v3949_v13, %s8228_s26  ;;  %v4115_v13 = vld [vmem:[%s11400_s2] sm:$0xff] }
 0x7a2   : > { %v4118_v35 = vld [vmem:[%s11400_s2 + $0x18] sm:$0xff] }
 0x7a4   : > { %v3954_v59 = vpop.f32.mrb[148].mxu1 }
 0x7a5   : > { %v7300_v39 = vpop.f32.mrb[149].mxu1  ;;  %4046 = vrot.lane.b32.xlu1 %v3954_v59, %s8228_s26  ;;  %v4120_v59 = vld [vmem:[%s11400_s2 + $0x28] sm:$0xff] }
 0x7a6   : > { %v4011_v6 = vpop.permute.xlu1 %4010  ;;  %v4119_v39 = vld [vmem:[%s11400_s2 + $0x20] sm:$0xff] }
 0x7a7   : > { %4088 = vst.msk [vmem:[#allocation3 + $0x38] sm:$0xff] %vm4080_vm7, %v4011_v6  ;;  %v4122_v6 = vld [vmem:[%s11400_s2 + $0x38] sm:$0xff] }
 0x7a8   : > { %v3959_v10 = vpop.f32.mrb[150].mxu1 }
 0x7a9   : > { %v7303_v12 = vpop.f32.mrb[151].mxu1  ;;  %4048 = vrot.lane.b32.xlu0 %v3959_v10, %s8228_s26  ;;  %v4121_v10 = vld [vmem:[%s11400_s2 + $0x30] sm:$0xff] }
 0x7aa   : > { %v4124_v12 = vld [vmem:[%s11400_s2 + $0x48] sm:$0xff] }
 0x7ae   : > { %v4013_v40 = vpop.permute.xlu1 %4012  ;;  %v4186_v30 = vld [vmem:[#allocation3 + $0x38] sm:$0xff] }
 0x7af   : > { %4089 = vst.msk [vmem:[#allocation3 + $0x40] sm:$0xff] %vm4080_vm7, %v4013_v40  ;;  %v7541_v19 = vpack.c.bf16 %v4186_v30, %v4185_v22  ;;  %v4123_v40 = vld [vmem:[%s11400_s2 + $0x40] sm:$0xff]  ;;  %v4126_v22 = vld [vmem:[%s11400_s2 + $0x58] sm:$0xff]  ;;  %v4125_v30 = vld [vmem:[%s11400_s2 + $0x50] sm:$0xff] }
 0x7b1   : > { %7542 = vmatpush1.bf16.msra.mxu0 %v7541_v19  ;;  %v4128_v19 = vld [vmem:[%s11400_s2 + $0x68] sm:$0xff] }
 0x7b2   : > { %7543 = vmatprep.subr.bf16.mxu0 %v11450_v38 }
 0x7b6   : > { %v4015_v29 = vpop.permute.xlu1 %4014  ;;  %v4187_v52 = vld [vmem:[#allocation3 + $0x40] sm:$0xff] }
 0x7b7   : > { %4090 = vst.msk [vmem:[#allocation3 + $0x48] sm:$0xff] %vm4080_vm7, %v4015_v29  ;;  %v4127_v29 = vld [vmem:[%s11400_s2 + $0x60] sm:$0xff] }
 0x7be   : > { %v4017_v55 = vpop.permute.xlu0 %4016  ;;  %v4188_v0 = vld [vmem:[#allocation3 + $0x48] sm:$0xff] }
 0x7bf   : > { %4091 = vst.msk [vmem:[#allocation3 + $0x50] sm:$0xff] %vm4080_vm7, %v4017_v55  ;;  %v7544_v21 = vpack.c.bf16 %v4188_v0, %v4187_v52  ;;  %v4130_v55 = vld [vmem:[%s11400_s2 + $0x78] sm:$0xff]  ;;  %v4129_v52 = vld [vmem:[%s11400_s2 + $0x70] sm:$0xff]  ;;  %v4132_v0 = vld [vmem:[%s11400_s2 + $0x88] sm:$0xff] }
 0x7c1   : > { %7545 = vmatpush1.bf16.msra.mxu0 %v7544_v21  ;;  %v4131_v21 = vld [vmem:[%s11400_s2 + $0x80] sm:$0xff] }
 0x7c2   : > { %v4019_v26 = vpop.permute.xlu1 %4018  ;;  %7546 = vmatprep.subr.bf16.mxu0 %v11450_v38 }
 0x7c3   : > { %4092 = vst.msk [vmem:[#allocation3 + $0x58] sm:$0xff] %vm4080_vm7, %v4019_v26  ;;  %v4134_v26 = vld [vmem:[%s11400_s2 + $0x98] sm:$0xff] }
 0x7c6   : > { %v4189_v8 = vld [vmem:[#allocation3 + $0x50] sm:$0xff] }
 0x7c9   : > { %v3964_v61 = vpop.f32.mrb[152].mxu1 }
 0x7ca   : > { %v7306_v25 = vpop.f32.mrb[153].mxu1  ;;  %v4021_v20 = vpop.permute.xlu0 %4020  ;;  %4050 = vrot.lane.b32.xlu1 %v3964_v61, %s8228_s26  ;;  %v4190_v49 = vld [vmem:[#allocation3 + $0x58] sm:$0xff]  ;;  %v4136_v61 = vld [vmem:[%s11400_s2 + $0xa8] sm:$0xff] }
 0x7cb   : > { %4093 = vst.msk [vmem:[#allocation3 + $0x60] sm:$0xff] %vm4080_vm7, %v4021_v20  ;;  %v7547_v62 = vpack.c.bf16 %v4190_v49, %v4189_v8  ;;  %v4135_v25 = vld [vmem:[%s11400_s2 + $0xa0] sm:$0xff]  ;;  %v4138_v20 = vld [vmem:[%s11400_s2 + $0xb8] sm:$0xff]  ;;  %v4137_v8 = vld [vmem:[%s11400_s2 + $0xb0] sm:$0xff] }
 0x7cc   : > { %v4140_v49 = vld [vmem:[%s11400_s2 + $0xc8] sm:$0xff] }
 0x7cd   : > { %7548 = vmatpush1.bf16.msra.mxu0 %v7547_v62  ;;  %v4139_v62 = vld [vmem:[%s11400_s2 + $0xc0] sm:$0xff] }
 0x7ce   : > { %v4023_v41 = vpop.permute.xlu1 %4022  ;;  %v4025_v37 = vpop.permute.xlu0 %4024  ;;  %7549 = vmatprep.subr.bf16.mxu0 %v11450_v38 }
 0x7cf   : > { %4094 = vst.msk [vmem:[#allocation3 + $0x68] sm:$0xff] %vm4080_vm7, %v4023_v41  ;;  %4095 = vst.msk [vmem:[#allocation3 + $0x70] sm:$0xff] %vm4080_vm7, %v4025_v37  ;;  %v4142_v41 = vld [vmem:[%s11400_s2 + $0xd8] sm:$0xff]  ;;  %v4141_v37 = vld [vmem:[%s11400_s2 + $0xd0] sm:$0xff] }
 0x7d2   : > { %v4027_v56 = vpop.permute.xlu1 %4026  ;;  %v4029_v51 = vpop.permute.xlu0 %4028  ;;  %v4191_v46 = vld [vmem:[#allocation3 + $0x60] sm:$0xff] }
 0x7d3   : > { %4096 = vst.msk [vmem:[#allocation3 + $0x78] sm:$0xff] %vm4080_vm7, %v4027_v56  ;;  %4097 = vst.msk [vmem:[#allocation3 + $0x80] sm:$0xff] %vm4080_vm7, %v4029_v51  ;;  %v4144_v56 = vld [vmem:[%s11400_s2 + $0xe8] sm:$0xff]  ;;  %v4143_v51 = vld [vmem:[%s11400_s2 + $0xe0] sm:$0xff] }
 0x7d6   : > { %v4031_v28 = vpop.permute.xlu1 %4030  ;;  %v4033_v44 = vpop.permute.xlu0 %4032  ;;  %v4192_v48 = vld [vmem:[#allocation3 + $0x68] sm:$0xff]  ;;  %v4193_v23 = vld [vmem:[#allocation3 + $0x70] sm:$0xff] }
 0x7d7   : > { %4098 = vst.msk [vmem:[#allocation3 + $0x88] sm:$0xff] %vm4080_vm7, %v4031_v28  ;;  %4099 = vst.msk [vmem:[#allocation3 + $0x90] sm:$0xff] %vm4080_vm7, %v4033_v44  ;;  %v7550_v16 = vpack.c.bf16 %v4192_v48, %v4191_v46  ;;  %v4146_v28 = vld [vmem:[%s11400_s2 + $0xf8] sm:$0xff]  ;;  %v4145_v44 = vld [vmem:[%s11400_s2 + $0xf0] sm:$0xff] }
 0x7d8   : > { %v4148_v46 = vld [vmem:[%s11400_s2 + $0x108] sm:$0xff]  ;;  %v4147_v48 = vld [vmem:[%s11400_s2 + $0x100] sm:$0xff] }
 0x7d9   : > { %7551 = vmatpush1.bf16.msra.mxu0 %v7550_v16  ;;  %v4150_v16 = vld [vmem:[%s11400_s2 + $0x118] sm:$0xff] }
 0x7da   : > { %v4035_v33 = vpop.permute.xlu1 %4034  ;;  %7552 = vmatprep.subr.bf16.mxu0 %v11450_v38  ;;  %v4194_v7 = vld [vmem:[#allocation3 + $0x78] sm:$0xff]  ;;  %v4195_v17 = vld [vmem:[#allocation3 + $0x80] sm:$0xff] }
 0x7db   : > { %4100 = vst.msk [vmem:[#allocation3 + $0x98] sm:$0xff] %vm4080_vm7, %v4035_v33  ;;  %v7553_v53 = vpack.c.bf16 %v4194_v7, %v4193_v23  ;;  %v4149_v33 = vld [vmem:[%s11400_s2 + $0x110] sm:$0xff]  ;;  %v4152_v23 = vld [vmem:[%s11400_s2 + $0x128] sm:$0xff]  ;;  %v4151_v7 = vld [vmem:[%s11400_s2 + $0x120] sm:$0xff] }
 0x7dd   : > { %7554 = vmatpush1.bf16.msra.mxu0 %v7553_v53  ;;  %v4154_v53 = vld [vmem:[%s11400_s2 + $0x138] sm:$0xff] }
 0x7de   : > { %7555 = vmatprep.subr.bf16.mxu0 %v11450_v38  ;;  %v4196_v2 = vld [vmem:[#allocation3 + $0x88] sm:$0xff]  ;;  %v4197_v45 = vld [vmem:[#allocation3 + $0x90] sm:$0xff] }
 0x7df   : > { %v7556_v14 = vpack.c.bf16 %v4196_v2, %v4195_v17  ;;  %v4153_v17 = vld [vmem:[%s11400_s2 + $0x130] sm:$0xff]  ;;  %v4156_v2 = vld [vmem:[%s11400_s2 + $0x148] sm:$0xff] }
 0x7e1   : > { %7557 = vmatpush1.bf16.msra.mxu0 %v7556_v14  ;;  %v4155_v14 = vld [vmem:[%s11400_s2 + $0x140] sm:$0xff] }
 0x7e2   : > { %7558 = vmatprep.subr.bf16.mxu0 %v11450_v38  ;;  %v4198_v58 = vld [vmem:[#allocation3 + $0x98] sm:$0xff] }
 0x7e3   : > { %v7559_v11 = vpack.c.bf16 %v4198_v58, %v4197_v45  ;;  %v4158_v45 = vld [vmem:[%s11400_s2 + $0x158] sm:$0xff]  ;;  %v4157_v58 = vld [vmem:[%s11400_s2 + $0x150] sm:$0xff] }
 0x7e5   : > { %7560 = vmatpush1.bf16.msra.mxu0 %v7559_v11  ;;  %v4160_v11 = vld [vmem:[%s11400_s2 + $0x168] sm:$0xff] }
 0x7e6   : > { %7561 = vmatprep.subr.bf16.mxu0 %v11450_v38 }
 0x7fc   : > { %v4037_v57 = vpop.permute.xlu0 %4036 }
 0x7fd   : > { %4101 = vst.msk [vmem:[#allocation3 + $0xa0] sm:$0xff] %vm4080_vm7, %v4037_v57  ;;  %v4159_v57 = vld [vmem:[%s11400_s2 + $0x160] sm:$0xff] }
 0x804   : > { %v4199_v54 = vld [vmem:[#allocation3 + $0xa0] sm:$0xff] }
 0x807   : > { %v4039_v4 = vpop.permute.xlu1 %4038 }
 0x808   : > { %4102 = vst.msk [vmem:[#allocation3 + $0xa8] sm:$0xff] %vm4080_vm7, %v4039_v4  ;;  %v4162_v4 = vld [vmem:[%s11400_s2 + $0x178] sm:$0xff] }
 0x80b   : > { %v4041_v42 = vpop.permute.xlu0 %4040 }
 0x80c   : > { %4103 = vst.msk [vmem:[#allocation3 + $0xb0] sm:$0xff] %vm4080_vm7, %v4041_v42  ;;  %v4161_v42 = vld [vmem:[%s11400_s2 + $0x170] sm:$0xff] }
 0x80f   : > { %v4043_v31 = vpop.permute.xlu1 %4042  ;;  %v4200_v3 = vld [vmem:[#allocation3 + $0xa8] sm:$0xff] }
 0x810   : > { %4104 = vst.msk [vmem:[#allocation3 + $0xb8] sm:$0xff] %vm4080_vm7, %v4043_v31  ;;  %v7562_v32 = vpack.c.bf16 %v4200_v3, %v4199_v54  ;;  %v4164_v31 = vld [vmem:[%s11400_s2 + $0x188] sm:$0xff]  ;;  %v4163_v54 = vld [vmem:[%s11400_s2 + $0x180] sm:$0xff]  ;;  %v4166_v3 = vld [vmem:[%s11400_s2 + $0x198] sm:$0xff] }
 0x812   : > { %7563 = vmatpush1.bf16.msra.mxu0 %v7562_v32  ;;  %v4165_v32 = vld [vmem:[%s11400_s2 + $0x190] sm:$0xff] }
 0x813   : > { %v4045_v1 = vpop.permute.xlu0 %4044  ;;  %7564 = vmatprep.subr.bf16.mxu0 %v11450_v38  ;;  %v4201_v15 = vld [vmem:[#allocation3 + $0xb0] sm:$0xff] }
 0x814   : > { %4105 = vst.msk [vmem:[#allocation3 + $0xc0] sm:$0xff] %vm4080_vm7, %v4045_v1  ;;  %v4168_v1 = vld [vmem:[%s11400_s2 + $0x1a8] sm:$0xff] }
 0x817   : > { %v4047_v18 = vpop.permute.xlu1 %4046  ;;  %v4202_v43 = vld [vmem:[#allocation3 + $0xb8] sm:$0xff] }
 0x818   : > { %4106 = vst.msk [vmem:[#allocation3 + $0xc8] sm:$0xff] %vm4080_vm7, %v4047_v18  ;;  %v7565_v60 = vpack.c.bf16 %v4202_v43, %v4201_v15  ;;  %v4167_v18 = vld [vmem:[%s11400_s2 + $0x1a0] sm:$0xff]  ;;  %v4170_v15 = vld [vmem:[%s11400_s2 + $0x1b8] sm:$0xff]  ;;  %v4169_v43 = vld [vmem:[%s11400_s2 + $0x1b0] sm:$0xff] }
 0x81a   : > { %7566 = vmatpush1.bf16.msra.mxu0 %v7565_v60  ;;  %v4172_v60 = vld [vmem:[%s11400_s2 + $0x1c8] sm:$0xff] }
 0x81b   : > { %v4049_v36 = vpop.permute.xlu0 %4048  ;;  %7567 = vmatprep.subr.bf16.mxu0 %v11450_v38  ;;  %v4203_v24 = vld [vmem:[#allocation3 + $0xc0] sm:$0xff] }
 0x81c   : > { %4107 = vst.msk [vmem:[#allocation3 + $0xd0] sm:$0xff] %vm4080_vm7, %v4049_v36  ;;  %v4171_v36 = vld [vmem:[%s11400_s2 + $0x1c0] sm:$0xff] }
 0x81f   : > { %v4204_v5 = vld [vmem:[#allocation3 + $0xc8] sm:$0xff] }
 0x820   : > { %v7568_v34 = vpack.c.bf16 %v4204_v5, %v4203_v24  ;;  %v4174_v24 = vld [vmem:[%s11400_s2 + $0x1d8] sm:$0xff]  ;;  %v4173_v5 = vld [vmem:[%s11400_s2 + $0x1d0] sm:$0xff] }
 0x822   : > { %7569 = vmatpush1.bf16.msra.mxu0 %v7568_v34  ;;  %v4176_v34 = vld [vmem:[%s11400_s2 + $0x1e8] sm:$0xff] }
 0x823   : > { %7570 = vmatprep.subr.bf16.mxu0 %v11450_v38  ;;  %v4205_v63 = vld [vmem:[#allocation3 + $0xd0] sm:$0xff] }
 0x824   : > { %v4117_v38 = vld [vmem:[%s11400_s2 + $0x10] sm:$0xff] }
 0x83c   : > { %v4051_v9 = vpop.permute.xlu1 %4050 }
 0x83d   : > { %4108 = vst.msk [vmem:[#allocation3 + $0xd8] sm:$0xff] %vm4080_vm7, %v4051_v9  ;;  %v4175_v9 = vld [vmem:[%s11400_s2 + $0x1e0] sm:$0xff] }
 0x844   : > { %v4206_v50 = vld [vmem:[#allocation3 + $0xd8] sm:$0xff] }
 0x845   : > { %v7571_v27 = vpack.c.bf16 %v4206_v50, %v4205_v63  ;;  %v4178_v63 = vld [vmem:[%s11400_s2 + $0x1f8] sm:$0xff]  ;;  %v4177_v50 = vld [vmem:[%s11400_s2 + $0x1f0] sm:$0xff] }
 0x847   : > { %7572 = vmatpush1.bf16.msra.mxu0 %v7571_v27  ;;  %v5617_v27 = vld [vmem:[%s11406_s8] sm:$0xff] }
 0x84a   : > { %4369 = vmatmul.mubr.f32.vlgmr.msra.gmra.mrb[98].mxu0 %v4115_v13  ;;  %v5618_v13 = vld [vmem:[%s11406_s8 + $0x8] sm:$0xff] }
 0x84b   : > { %6311 = vmatprep.mubr.msk.f32.mxu0 %vm4207_vm8, %v4118_v35  ;;  %v7573_v35 = vpack.c.bf16 %v5618_v13, %v5617_v27 }
 0x84d   : > { %7574 = vmatprep.subr.bf16.mxu1 %v7573_v35 }
 0x84e   : > { %4374 = vmatmul.mubr.f32.gmra.mrb[100].mxu0 %v4117_v38  ;;  %7576 = vmatpush3.bf16.msra.mxu1 %v7573_v35  ;;  %v11471_v38 = vlaneseq }
 0x84f   : > { %6312 = vmatprep.mubr.msk.f32.mxu0 %vm4207_vm8, %v4120_v59 }
 0x850   : > { %v4596_v59 = vshrl.u32 %v11471_v38, 7 }
 0x852   : > { %4379 = vmatmul.mubr.f32.gmra.mrb[102].mxu0 %v4119_v39  ;;  %v4597_v39 = vsub.s32 0, %v4596_v59 }
 0x853   : > { %6313 = vmatprep.mubr.msk.f32.mxu0 %vm4207_vm8, %v4122_v6  ;;  %v4697_v6 = vsub.s32 1, %v4596_v59 }
 0x856   : > { %4384 = vmatmul.mubr.f32.gmra.mrb[104].mxu0 %v4121_v10  ;;  %v4561_v10 = vld [vmem:[%s11403_s5] sm:$0xff] }
 0x857   : > { %6314 = vmatprep.mubr.msk.f32.mxu0 %vm4207_vm8, %v4124_v12  ;;  %v10387_v12 = vrot.slane %v4561_v10, %v4597_v39 }
 0x85a   : > { %4389 = vmatmul.mubr.f32.gmra.mrb[106].mxu0 %v4123_v40  ;;  %v10389_v40 = vrot.slane %v4561_v10, %v4697_v6 }
 0x85b   : > { %6315 = vmatprep.mubr.msk.f32.mxu0 %vm4207_vm8, %v4126_v22  ;;  %v4797_v22 = vsub.s32 2, %v4596_v59 }
 0x85e   : > { %4394 = vmatmul.mubr.f32.gmra.mrb[108].mxu0 %v4125_v30  ;;  %v4563_v30 = vld [vmem:[#allocation4 + $0x7] sm:$0xff] }
 0x85f   : > { %6316 = vmatprep.mubr.msk.f32.mxu0 %vm4207_vm8, %v4128_v19  ;;  %v4663_v19 = vld [vmem:[#allocation4 + $0x8] sm:$0xff] }
 0x862   : > { %4399 = vmatmul.mubr.f32.gmra.mrb[110].mxu0 %v4127_v29  ;;  %v4599_v29 = vmul.f32 %v10387_v12, %v4563_v30  ;;  %v10438_v30 = vld [vmem:[%s11403_s5 + $0x8] ss:$0 sm:$0xff] }
 0x863   : > { %6317 = vmatprep.mubr.msk.f32.mxu0 %vm4207_vm8, %v4130_v55  ;;  %v4699_v55 = vmul.f32 %v10389_v40, %v4663_v19 }
 0x866   : > { %4404 = vmatmul.mubr.f32.gmra.mrb[112].mxu0 %v4129_v52  ;;  %v10393_v52 = vrot.slane %v4561_v10, %v4797_v22 }
 0x867   : > { %6318 = vmatprep.mubr.msk.f32.mxu0 %vm4207_vm8, %v4132_v0 }
 0x86a   : > { %4409 = vmatmul.mubr.f32.gmra.mrb[114].mxu0 %v4131_v21  ;;  %v4763_v21 = vld [vmem:[#allocation4 + $0x9] sm:$0xff] }
 0x86b   : > { %6319 = vmatprep.mubr.msk.f32.mxu0 %vm4207_vm8, %v4134_v26 }
 0x86e   : > { %4414 = vmatmul.mubr.f32.gmra.mrb[116].mxu0 %v4133_v47  ;;  %v4867_v47 = vsub.s32 3, %v4596_v59 }
 0x86f   : > { %6320 = vmatprep.mubr.msk.f32.mxu0 %vm4207_vm8, %v4136_v61  ;;  %v4731_v61 = vadd.f32 %v4699_v55, %v4599_v29 }
 0x872   : > { %4419 = vmatmul.mubr.f32.gmra.mrb[118].mxu0 %v4135_v25  ;;  %v4799_v25 = vmul.f32 %v10393_v52, %v4763_v21 }
 0x873   : > { %6321 = vmatprep.mubr.msk.f32.mxu0 %vm4207_vm8, %v4138_v20  ;;  %v4937_v20 = vsub.s32 4, %v4596_v59 }
 0x876   : > { %4424 = vmatmul.mubr.f32.gmra.mrb[120].mxu0 %v4137_v8  ;;  %v4564_v8 = vld [vmem:[#allocation4 + $0xf] sm:$0xff] }
 0x877   : > { %6322 = vmatprep.mubr.msk.f32.mxu0 %vm4207_vm8, %v4140_v49  ;;  %v4664_v49 = vld [vmem:[#allocation4 + $0x10] sm:$0xff] }
 0x87a   : > { %4429 = vmatmul.mubr.f32.gmra.mrb[122].mxu0 %v4139_v62 }
 0x87b   : > { %6323 = vmatprep.mubr.msk.f32.mxu0 %vm4207_vm8, %v4142_v41 }
 0x87e   : > { %4434 = vmatmul.mubr.f32.gmra.mrb[124].mxu0 %v4141_v37  ;;  %v10398_v37 = vrot.slane %v4561_v10, %v4867_v47 }
 0x87f   : > { %6324 = vmatprep.mubr.msk.f32.mxu0 %vm4207_vm8, %v4144_v56  ;;  %v5007_v56 = vsub.s32 5, %v4596_v59 }
 0x882   : > { %4439 = vmatmul.mubr.f32.gmra.mrb[126].mxu0 %v4143_v51  ;;  %v4600_v51 = vmul.f32 %v10387_v12, %v4564_v8 }
 0x883   : > { %6325 = vmatprep.mubr.msk.f32.mxu0 %vm4207_vm8, %v4146_v28  ;;  %v4700_v28 = vmul.f32 %v10389_v40, %v4664_v49 }
 0x886   : > { %4444 = vmatmul.mubr.f32.gmra.mrb[128].mxu0 %v4145_v44  ;;  %v4831_v44 = vadd.f32 %v4799_v25, %v4731_v61 }
 0x887   : > { %6326 = vmatprep.mubr.msk.f32.mxu0 %vm4207_vm8, %v4148_v46  ;;  %v10402_v46 = vrot.slane %v4561_v10, %v4937_v20 }
 0x88a   : > { %4449 = vmatmul.mubr.f32.gmra.mrb[130].mxu0 %v4147_v48 }
 0x88b   : > { %6327 = vmatprep.mubr.msk.f32.mxu0 %vm4207_vm8, %v4150_v16 }
 0x88e   : > { %4454 = vmatmul.mubr.f32.gmra.mrb[132].mxu0 %v4149_v33 }
 0x88f   : > { %6328 = vmatprep.mubr.msk.f32.mxu0 %vm4207_vm8, %v4152_v23 }
 0x892   : > { %4459 = vmatmul.mubr.f32.gmra.mrb[134].mxu0 %v4151_v7 }
 0x893   : > { %6329 = vmatprep.mubr.msk.f32.mxu0 %vm4207_vm8, %v4154_v53 }
 0x896   : > { %4464 = vmatmul.mubr.f32.gmra.mrb[136].mxu0 %v4153_v17  ;;  %v10408_v17 = vrot.slane %v4561_v10, %v5007_v56 }
 0x897   : > { %6330 = vmatprep.mubr.msk.f32.mxu0 %vm4207_vm8, %v4156_v2  ;;  %v5077_v2 = vsub.s32 6, %v4596_v59 }
 0x89a   : > { %4469 = vmatmul.mubr.f32.gmra.mrb[138].mxu0 %v4155_v14  ;;  %v5147_v14 = vsub.s32 7, %v4596_v59 }
 0x89b   : > { %6331 = vmatprep.mubr.msk.f32.mxu0 %vm4207_vm8, %v4158_v45  ;;  %v4732_v45 = vadd.f32 %v4700_v28, %v4600_v51 }
 0x89e   : > { %4474 = vmatmul.mubr.f32.gmra.mrb[140].mxu0 %v4157_v58 }
 0x89f   : > { %6332 = vmatprep.mubr.msk.f32.mxu0 %vm4207_vm8, %v4160_v11 }
 0x8a2   : > { %4479 = vmatmul.mubr.f32.gmra.mrb[142].mxu0 %v4159_v57 }
 0x8a3   : > { %6333 = vmatprep.mubr.msk.f32.mxu0 %vm4207_vm8, %v4162_v4 }
 0x8a6   : > { %4484 = vmatmul.mubr.f32.gmra.mrb[144].mxu0 %v4161_v42 }
 0x8a7   : > { %6334 = vmatprep.mubr.msk.f32.mxu0 %vm4207_vm8, %v4164_v31 }
 0x8aa   : > { %4489 = vmatmul.mubr.f32.gmra.mrb[146].mxu0 %v4163_v54 }
 0x8ab   : > { %6335 = vmatprep.mubr.msk.f32.mxu0 %vm4207_vm8, %v4166_v3 }
 0x8ae   : > { %4494 = vmatmul.mubr.f32.gmra.mrb[148].mxu0 %v4165_v32 }
 0x8af   : > { %6336 = vmatprep.mubr.msk.f32.mxu0 %vm4207_vm8, %v4168_v1 }
 0x8b2   : > { %4499 = vmatmul.mubr.f32.gmra.mrb[150].mxu0 %v4167_v18 }
 0x8b3   : > { %6337 = vmatprep.mubr.msk.f32.mxu0 %vm4207_vm8, %v4170_v15 }
 0x8b6   : > { %4504 = vmatmul.mubr.f32.gmra.mrb[152].mxu0 %v4169_v43 }
 0x8b7   : > { %6338 = vmatprep.mubr.msk.f32.mxu0 %vm4207_vm8, %v4172_v60  ;;  %v10421_v60 = vrot.slane %v4561_v10, %v5077_v2 }
 0x8ba   : > { %4509 = vmatmul.mubr.f32.gmra.mrb[154].mxu0 %v4171_v36 }
 0x8bb   : > { %6339 = vmatprep.mubr.msk.f32.mxu0 %vm4207_vm8, %v4174_v24 }
 0x8be   : > { %4514 = vmatmul.mubr.f32.gmra.mrb[156].mxu0 %v4173_v5 }
 0x8bf   : > { %6340 = vmatprep.mubr.msk.f32.mxu0 %vm4207_vm8, %v4176_v34  ;;  %v10424_v34 = vrot.slane %v4561_v10, %v5147_v14  ;;  %v10460_v14 = vld [vmem:[%s11404_s6] ss:$0 sm:$0xff] }
 0x8c2   : > { %4519 = vmatmul.mubr.f32.gmra.mrb[158].mxu0 %v4175_v9 }
 0x8c3   : > { %6341 = vmatprep.mubr.msk.f32.mxu0 %vm4207_vm8, %v4178_v63 }
 0x8c6   : > { %4524 = vmatmul.mubr.f32.gmra.mrb[160].mxu0 %v4177_v50 }
 0x91d   : > { %v4370_v0 = vpop.f32.mrb[98].mxu0 }
 0x91e   : > { %4529 = vst.msk [vmem:[#allocation4 + $0x18] sm:$0xff] %vm390_vm0, %v4370_v0  ;;  %v4372_v26 = vpop.f32.mrb[99].mxu0 }
 0x921   : > { %v4375_v62 = vpop.f32.mrb[100].mxu0 }
 0x922   : > { %4530 = vst.msk [vmem:[#allocation4 + $0x20] sm:$0xff] %vm390_vm0, %v4375_v62  ;;  %v4377_v41 = vpop.f32.mrb[101].mxu0 }
 0x925   : > { %v4380_v48 = vpop.f32.mrb[102].mxu0  ;;  %v4565_v16 = vld [vmem:[#allocation4 + $0x17] sm:$0xff] }
 0x926   : > { %v10404_v33 = vld [vmem:[#allocation4 + $0x18] sm:$0xff]  ;;  %4531 = vst.msk [vmem:[#allocation4 + $0x28] sm:$0xff] %vm390_vm0, %v4380_v48  ;;  %v4382_v7 = vpop.f32.mrb[103].mxu0  ;;  %v4869_v53 = vmul.f32 %v10398_v37, %v4565_v16  ;;  %v4601_v11 = vmul.f32 %v10387_v12, %v4565_v16 }
 0x927   : > { %v4764_v23 = vld [vmem:[#allocation4 + $0x11] sm:$0xff]  ;;  %v4701_v57 = vmul.f32 %v10389_v40, %v10404_v33  ;;  %v4939_v42 = vmul.f32 %v10402_v46, %v10404_v33 }
 0x928   : > { %v4800_v58 = vmul.f32 %v10393_v52, %v4764_v23  ;;  %v4901_v4 = vadd.f32 %v4869_v53, %v4831_v44 }
 0x929   : > { %v4385_v31 = vpop.f32.mrb[104].mxu0  ;;  %v4765_v54 = vld [vmem:[#allocation4 + $0x19] sm:$0xff]  ;;  %v4733_v5 = vadd.f32 %v4701_v57, %v4601_v11 }
 0x92a   : > { %v4566_v3 = vld [vmem:[#allocation4 + $0x1f] sm:$0xff]  ;;  %4532 = vst.msk [vmem:[#allocation4 + $0x30] sm:$0xff] %vm390_vm0, %v4385_v31  ;;  %v4387_v32 = vpop.f32.mrb[105].mxu0  ;;  %v4801_v1 = vmul.f32 %v10393_v52, %v4765_v54  ;;  %v4971_v18 = vadd.f32 %v4939_v42, %v4901_v4  ;;  %v5009_v15 = vmul.f32 %v10408_v17, %v4765_v54  ;;  %v4832_v36 = vadd.f32 %v4800_v58, %v4732_v45 }
 0x92b   : > { %v10419_v43 = vld [vmem:[#allocation4 + $0x20] sm:$0xff]  ;;  %v4870_v24 = vmul.f32 %v10398_v37, %v4566_v3  ;;  %v4602_v27 = vmul.f32 %v10387_v12, %v4566_v3 }
 0x92c   : > { %v4702_v13 = vmul.f32 %v10389_v40, %v10419_v43  ;;  %v4940_v59 = vmul.f32 %v10402_v46, %v10419_v43  ;;  %v4833_v6 = vadd.f32 %v4801_v1, %v4733_v5  ;;  %v5041_v22 = vadd.f32 %v5009_v15, %v4971_v18  ;;  %v10473_v15 = vld [vmem:[%s11405_s7] ss:$0 sm:$0xff] }
 0x92d   : > { %v4390_v9 = vpop.f32.mrb[106].mxu0  ;;  %v4567_v63 = vld [vmem:[#allocation4 + $0x27] sm:$0xff]  ;;  %v4902_v38 = vadd.f32 %v4870_v24, %v4832_v36 }
 0x92e   : > { %v10426_v50 = vld [vmem:[#allocation4 + $0x28] sm:$0xff]  ;;  %4533 = vst.msk [vmem:[#allocation4 + $0x38] sm:$0xff] %vm390_vm0, %v4390_v9  ;;  %v4392_v39 = vpop.f32.mrb[107].mxu0  ;;  %v4871_v10 = vmul.f32 %v10398_v37, %v4567_v63  ;;  %v4603_v19 = vmul.f32 %v10387_v12, %v4567_v63  ;;  %v5079_v55 = vmul.f32 %v10421_v60, %v4567_v63  ;;  %v4734_v56 = vadd.f32 %v4702_v13, %v4602_v27 }
 0x92f   : > { %v4766_v35 = vld [vmem:[#allocation4 + $0x21] sm:$0xff]  ;;  %v4703_v29 = vmul.f32 %v10389_v40, %v10426_v50  ;;  %v4972_v0 = vadd.f32 %v4940_v59, %v4902_v38  ;;  %v4941_v26 = vmul.f32 %v10402_v46, %v10426_v50  ;;  %v5149_v62 = vmul.f32 %v10424_v34, %v10426_v50 }
 0x930   : > { %v4903_v21 = vadd.f32 %v4871_v10, %v4833_v6  ;;  %v4802_v47 = vmul.f32 %v10393_v52, %v4766_v35  ;;  %v5010_v61 = vmul.f32 %v10408_v17, %v4766_v35  ;;  %v5111_v49 = vadd.f32 %v5079_v55, %v5041_v22 }
 0x931   : > { %v10448_v25 = vld [vmem:[#allocation4 + $0x30] sm:$0xff]  ;;  %v4395_v20 = vpop.f32.mrb[108].mxu0  ;;  %v4735_v23 = vadd.f32 %v4703_v29, %v4603_v19 }
 0x932   : > { %v4767_v8 = vld [vmem:[#allocation4 + $0x29] sm:$0xff]  ;;  %4534 = vst.msk [vmem:[#allocation4 + $0x40] sm:$0xff] %vm390_vm0, %v4395_v20  ;;  %v4397_v51 = vpop.f32.mrb[109].mxu0  ;;  %v4973_v44 = vadd.f32 %v4941_v26, %v4903_v21  ;;  %v5181_v7 = vadd.f32 %v5149_v62, %v5111_v49  ;;  %v5042_v53 = vadd.f32 %v5010_v61, %v4972_v0  ;;  %v4834_v45 = vadd.f32 %v4802_v47, %v4734_v56 }
 0x933   : > { %v4568_v41 = vld [vmem:[#allocation4 + $0x2f] sm:$0xff]  ;;  %v4803_v28 = vmul.f32 %v10393_v52, %v4767_v8  ;;  %v5011_v48 = vmul.f32 %v10408_v17, %v4767_v8  ;;  %v5219_v16 = vmul.f32 %v10438_v30, %v4767_v8  ;;  %v5150_v58 = vmul.f32 %v10424_v34, %v10448_v25 }
 0x934   : > { %v5080_v2 = vmul.f32 %v10421_v60, %v4568_v41  ;;  %v4872_v11 = vmul.f32 %v10398_v37, %v4568_v41  ;;  %v4942_v9 = vmul.f32 %v10402_v46, %v10448_v25  ;;  %v10485_v35 = vmul.f32 %v10387_v12, %v4568_v41 }
 0x935   : > { %v4400_v57 = vpop.f32.mrb[110].mxu0  ;;  %v4835_v4 = vadd.f32 %v4803_v28, %v4735_v23  ;;  %v5251_v42 = vadd.f32 %v5219_v16, %v5181_v7  ;;  %v10465_v31 = vld [vmem:[#allocation4 + $0x31] sm:$0xff]  ;;  %v5043_v1 = vadd.f32 %v5011_v48, %v4973_v44  ;;  %v10492_v6 = vmul.f32 %v10389_v40, %v10448_v25 }
 0x936   : > { %v5112_v54 = vadd.f32 %v5080_v2, %v5042_v53  ;;  %v4569_v3 = vld [vmem:[#allocation4 + $0x37] sm:$0xff]  ;;  %4535 = vst.msk [vmem:[#allocation4 + $0x48] sm:$0xff] %vm390_vm0, %v4400_v57  ;;  %v4402_v18 = vpop.f32.mrb[111].mxu0  ;;  %v5220_v36 = vmul.f32 %v10438_v30, %v10465_v31  ;;  %v4904_v39 = vadd.f32 %v4872_v11, %v4834_v45  ;;  %v5012_v49 = vmul.f32 %v10408_v17, %v10465_v31 }
 0x937   : > { %v10467_v32 = vld [vmem:[#allocation4 + $0x38] sm:$0xff]  ;;  %v4605_v24 = vmul.f32 %v10387_v12, %v4569_v3  ;;  %v5290_v63 = vmul.f32 %v10460_v14, %v5251_v42  ;;  %v5081_v13 = vmul.f32 %v10421_v60, %v4569_v3  ;;  %v4873_v38 = vmul.f32 %v10398_v37, %v4569_v3 }
 0x938   : > { %v4705_v5 = vmul.f32 %v10389_v40, %v10467_v32  ;;  %v5182_v27 = vadd.f32 %v5150_v58, %v5112_v54  ;;  %v5151_v59 = vmul.f32 %v10424_v34, %v10467_v32  ;;  %v4974_v28 = vadd.f32 %v4942_v9, %v4904_v39 }
 0x939   : > { %v4405_v10 = vpop.f32.mrb[112].mxu0  ;;  %v10495_v22 = vadd.f32 %v10473_v15, %v5290_v63  ;;  %v4769_v55 = vld [vmem:[#allocation4 + $0x39] sm:$0xff]  ;;  %v5113_v0 = vadd.f32 %v5081_v13, %v5043_v1  ;;  %v4905_v48 = vadd.f32 %v4873_v38, %v4835_v4  ;;  %v4943_v16 = vmul.f32 %v10402_v46, %v10467_v32 }
 0x93a   : > { %v5252_v19 = vadd.f32 %v5220_v36, %v5182_v27  ;;  %v4737_v29 = vadd.f32 %v4705_v5, %v4605_v24  ;;  %v4570_v21 = vld [vmem:[#allocation4 + $0x3f] sm:$0xff]  ;;  %4536 = vst.msk [vmem:[#allocation4 + $0x50] sm:$0xff] %vm390_vm0, %v4405_v10  ;;  %v4407_v47 = vpop.f32.mrb[113].mxu0  ;;  %v4805_v61 = vmul.f32 %v10393_v52, %v4769_v55  ;;  %v5221_v20 = vmul.f32 %v10438_v30, %v4769_v55 }
 0x93b   : > { %v10497_v26 = vld [vmem:[#allocation4 + $0x40] sm:$0xff]  ;;  %v4606_v8 = vmul.f32 %v10387_v12, %v4570_v21  ;;  %v6345_v62 = vmul.f32 -1.442695, %v10495_v22  ;;  %v5183_v56 = vadd.f32 %v5151_v59, %v5113_v0  ;;  %v5082_v44 = vmul.f32 %v10421_v60, %v4570_v21 }
 0x93c   : > { %v5291_v41 = vmul.f32 %v10460_v14, %v5252_v19  ;;  %v4706_v51 = vmul.f32 %v10389_v40, %v10497_v26  ;;  %v5013_v53 = vmul.f32 %v10408_v17, %v4769_v55  ;;  %v10519_v42 = vadd.f32 %v4805_v61, %v4737_v29 }
 0x93d   : > { %v4410_v23 = vpop.f32.mrb[114].mxu0  ;;  %8059 = vpow2.f32 %v6345_v62  ;;  %v5253_v2 = vadd.f32 %v5221_v20, %v5183_v56  ;;  %v4770_v45 = vld [vmem:[#allocation4 + $0x41] sm:$0xff]  ;;  %v4874_v54 = vmul.f32 %v10398_v37, %v4570_v21  ;;  %v5044_v3 = vadd.f32 %v5012_v49, %v4974_v28 }
 0x93e   : > { %v10513_v7 = vadd.f32 %v10473_v15, %v5291_v41  ;;  %v4571_v58 = vld [vmem:[#allocation4 + $0x47] sm:$0xff]  ;;  %4537 = vst.msk [vmem:[#allocation4 + $0x58] sm:$0xff] %vm390_vm0, %v4410_v23  ;;  %v4412_v57 = vpop.f32.mrb[115].mxu0  ;;  %v4806_v4 = vmul.f32 %v10393_v52, %v4770_v45  ;;  %v4738_v36 = vadd.f32 %v4706_v51, %v4606_v8  ;;  %v5152_v9 = vmul.f32 %v10424_v34, %v10497_v26 }
 0x93f   : > { %v10516_v11 = vld [vmem:[#allocation4 + $0x48] sm:$0xff]  ;;  %v5292_v18 = vmul.f32 %v10460_v14, %v5253_v2  ;;  %v4607_v24 = vmul.f32 %v10387_v12, %v4571_v58  ;;  %v5114_v5 = vadd.f32 %v5082_v44, %v5044_v3  ;;  %v5222_v63 = vmul.f32 %v10438_v30, %v4770_v45 }
 0x940   : > { %v6346_v1 = vmul.f32 -1.442695, %v10513_v7  ;;  %v4707_v27 = vmul.f32 %v10389_v40, %v10516_v11  ;;  %v4975_v39 = vadd.f32 %v4943_v16, %v4905_v48  ;;  %v5083_v10 = vmul.f32 %v10421_v60, %v4571_v58 }
 0x941   : > { %v4415_v13 = vpop.f32.mrb[116].mxu0  ;;  %v10532_v38 = vadd.f32 %v10473_v15, %v5292_v18  ;;  %v4771_v59 = vld [vmem:[#allocation4 + $0x49] sm:$0xff]  ;;  %v10538_v0 = vadd.f32 %v4806_v4, %v4738_v36  ;;  %v5014_v21 = vmul.f32 %v10408_v17, %v4770_v45  ;;  %v5184_v47 = vadd.f32 %v5152_v9, %v5114_v5 }
 0x942   : > { %8061 = vpow2.f32 %v6346_v1  ;;  %v4572_v19 = vld [vmem:[#allocation4 + $0x4f] sm:$0xff]  ;;  %4538 = vst.msk [vmem:[#allocation4 + $0x60] sm:$0xff] %vm390_vm0, %v4415_v13  ;;  %v4417_v55 = vpop.f32.mrb[117].mxu0  ;;  %v4739_v61 = vadd.f32 %v4707_v27, %v4607_v24  ;;  %v4807_v8 = vmul.f32 %v10393_v52, %v4771_v59  ;;  %v5045_v49 = vadd.f32 %v5013_v53, %v4975_v39 }
 0x943   : > { %v10535_v29 = vld [vmem:[#allocation4 + $0x50] sm:$0xff]  ;;  %v6347_v20 = vmul.f32 -1.442695, %v10532_v38  ;;  %v5153_v62 = vmul.f32 %v10424_v34, %v10516_v11  ;;  %v5254_v41 = vadd.f32 %v5222_v63, %v5184_v47  ;;  %v5223_v56 = vmul.f32 %v10438_v30, %v4771_v59 }
 0x944   : > { %v4608_v51 = vmul.f32 %v10387_v12, %v4572_v19  ;;  %v4708_v28 = vmul.f32 %v10389_v40, %v10535_v29  ;;  %v5115_v48 = vadd.f32 %v5083_v10, %v5045_v49  ;;  %v4736_v16 = vadd.f32 %v10492_v6, %v10485_v35 }
 0x945   : > { %v4420_v44 = vpop.f32.mrb[118].mxu0  ;;  %8063 = vpow2.f32 %v6347_v20  ;;  %v4772_v23 = vld [vmem:[#allocation4 + $0x51] sm:$0xff]  ;;  %v4804_v53 = vmul.f32 %v10393_v52, %v10465_v31  ;;  %v5293_v45 = vmul.f32 %v10460_v14, %v5254_v41  ;;  %v4875_v57 = vmul.f32 %v10398_v37, %v4571_v58 }
 0x946   : > { %4539 = vst.msk [vmem:[#allocation4 + $0x68] sm:$0xff] %vm390_vm0, %v4420_v44  ;;  %v4422_v2 = vpop.f32.mrb[119].mxu0  ;;  %v5015_v4 = vmul.f32 %v10408_v17, %v4771_v59  ;;  %v4808_v3 = vmul.f32 %v10393_v52, %v4772_v23  ;;  %v10558_v18 = vadd.f32 %v4807_v8, %v4739_v61  ;;  %v5185_v36 = vadd.f32 %v5153_v62, %v5115_v48  ;;  %v4573_v24 = vld [vmem:[#allocation4 + $0x57] sm:$0xff] }
 0x947   : > { %v8060_v1 = vpop.eup %8059  ;;  %v4740_v35 = vadd.f32 %v4708_v28, %v4608_v51  ;;  %v4836_v6 = vadd.f32 %v4804_v53, %v4736_v16  ;;  %v10560_v5 = vld [vmem:[#allocation4 + $0x58] sm:$0xff]  ;;  %v10563_v9 = vadd.f32 %v10473_v15, %v5293_v45  ;;  %v4876_v63 = vmul.f32 %v10398_v37, %v4572_v19 }
 0x948   : > { %v5457_v31 = vadd.f32 1.0, %v8060_v1  ;;  %v4944_v58 = vmul.f32 %v10402_v46, %v10497_v26  ;;  %v5255_v13 = vadd.f32 %v5223_v56, %v5185_v36  ;;  %v10571_v10 = vmul.f32 %v10408_v17, %v4772_v23 }
 0x949   : > { %v4425_v27 = vpop.f32.mrb[120].mxu0  ;;  %v10568_v59 = vadd.f32 %v4808_v3, %v4740_v35  ;;  %v4906_v39 = vadd.f32 %v4874_v54, %v4836_v6  ;;  %v4773_v55 = vld [vmem:[#allocation4 + $0x59] sm:$0xff]  ;;  %v6348_v61 = vmul.f32 -1.442695, %v10563_v9  ;;  %v4609_v20 = vmul.f32 %v10387_v12, %v4573_v24 }
 0x94a   : > { %4540 = vst.msk [vmem:[#allocation4 + $0x70] sm:$0xff] %vm390_vm0, %v4425_v27  ;;  %v4427_v47 = vpop.f32.mrb[121].mxu0  ;;  %8065 = vrcp.f32 %v5457_v31  ;;  %v4709_v8 = vmul.f32 %v10389_v40, %v10560_v5  ;;  %v5294_v62 = vmul.f32 %v10460_v14, %v5255_v13  ;;  %v5084_v54 = vmul.f32 %v10421_v60, %v4572_v19  ;;  %v4574_v19 = vld [vmem:[#allocation4 + $0x5f] sm:$0xff] }
 0x94b   : > { %v4976_v41 = vadd.f32 %v4944_v58, %v4906_v39  ;;  %v5154_v56 = vmul.f32 %v10424_v34, %v10535_v29  ;;  %8067 = vpow2.f32 %v6348_v61  ;;  %v4809_v28 = vmul.f32 %v10393_v52, %v4773_v55  ;;  %v10590_v3 = vld [vmem:[#allocation4 + $0x60] sm:$0xff] }
 0x94c   : > { %v8062_v49 = vpop.eup %8061  ;;  %v4907_v44 = vadd.f32 %v4875_v57, %v10519_v42  ;;  %v10585_v16 = vadd.f32 %v10473_v15, %v5294_v62  ;;  %v5224_v2 = vmul.f32 %v10438_v30, %v4772_v23  ;;  %v4945_v45 = vmul.f32 %v10402_v46, %v10516_v11 }
 0x94d   : > { %v5458_v51 = vadd.f32 1.0, %v8062_v49  ;;  %v4430_v48 = vpop.f32.mrb[122].mxu0  ;;  %v5046_v53 = vadd.f32 %v5014_v21, %v4976_v41  ;;  %v4741_v36 = vadd.f32 %v4709_v8, %v4609_v20  ;;  %v4877_v42 = vmul.f32 %v10398_v37, %v4573_v24  ;;  %v4774_v35 = vld [vmem:[#allocation4 + $0x61] sm:$0xff] }
 0x94e   : > { %4541 = vst.msk [vmem:[#allocation4 + $0x78] sm:$0xff] %vm390_vm0, %v4430_v48  ;;  %v4432_v1 = vpop.f32.mrb[123].mxu0  ;;  %v10595_v57 = vmul.f32 %v10408_v17, %v4773_v55  ;;  %v6349_v23 = vmul.f32 -1.442695, %v10585_v16  ;;  %v4977_v31 = vadd.f32 %v4945_v45, %v4907_v44  ;;  %v5085_v58 = vmul.f32 %v10421_v60, %v4573_v24  ;;  %v10614_v48 = vld [vmem:[#allocation4 + $0x68] sm:$0xff] }
 0x94f   : > { %8069 = vrcp.f32 %v5458_v51  ;;  %v8064_v21 = vpop.eup %8063  ;;  %v5116_v6 = vadd.f32 %v5084_v54, %v5046_v53  ;;  %v10599_v13 = vadd.f32 %v4809_v28, %v4741_v36  ;;  %v4610_v39 = vmul.f32 %v10387_v12, %v4574_v19 }
 0x950   : > { %v5459_v27 = vadd.f32 1.0, %v8064_v21  ;;  %v4710_v47 = vmul.f32 %v10389_v40, %v10590_v3  ;;  %8071 = vpow2.f32 %v6349_v23  ;;  %v5047_v8 = vadd.f32 %v5015_v4, %v4977_v31  ;;  %v10612_v4 = vld [vmem:[#allocation4 + $0x67] sm:$0xff] }
 0x951   : > { %v4435_v61 = vpop.f32.mrb[124].mxu0  ;;  %v5186_v20 = vadd.f32 %v5154_v56, %v5116_v6  ;;  %v4810_v49 = vmul.f32 %v10393_v52, %v4774_v35  ;;  %v5155_v24 = vmul.f32 %v10424_v34, %v10560_v5  ;;  %v4908_v41 = vadd.f32 %v4876_v63, %v10538_v0 }
 0x952   : > { %4542 = vst.msk [vmem:[#allocation4 + $0x80] sm:$0xff] %vm390_vm0, %v4435_v61  ;;  %v4437_v62 = vpop.f32.mrb[125].mxu0  ;;  %8073 = vrcp.f32 %v5459_v27  ;;  %v4946_v54 = vmul.f32 %v10402_v46, %v10535_v29  ;;  %v5117_v28 = vadd.f32 %v5085_v58, %v5047_v8  ;;  %v5225_v44 = vmul.f32 %v10438_v30, %v4773_v55  ;;  %v4775_v8 = vld [vmem:[#allocation4 + $0x69] sm:$0xff] }
 0x953   : > { %v5256_v51 = vadd.f32 %v5224_v2, %v5186_v20  ;;  %v4742_v56 = vadd.f32 %v4710_v47, %v4610_v39  ;;  %v10617_v45 = vmul.f32 %v10398_v37, %v4574_v19  ;;  %v10620_v36 = vmul.f32 %v10408_v17, %v4774_v35 }
 0x954   : > { %v8066_v53 = vpop.eup %8065  ;;  %v4978_v1 = vadd.f32 %v4946_v54, %v4908_v41  ;;  %v5086_v0 = vmul.f32 %v10421_v60, %v4574_v19  ;;  %v5187_v21 = vadd.f32 %v5155_v24, %v5117_v28  ;;  %v5156_v27 = vmul.f32 %v10424_v34, %v10590_v3 }
 0x955   : > { %v4440_v63 = vpop.f32.mrb[126].mxu0  ;;  %v5553_v2 = vmul.f32 %v8066_v53, %v10495_v22  ;;  %v5295_v55 = vmul.f32 %v10460_v14, %v5256_v51  ;;  %v10625_v23 = vadd.f32 %v4810_v49, %v4742_v56  ;;  %v8068_v6 = vpop.eup %8067  ;;  %v4611_v19 = vmul.f32 %v10387_v12, %v10612_v4  ;;  %v4576_v53 = vld [vmem:[#allocation4 + $0x6f] sm:$0xff] }
 0x956   : > { %4543 = vst.msk [vmem:[#allocation4 + $0x88] sm:$0xff] %vm390_vm0, %v4440_v63  ;;  %v4442_v31 = vpop.f32.mrb[127].mxu0  ;;  %v5048_v58 = vadd.f32 %v10571_v10, %v4978_v1  ;;  %v4711_v22 = vmul.f32 %v10389_v40, %v10614_v48  ;;  %v5460_v47 = vadd.f32 1.0, %v8068_v6  ;;  %v5257_v20 = vadd.f32 %v5225_v44, %v5187_v21 }
 0x957   : > { %v5585_v39 = vadd.f32 %v5553_v2, %v10404_v33  ;;  %v10637_v61 = vadd.f32 %v10473_v15, %v5295_v55  ;;  %v5226_v10 = vmul.f32 %v10438_v30, %v4774_v35  ;;  %v4909_v24 = vadd.f32 %v4877_v42, %v10558_v18  ;;  %v10655_v2 = vld [vmem:[#allocation4 + $0x70] sm:$0xff] }
 0x958   : > { %v5118_v62 = vadd.f32 %v5086_v0, %v5048_v58  ;;  %v4947_v41 = vmul.f32 %v10402_v46, %v10560_v5  ;;  %8075 = vrcp.f32 %v5460_v47  ;;  %v5296_v28 = vmul.f32 %v10460_v14, %v5257_v20 }
 0x959   : > { %v8070_v49 = vpop.eup %8069  ;;  %7311 = vmatprep.mubr.msk.f32.mxu1 %vm390_vm0, %v5585_v39  ;;  %v4445_v54 = vpop.f32.mrb[128].mxu0  ;;  %v6350_v51 = vmul.f32 -1.442695, %v10637_v61  ;;  %v4743_v35 = vadd.f32 %v4711_v22, %v4611_v19  ;;  %v4811_v18 = vmul.f32 %v10393_v52, %v4775_v8  ;;  %v5087_v63 = vmul.f32 %v10421_v60, %v10612_v4 }
 0x95a   : > { %v5554_v33 = vmul.f32 %v8070_v49, %v10513_v7  ;;  %4544 = vst.msk [vmem:[#allocation4 + $0x90] sm:$0xff] %vm390_vm0, %v4445_v54  ;;  %v4447_v44 = vpop.f32.mrb[129].mxu0  ;;  %v5188_v56 = vadd.f32 %v5156_v27, %v5118_v62  ;;  %v4979_v42 = vadd.f32 %v4947_v41, %v4909_v24  ;;  %v8072_v1 = vpop.eup %8071  ;;  %v10651_v7 = vadd.f32 %v10473_v15, %v5296_v28  ;;  %v4776_v27 = vld [vmem:[#allocation4 + $0x71] sm:$0xff] }
 0x95b   : > { %8077 = vpow2.f32 %v6350_v51  ;;  %v5461_v21 = vadd.f32 1.0, %v8072_v1  ;;  %v5157_v58 = vmul.f32 %v10424_v34, %v10614_v48  ;;  %v5227_v39 = vmul.f32 %v10438_v30, %v4775_v8  ;;  %v4577_v28 = vld [vmem:[#allocation4 + $0x77] sm:$0xff] }
 0x95c   : > { %v5586_v0 = vadd.f32 %v5554_v33, %v10419_v43  ;;  %v8074_v55 = vpop.eup %8073  ;;  %v5258_v6 = vadd.f32 %v5226_v10, %v5188_v56  ;;  %v5049_v31 = vadd.f32 %v10595_v57, %v4979_v42  ;;  %v6351_v22 = vmul.f32 -1.442695, %v10651_v7  ;;  %v10685_v1 = vld [vmem:[#allocation4 + $0x78] sm:$0xff] }
 0x95d   : > { %v4450_v43 = vpop.f32.mrb[130].mxu0  ;;  %v5555_v19 = vmul.f32 %v8074_v55, %v10532_v38  ;;  %v4612_v47 = vmul.f32 %v10387_v12, %v4576_v53  ;;  %8079 = vrcp.f32 %v5461_v21  ;;  %v4712_v62 = vmul.f32 %v10389_v40, %v10655_v2 }
 0x95e   : > { %7312 = vmatmul.mubr.msk.f32.vlgmr.msra.gmra.mrb[154].mxu1 %vm390_vm0, %v5586_v0  ;;  %4545 = vst.msk [vmem:[#allocation4 + $0x98] sm:$0xff] %vm390_vm0, %v4450_v43  ;;  %v4452_v20 = vpop.f32.mrb[131].mxu0  ;;  %v5297_v57 = vmul.f32 %v10460_v14, %v5258_v6  ;;  %v5119_v49 = vadd.f32 %v5087_v63, %v5049_v31  ;;  %8081 = vpow2.f32 %v6351_v22  ;;  %v4879_v38 = vmul.f32 %v10398_v37, %v10612_v4  ;;  %v4777_v31 = vld [vmem:[#allocation4 + $0x79] sm:$0xff] }
 0x95f   : > { %v5587_v10 = vadd.f32 %v5555_v19, %v10426_v50  ;;  %v4812_v24 = vmul.f32 %v10393_v52, %v4776_v27  ;;  %v10676_v54 = vadd.f32 %v4811_v18, %v4743_v35  ;;  %v4910_v51 = vadd.f32 %v10617_v45, %v10568_v59 }
 0x960   : > { %v10674_v41 = vadd.f32 %v10473_v15, %v5297_v57  ;;  %v5189_v33 = vadd.f32 %v5157_v58, %v5119_v49  ;;  %v5019_v50 = vmul.f32 %v10408_v17, %v4775_v8  ;;  %v4744_v56 = vadd.f32 %v4712_v62, %v4612_v47 }
 0x961   : > { %7314 = vmatprep.mubr.msk.f32.mxu1 %vm390_vm0, %v5587_v10  ;;  %v4455_v44 = vpop.f32.mrb[132].mxu0  ;;  %v4880_v4 = vmul.f32 %v10398_v37, %v4576_v53  ;;  %v4948_v42 = vmul.f32 %v10402_v46, %v10590_v3  ;;  %v10690_v45 = vmul.f32 %v10408_v17, %v4776_v27  ;;  %v5088_v0 = vmul.f32 %v10421_v60, %v4576_v53 }
 0x962   : > { %4546 = vst.msk [vmem:[#allocation4 + $0xa0] sm:$0xff] %vm390_vm0, %v4455_v44  ;;  %v4457_v35 = vpop.f32.mrb[133].mxu0  ;;  %v6352_v18 = vmul.f32 -1.442695, %v10674_v41  ;;  %v5259_v59 = vadd.f32 %v5227_v39, %v5189_v33  ;;  %v8076_v8 = vpop.eup %8075  ;;  %v10693_v63 = vadd.f32 %v4812_v24, %v4744_v56  ;;  %v5158_v21 = vmul.f32 %v10424_v34, %v10655_v2  ;;  %v4578_v33 = vld [vmem:[#allocation4 + $0x7f] sm:$0xff] }
 0x963   : > { %v4980_v55 = vadd.f32 %v4948_v42, %v4910_v51  ;;  %v4613_v6 = vmul.f32 %v10387_v12, %v4577_v28  ;;  %v5556_v58 = vmul.f32 %v8076_v8, %v10563_v9  ;;  %v4713_v19 = vmul.f32 %v10389_v40, %v10685_v1  ;;  %v4778_v35 = vld [vmem:[#allocation4 + $0x81] sm:$0xff] }
 0x964   : > { %8083 = vpow2.f32 %v6352_v18  ;;  %v5298_v43 = vmul.f32 %v10460_v14, %v5259_v59  ;;  %v5228_v47 = vmul.f32 %v10438_v30, %v4776_v27  ;;  %v4911_v20 = vadd.f32 %v4879_v38, %v10599_v13  ;;  %v10715_v38 = vld [vmem:[#allocation4 + $0x80] sm:$0xff] }
 0x965   : > { %v8078_v22 = vpop.eup %8077  ;;  %v4460_v53 = vpop.f32.mrb[134].mxu0  ;;  %v5050_v39 = vadd.f32 %v10620_v36, %v4980_v55  ;;  %v4949_v57 = vmul.f32 %v10402_v46, %v10614_v48  ;;  %v5588_v49 = vadd.f32 %v5556_v58, %v10448_v25  ;;  %v4813_v24 = vmul.f32 %v10393_v52, %v4777_v31 }
 0x966   : > { %4547 = vst.msk [vmem:[#allocation4 + $0xa8] sm:$0xff] %vm390_vm0, %v4460_v53  ;;  %v4462_v9 = vpop.f32.mrb[135].mxu0  ;;  %v5462_v62 = vadd.f32 1.0, %v8078_v22  ;;  %v10710_v10 = vadd.f32 %v10473_v15, %v5298_v43  ;;  %v4881_v27 = vmul.f32 %v10398_v37, %v4577_v28  ;;  %v5089_v13 = vmul.f32 %v10421_v60, %v4577_v28 }
 0x967   : > { %v5120_v36 = vadd.f32 %v5088_v0, %v5050_v39  ;;  %v4981_v51 = vadd.f32 %v4949_v57, %v4911_v20  ;;  %v8080_v44 = vpop.eup %8079  ;;  %7315 = vmatmul.mubr.msk.f32.gmra.mrb[156].mxu1 %vm390_vm0, %v5588_v49  ;;  %v4745_v56 = vadd.f32 %v4713_v19, %v4613_v6  ;;  %v5159_v42 = vmul.f32 %v10424_v34, %v10685_v1 }
 0x968   : > { %8085 = vrcp.f32 %v5462_v62  ;;  %v6353_v25 = vmul.f32 -1.442695, %v10710_v10  ;;  %v8082_v18 = vpop.eup %8081  ;;  %v5557_v59 = vmul.f32 %v8080_v44, %v10585_v16  ;;  %v4614_v28 = vmul.f32 %v10387_v12, %v4578_v33  ;;  %v4579_v62 = vld [vmem:[#allocation4 + $0x87] sm:$0xff] }
 0x969   : > { %v4465_v0 = vpop.f32.mrb[136].mxu0  ;;  %v5190_v8 = vadd.f32 %v5158_v21, %v5120_v36  ;;  %v5051_v55 = vadd.f32 %v5019_v50, %v4981_v51  ;;  %v5463_v43 = vadd.f32 1.0, %v8082_v18  ;;  %v5229_v22 = vmul.f32 %v10438_v30, %v4777_v31  ;;  %v10737_v36 = vld [vmem:[#allocation4 + $0x88] sm:$0xff] }
 0x96a   : > { %4548 = vst.msk [vmem:[#allocation4 + $0xb0] sm:$0xff] %vm390_vm0, %v4465_v0  ;;  %v4467_v58 = vpop.f32.mrb[137].mxu0  ;;  %8087 = vpow2.f32 %v6353_v25  ;;  %v4714_v6 = vmul.f32 %v10389_v40, %v10715_v38  ;;  %v5589_v19 = vadd.f32 %v5557_v59, %v10467_v32  ;;  %v4814_v16 = vmul.f32 %v10393_v52, %v4778_v35  ;;  %v4779_v18 = vld [vmem:[#allocation4 + $0x89] sm:$0xff] }
 0x96b   : > { %v5260_v53 = vadd.f32 %v5228_v47, %v5190_v8  ;;  %v5121_v39 = vadd.f32 %v5089_v13, %v5051_v55  ;;  %8089 = vrcp.f32 %v5463_v43  ;;  %v5021_v50 = vmul.f32 %v10408_v17, %v4777_v31 }
 0x96c   : > { %v4912_v21 = vadd.f32 %v4880_v4, %v10625_v23  ;;  %v4950_v20 = vmul.f32 %v10402_v46, %v10655_v2  ;;  %7317 = vmatprep.mubr.msk.f32.mxu1 %vm390_vm0, %v5589_v19  ;;  %v10735_v9 = vadd.f32 %v4813_v24, %v4745_v56  ;;  %v4746_v47 = vadd.f32 %v4714_v6, %v4614_v28 }
 0x96d   : > { %v4470_v57 = vpop.f32.mrb[138].mxu0  ;;  %v5299_v49 = vmul.f32 %v10460_v14, %v5260_v53  ;;  %v5191_v32 = vadd.f32 %v5159_v42, %v5121_v39  ;;  %v4882_v23 = vmul.f32 %v10398_v37, %v4578_v33  ;;  %v10742_v13 = vmul.f32 %v10408_v17, %v4778_v35 }
 0x96e   : > { %v8084_v51 = vpop.eup %8083  ;;  %4549 = vst.msk [vmem:[#allocation4 + $0xb8] sm:$0xff] %vm390_vm0, %v4470_v57  ;;  %v4472_v31 = vpop.f32.mrb[139].mxu0  ;;  %v4982_v4 = vadd.f32 %v4950_v20, %v4912_v21  ;;  %v5090_v44 = vmul.f32 %v10421_v60, %v4578_v33  ;;  %v10748_v42 = vadd.f32 %v4814_v16, %v4746_v47  ;;  %v5160_v0 = vmul.f32 %v10424_v34, %v10715_v38  ;;  %v10769_v20 = vld [vmem:[#allocation4 + $0x90] sm:$0xff] }
 0x96f   : > { %v5464_v25 = vadd.f32 1.0, %v8084_v51  ;;  %v10746_v24 = vadd.f32 %v10473_v15, %v5299_v49  ;;  %v5261_v56 = vadd.f32 %v5229_v22, %v5191_v32  ;;  %v4615_v8 = vmul.f32 %v10387_v12, %v4579_v62 }
 0x970   : > { %v5052_v59 = vadd.f32 %v10690_v45, %v4982_v4  ;;  %v4715_v55 = vmul.f32 %v10389_v40, %v10737_v36  ;;  %v4913_v43 = vadd.f32 %v4881_v27, %v10676_v54  ;;  %v5230_v19 = vmul.f32 %v10438_v30, %v4778_v35  ;;  %v4580_v27 = vld [vmem:[#allocation4 + $0x8f] sm:$0xff] }
 0x971   : > { %v4475_v28 = vpop.f32.mrb[140].mxu0  ;;  %8091 = vrcp.f32 %v5464_v25  ;;  %v6354_v33 = vmul.f32 -1.442695, %v10746_v24  ;;  %v5300_v58 = vmul.f32 %v10460_v14, %v5261_v56  ;;  %v4815_v53 = vmul.f32 %v10393_v52, %v4779_v18 }
 0x972   : > { %v8086_v22 = vpop.eup %8085  ;;  %4550 = vst.msk [vmem:[#allocation4 + $0xc0] sm:$0xff] %vm390_vm0, %v4475_v28  ;;  %v4477_v45 = vpop.f32.mrb[141].mxu0  ;;  %v5122_v6 = vadd.f32 %v5090_v44, %v5052_v59  ;;  %v4951_v39 = vmul.f32 %v10402_v46, %v10685_v1  ;;  %v4883_v54 = vmul.f32 %v10398_v37, %v4579_v62  ;;  %v4747_v32 = vadd.f32 %v4715_v55, %v4615_v8  ;;  %v4780_v8 = vld [vmem:[#allocation4 + $0x91] sm:$0xff] }
 0x973   : > { %v5558_v16 = vmul.f32 %v8086_v22, %v10637_v61  ;;  %8093 = vpow2.f32 %v6354_v33  ;;  %v10766_v21 = vadd.f32 %v10473_v15, %v5300_v58  ;;  %v5091_v47 = vmul.f32 %v10421_v60, %v4579_v62  ;;  %v4581_v22 = vld [vmem:[#allocation4 + $0x97] sm:$0xff] }
 0x974   : > { %v8088_v57 = vpop.eup %8087  ;;  %v5192_v49 = vadd.f32 %v5160_v0, %v5122_v6  ;;  %v4983_v35 = vadd.f32 %v4951_v39, %v4913_v43  ;;  %v10775_v44 = vmul.f32 %v10408_v17, %v4779_v18  ;;  %v4616_v0 = vmul.f32 %v10387_v12, %v4580_v27  ;;  %v10794_v39 = vld [vmem:[#allocation4 + $0x98] sm:$0xff] }
 0x975   : > { %v5590_v51 = vadd.f32 %v5558_v16, %v10497_v26  ;;  %v4480_v31 = vpop.f32.mrb[142].mxu0  ;;  %v5465_v4 = vadd.f32 1.0, %v8088_v57  ;;  %v6355_v61 = vmul.f32 -1.442695, %v10766_v21  ;;  %v8090_v25 = vpop.eup %8089  ;;  %v4716_v62 = vmul.f32 %v10389_v40, %v10769_v20 }
 0x976   : > { %4551 = vst.msk [vmem:[#allocation4 + $0xc8] sm:$0xff] %vm390_vm0, %v4480_v31  ;;  %v4482_v56 = vpop.f32.mrb[143].mxu0  ;;  %v5262_v59 = vadd.f32 %v5230_v19, %v5192_v49  ;;  %v5053_v28 = vadd.f32 %v5021_v50, %v4983_v35  ;;  %v5559_v26 = vmul.f32 %v8090_v25, %v10651_v7  ;;  %v10783_v55 = vadd.f32 %v4815_v53, %v4747_v32  ;;  %v4781_v25 = vld [vmem:[#allocation4 + $0x99] sm:$0xff] }
 0x977   : > { %7318 = vmatmul.mubr.msk.f32.gmra.mrb[158].mxu1 %vm390_vm0, %v5590_v51  ;;  %8095 = vrcp.f32 %v5465_v4  ;;  %v5161_v33 = vmul.f32 %v10424_v34, %v10737_v36  ;;  %v5231_v43 = vmul.f32 %v10438_v30, %v4779_v18  ;;  %v4816_v19 = vmul.f32 %v10393_v52, %v4780_v8 }
 0x978   : > { %8097 = vpow2.f32 %v6355_v61  ;;  %v5301_v58 = vmul.f32 %v10460_v14, %v5262_v59  ;;  %v5123_v50 = vadd.f32 %v5091_v47, %v5053_v28  ;;  %v5591_v45 = vadd.f32 %v5559_v26, %v10516_v11 }
 0x979   : > { %v4485_v6 = vpop.f32.mrb[144].mxu0  ;;  %v4914_v7 = vadd.f32 %v4882_v23, %v10693_v63  ;;  %v4952_v53 = vmul.f32 %v10402_v46, %v10715_v38  ;;  %v4748_v49 = vadd.f32 %v4716_v62, %v4616_v0  ;;  %v4884_v11 = vmul.f32 %v10398_v37, %v4580_v27 }
 0x97a   : > { %4552 = vst.msk [vmem:[#allocation4 + $0xd0] sm:$0xff] %vm390_vm0, %v4485_v6  ;;  %v4487_v16 = vpop.f32.mrb[145].mxu0  ;;  %v10798_v57 = vadd.f32 %v10473_v15, %v5301_v58  ;;  %v5193_v18 = vadd.f32 %v5161_v33, %v5123_v50  ;;  %7320 = vmatprep.mubr.msk.f32.mxu1 %vm390_vm0, %v5591_v45  ;;  %v10803_v63 = vmul.f32 %v10408_v17, %v4780_v8  ;;  %v4582_v6 = vld [vmem:[#allocation4 + $0x9f] sm:$0xff] }
 0x97b   : > { %v8092_v32 = vpop.eup %8091  ;;  %v4984_v35 = vadd.f32 %v4952_v53, %v4914_v7  ;;  %v5092_v23 = vmul.f32 %v10421_v60, %v4580_v27  ;;  %v4617_v47 = vmul.f32 %v10387_v12, %v4581_v22  ;;  %v4717_v61 = vmul.f32 %v10389_v40, %v10794_v39  ;;  %v4782_v7 = vld [vmem:[#allocation4 + $0xa1] sm:$0xff] }
 0x97c   : > { %v5560_v51 = vmul.f32 %v8092_v32, %v10674_v41  ;;  %v6356_v31 = vmul.f32 -1.442695, %v10798_v57  ;;  %v5263_v4 = vadd.f32 %v5231_v43, %v5193_v18  ;;  %v10811_v28 = vadd.f32 %v4816_v19, %v4748_v49  ;;  %v10824_v19 = vld [vmem:[#allocation4 + $0xa0] sm:$0xff] }
 0x97d   : > { %v8094_v56 = vpop.eup %8093  ;;  %v4490_v59 = vpop.f32.mrb[146].mxu0  ;;  %v5054_v0 = vadd.f32 %v10742_v13, %v4984_v35  ;;  %v5162_v27 = vmul.f32 %v10424_v34, %v10769_v20  ;;  %v4915_v62 = vadd.f32 %v4883_v54, %v10735_v9  ;;  %v5232_v43 = vmul.f32 %v10438_v30, %v4780_v8 }
 0x97e   : > { %v5592_v41 = vadd.f32 %v5560_v51, %v10535_v29  ;;  %v5466_v26 = vadd.f32 1.0, %v8094_v56  ;;  %4553 = vst.msk [vmem:[#allocation4 + $0xd8] sm:$0xff] %vm390_vm0, %v4490_v59  ;;  %v4492_v33 = vpop.f32.mrb[147].mxu0  ;;  %8099 = vpow2.f32 %v6356_v31  ;;  %v5302_v58 = vmul.f32 %v10460_v14, %v5263_v4 }
 0x97f   : > { %v5124_v50 = vadd.f32 %v5092_v23, %v5054_v0  ;;  %v4817_v45 = vmul.f32 %v10393_v52, %v4781_v25  ;;  %v4953_v13 = vmul.f32 %v10402_v46, %v10737_v36  ;;  %v4749_v9 = vadd.f32 %v4717_v61, %v4617_v47 }
 0x980   : > { %7321 = vmatmul.mubr.msk.f32.gmra.mrb[160].mxu1 %vm390_vm0, %v5592_v41  ;;  %8101 = vrcp.f32 %v5466_v26  ;;  %v10828_v29 = vadd.f32 %v10473_v15, %v5302_v58  ;;  %v4885_v54 = vmul.f32 %v10398_v37, %v4581_v22  ;;  %v5093_v49 = vmul.f32 %v10421_v60, %v4581_v22  ;;  %v4583_v58 = vld [vmem:[#allocation4 + $0xa7] sm:$0xff] }
 0x981   : > { %v8096_v53 = vpop.eup %8095  ;;  %v4495_v8 = vpop.f32.mrb[148].mxu0  ;;  %v5194_v16 = vadd.f32 %v5162_v27, %v5124_v50  ;;  %v4985_v18 = vadd.f32 %v4953_v13, %v4915_v62  ;;  %v5163_v32 = vmul.f32 %v10424_v34, %v10794_v39  ;;  %v4618_v31 = vmul.f32 %v10387_v12, %v4582_v6  ;;  %v10854_v13 = vld [vmem:[#allocation4 + $0xa8] sm:$0xff] }
 0x982   : > { %v8098_v35 = vpop.eup %8097  ;;  %v5561_v23 = vmul.f32 %v8096_v53, %v10710_v10  ;;  %4554 = vst.msk [vmem:[#allocation4 + $0xe0] sm:$0xff] %vm390_vm0, %v4495_v8  ;;  %v4497_v51 = vpop.f32.mrb[149].mxu0  ;;  %v6357_v47 = vmul.f32 -1.442695, %v10828_v29  ;;  %v4718_v4 = vmul.f32 %v10389_v40, %v10824_v19  ;;  %v4818_v59 = vmul.f32 %v10393_v52, %v4782_v7 }
 0x983   : > { %v5467_v61 = vadd.f32 1.0, %v8098_v35  ;;  %v5264_v56 = vadd.f32 %v5232_v43, %v5194_v16  ;;  %v5055_v22 = vadd.f32 %v10775_v44, %v4985_v18  ;;  %v5233_v10 = vmul.f32 %v10438_v30, %v4781_v25 }
 0x984   : > { %v5593_v0 = vadd.f32 %v5561_v23, %v10560_v5  ;;  %8103 = vpow2.f32 %v6357_v47  ;;  %v4750_v27 = vadd.f32 %v4718_v4, %v4618_v31  ;;  %v4916_v33 = vadd.f32 %v4884_v11, %v10748_v42 }
 0x985   : > { %8105 = vrcp.f32 %v5467_v61  ;;  %v4500_v62 = vpop.f32.mrb[150].mxu0  ;;  %v5303_v41 = vmul.f32 %v10460_v14, %v5264_v56  ;;  %v5125_v26 = vadd.f32 %v5093_v49, %v5055_v22  ;;  %v10848_v50 = vadd.f32 %v4817_v45, %v4749_v9  ;;  %v4783_v49 = vld [vmem:[#allocation4 + $0xa9] sm:$0xff]  ;;  %v10876_v61 = vld [vmem:[%s11403_s5 + $0x8] ss:$0 sm:$0xff] }
 0x986   : > { %7323 = vmatprep.mubr.msk.f32.mxu1 %vm390_vm0, %v5593_v0  ;;  %4555 = vst.msk [vmem:[#allocation4 + $0xe8] sm:$0xff] %vm390_vm0, %v4500_v62  ;;  %v4502_v44 = vpop.f32.mrb[151].mxu0  ;;  %v5025_v5 = vmul.f32 %v10408_v17, %v4781_v25  ;;  %v4886_v30 = vmul.f32 %v10398_v37, %v4582_v6  ;;  %v4954_v43 = vmul.f32 %v10402_v46, %v10769_v20 }
 0x987   : > { %v10857_v53 = vadd.f32 %v10473_v15, %v5303_v41  ;;  %v5195_v42 = vadd.f32 %v5163_v32, %v5125_v26  ;;  %v10859_v11 = vadd.f32 %v4818_v59, %v4750_v27  ;;  %v10862_v8 = vmul.f32 %v10408_v17, %v4782_v7  ;;  %v10895_v44 = vld [vmem:[#allocation4 + $0xb1] sm:$0xff] }
 0x988   : > { %v8100_v45 = vpop.eup %8099  ;;  %v4986_v9 = vadd.f32 %v4954_v43, %v4916_v33  ;;  %v5094_v25 = vmul.f32 %v10421_v60, %v4582_v6  ;;  %v5164_v16 = vmul.f32 %v10424_v34, %v10824_v19  ;;  %v4619_v18 = vmul.f32 %v10387_v12, %v4583_v58 }
 0x989   : > { %v5468_v35 = vadd.f32 1.0, %v8100_v45  ;;  %v4505_v23 = vpop.f32.mrb[152].mxu0  ;;  %v6358_v51 = vmul.f32 -1.442695, %v10857_v53  ;;  %v5265_v32 = vadd.f32 %v5233_v10, %v5195_v42  ;;  %v4719_v47 = vmul.f32 %v10389_v40, %v10854_v13 }
 0x98a   : > { %v8102_v31 = vpop.eup %8101  ;;  %4556 = vst.msk [vmem:[#allocation4 + $0xf0] sm:$0xff] %vm390_vm0, %v4505_v23  ;;  %v4507_v4 = vpop.f32.mrb[153].mxu0  ;;  %v5056_v6 = vadd.f32 %v10803_v63, %v4986_v9  ;;  %v5234_v56 = vmul.f32 %v10876_v61, %v4782_v7  ;;  %v4917_v22 = vadd.f32 %v4885_v54, %v10783_v55  ;;  %v4955_v59 = vmul.f32 %v10402_v46, %v10794_v39  ;;  %v4584_v63 = vld [vmem:[#allocation4 + $0xaf] sm:$0xff] }
 0x98b   : > { %v5562_v0 = vmul.f32 %v8102_v31, %v10746_v24  ;;  %8107 = vrcp.f32 %v5468_v35  ;;  %v5304_v10 = vmul.f32 %v10460_v14, %v5265_v32  ;;  %v4819_v27 = vmul.f32 %v10393_v52, %v4783_v49  ;;  %v10888_v7 = vld [vmem:[#allocation4 + $0xb0] sm:$0xff] }
 0x98c   : > { %8109 = vpow2.f32 %v6358_v51  ;;  %v5126_v62 = vadd.f32 %v5094_v25, %v5056_v6  ;;  %v10886_v41 = vmul.f32 %v10398_v37, %v4583_v58  ;;  %v4987_v26 = vadd.f32 %v4955_v59, %v4917_v22 }
 0x98d   : > { %v5594_v55 = vadd.f32 %v5562_v0, %v10590_v3  ;;  %v4510_v54 = vpop.f32.mrb[154].mxu0  ;;  %v10892_v33 = vadd.f32 %v10473_v15, %v5304_v10  ;;  %v4751_v24 = vadd.f32 %v4719_v47, %v4619_v18  ;;  %v5095_v14 = vmul.f32 %v10421_v60, %v4583_v58  ;;  %v4585_v10 = vld [vmem:[#allocation4 + $0xb7] sm:$0xff] }
 0x98e   : > { %v8104_v43 = vpop.eup %8103  ;;  %4557 = vst.msk [vmem:[#allocation4 + $0xf8] sm:$0xff] %vm390_vm0, %v4510_v54  ;;  %v4512_v42 = vpop.f32.mrb[155].mxu0  ;;  %v5196_v45 = vadd.f32 %v5164_v16, %v5126_v62  ;;  %v5057_v9 = vadd.f32 %v5025_v5, %v4987_v26  ;;  %v5165_v25 = vmul.f32 %v10424_v34, %v10854_v13  ;;  %v4620_v3 = vmul.f32 %v10387_v12, %v4584_v63  ;;  %v10920_v62 = vld [vmem:[#allocation4 + $0xb8] sm:$0xff] }
 0x98f   : > { %v8106_v35 = vpop.eup %8105  ;;  %7324 = vmatmul.mubr.msk.f32.gmra.mrb[162].mxu1 %vm390_vm0, %v5594_v55  ;;  %v5469_v15 = vadd.f32 1.0, %v8104_v43  ;;  %v6359_v18 = vmul.f32 -1.442695, %v10892_v33  ;;  %v5235_v58 = vmul.f32 %v10876_v61, %v4783_v49  ;;  %v4720_v23 = vmul.f32 %v10389_v40, %v10888_v7  ;;  %v10930_v55 = vld [vmem:[%s11405_s7] ss:$0 sm:$0xff] }
 0x990   : > { %v5563_v51 = vmul.f32 %v8106_v35, %v10766_v21  ;;  %v5266_v16 = vadd.f32 %v5234_v56, %v5196_v45  ;;  %v5127_v5 = vadd.f32 %v5095_v14, %v5057_v9  ;;  %v4820_v32 = vmul.f32 %v10393_v52, %v10895_v44  ;;  %v10917_v21 = vld [vmem:[%s11404_s6] ss:$0 sm:$0xff] }
 0x991   : > { %8111 = vrcp.f32 %v5469_v15  ;;  %v4515_v47 = vpop.f32.mrb[156].mxu0  ;;  %v4752_v31 = vadd.f32 %v4720_v23, %v4620_v3  ;;  %v4918_v4 = vadd.f32 %v4886_v30, %v10811_v28  ;;  %v4956_v6 = vmul.f32 %v10402_v46, %v10824_v19 }
 0x992   : > { %v5595_v22 = vadd.f32 %v5563_v51, %v10614_v48  ;;  %8113 = vpow2.f32 %v6359_v18  ;;  %4558 = vst.msk [vmem:[#allocation4 + $0x100] sm:$0xff] %vm390_vm0, %v4515_v47  ;;  %v4517_v59 = vpop.f32.mrb[157].mxu0  ;;  %v5305_v56 = vmul.f32 %v10917_v21, %v5266_v16  ;;  %v5197_v0 = vadd.f32 %v5165_v25, %v5127_v5 }
 0x993   : > { %v10922_v28 = vadd.f32 %v4819_v27, %v4751_v24  ;;  %v5027_v30 = vmul.f32 %v10408_v17, %v4783_v49  ;;  %v4988_v48 = vadd.f32 %v4956_v6, %v4918_v4  ;;  %v5096_v26 = vmul.f32 %v10421_v60, %v4584_v63  ;;  %v4785_v24 = vld [vmem:[#allocation4 + $0xb9] sm:$0xff] }
 0x994   : > { %7326 = vmatprep.mubr.msk.f32.mxu1 %vm390_vm0, %v5595_v22  ;;  %v10933_v54 = vadd.f32 %v10930_v55, %v5305_v56  ;;  %v5267_v14 = vadd.f32 %v5235_v58, %v5197_v0  ;;  %v10935_v43 = vadd.f32 %v4820_v32, %v4752_v31  ;;  %v4888_v27 = vmul.f32 %v10398_v37, %v4584_v63  ;;  %v4586_v31 = vld [vmem:[#allocation4 + $0xbf] sm:$0xff] }
 0x995   : > { %v8108_v49 = vpop.eup %8107  ;;  %v4520_v42 = vpop.f32.mrb[158].mxu0  ;;  %v5058_v45 = vadd.f32 %v10862_v8, %v4988_v48  ;;  %v5166_v9 = vmul.f32 %v10424_v34, %v10888_v7  ;;  %v4621_v25 = vmul.f32 %v10387_v12, %v4585_v10  ;;  %v4721_v3 = vmul.f32 %v10389_v40, %v10920_v62  ;;  %v10959_v4 = vld [vmem:[#allocation4 + $0xc0] sm:$0xff] }
 0x996   : > { %v8110_v35 = vpop.eup %8109  ;;  %v5564_v15 = vmul.f32 %v8108_v49, %v10798_v57  ;;  %v6360_v18 = vmul.f32 -1.442695, %v10933_v54  ;;  %4559 = vst.msk [vmem:[#allocation4 + $0x108] sm:$0xff] %vm390_vm0, %v4520_v42  ;;  %v4522_v63 = vpop.f32.mrb[159].mxu0  ;;  %v5306_v58 = vmul.f32 %v10917_v21, %v5267_v14  ;;  %v5236_v8 = vmul.f32 %v10876_v61, %v10895_v44  ;;  %v4786_v48 = vld [vmem:[#allocation4 + $0xc1] sm:$0xff] }
 0x997   : > { %v5470_v23 = vadd.f32 1.0, %v8110_v35  ;;  %v5128_v51 = vadd.f32 %v5096_v26, %v5058_v45  ;;  %v4821_v16 = vmul.f32 %v10393_v52, %v4785_v24  ;;  %v4919_v5 = vadd.f32 %v10886_v41, %v10848_v50 }
 0x998   : > { %v5596_v32 = vadd.f32 %v5564_v15, %v10655_v2  ;;  %8115 = vpow2.f32 %v6360_v18  ;;  %v10955_v57 = vadd.f32 %v10930_v55, %v5306_v58  ;;  %v4957_v47 = vmul.f32 %v10402_v46, %v10854_v13 }
 0x999   : > { %8117 = vrcp.f32 %v5470_v23  ;;  %v4525_v6 = vpop.f32.mrb[160].mxu0  ;;  %v5028_v22 = vmul.f32 %v10408_v17, %v10895_v44  ;;  %v5198_v59 = vadd.f32 %v5166_v9, %v5128_v51  ;;  %v4753_v56 = vadd.f32 %v4721_v3, %v4621_v25  ;;  %v4587_v51 = vld [vmem:[#allocation4 + $0xc7] sm:$0xff] }
 0x99a   : > { %7327 = vmatmul.mubr.msk.f32.gmra.mrb[164].mxu1 %vm390_vm0, %v5596_v32  ;;  %v6361_v2 = vmul.f32 -1.442695, %v10955_v57  ;;  %4560 = vst.msk [vmem:[#allocation4 + $0x110] sm:$0xff] %vm390_vm0, %v4525_v6  ;;  %v4889_v50 = vmul.f32 %v10398_v37, %v4585_v10  ;;  %v4989_v41 = vadd.f32 %v4957_v47, %v4919_v5  ;;  %v5097_v0 = vmul.f32 %v10421_v60, %v4585_v10  ;;  %v4527_v26 = vpop.f32.mrb[161].mxu0 }
 0x99b   : > { %v8112_v14 = vpop.eup %8111  ;;  %v5268_v49 = vadd.f32 %v5236_v8, %v5198_v59  ;;  %v10968_v42 = vadd.f32 %v4821_v16, %v4753_v56  ;;  %v4622_v44 = vmul.f32 %v10387_v12, %v4586_v31  ;;  %v4722_v45 = vmul.f32 %v10389_v40, %v10959_v4 }
 0x99c   : > { %v8114_v9 = vpop.eup %8113  ;;  %v5565_v25 = vmul.f32 %v8112_v14, %v10828_v29  ;;  %8119 = vpow2.f32 %v6361_v2  ;;  %v5059_v3 = vadd.f32 %v5027_v30, %v4989_v41  ;;  %v5167_v35 = vmul.f32 %v10424_v34, %v10920_v62  ;;  %v10983_v30 = vld [vmem:[#allocation4 + $0xc8] sm:$0xff] }
 0x99d   : > { %v5471_v10 = vadd.f32 1.0, %v8114_v9  ;;  %v5307_v15 = vmul.f32 %v10917_v21, %v5268_v49  ;;  %v5237_v18 = vmul.f32 %v10876_v61, %v4785_v24  ;;  %v4822_v63 = vmul.f32 %v10393_v52, %v4786_v48 }
 0x99e   : > { %v5597_v58 = vadd.f32 %v5565_v25, %v10685_v1  ;;  %v5129_v8 = vadd.f32 %v5097_v0, %v5059_v3  ;;  %v4920_v23 = vadd.f32 %v4888_v27, %v10859_v11  ;;  %v4958_v29 = vmul.f32 %v10402_v46, %v10888_v7  ;;  %v4787_v27 = vld [vmem:[#allocation4 + $0xc9] sm:$0xff] }
 0x99f   : > { %8121 = vrcp.f32 %v5471_v10  ;;  %v10986_v16 = vadd.f32 %v10930_v55, %v5307_v15  ;;  %v5029_v5 = vmul.f32 %v10408_v17, %v4785_v24  ;;  %v4754_v32 = vadd.f32 %v4722_v45, %v4622_v44  ;;  %v4588_v10 = vld [vmem:[#allocation4 + $0xcf] sm:$0xff] }
 0x9a0   : > { %7329 = vmatprep.mubr.msk.f32.mxu1 %vm390_vm0, %v5597_v58  ;;  %v5199_v47 = vadd.f32 %v5167_v35, %v5129_v8  ;;  %v4890_v1 = vmul.f32 %v10398_v37, %v4586_v31  ;;  %v4990_v6 = vadd.f32 %v4958_v29, %v4920_v23  ;;  %v5098_v11 = vmul.f32 %v10421_v60, %v4586_v31  ;;  %v11009_v58 = vld [vmem:[#allocation4 + $0xd0] sm:$0xff] }
 0x9a1   : > { %v6362_v59 = vmul.f32 -1.442695, %v10986_v16  ;;  %v10993_v56 = vadd.f32 %v4822_v63, %v4754_v32  ;;  %v4623_v2 = vmul.f32 %v10387_v12, %v4587_v51  ;;  %v4723_v41 = vmul.f32 %v10389_v40, %v10983_v30 }
 0x9a2   : > { %v8116_v24 = vpop.eup %8115  ;;  %v5269_v0 = vadd.f32 %v5237_v18, %v5199_v47  ;;  %v5060_v26 = vadd.f32 %v5028_v22, %v4990_v6  ;;  %v5168_v14 = vmul.f32 %v10424_v34, %v10959_v4  ;;  %v5238_v49 = vmul.f32 %v10876_v61, %v4786_v48 }
 0x9a3   : > { %v8118_v44 = vpop.eup %8117  ;;  %v5472_v31 = vadd.f32 1.0, %v8116_v24  ;;  %8123 = vpow2.f32 %v6362_v59  ;;  %v4823_v45 = vmul.f32 %v10393_v52, %v4787_v27  ;;  %v4921_v9 = vadd.f32 %v4889_v50, %v10922_v28 }
 0x9a4   : > { %v5566_v25 = vmul.f32 %v8118_v44, %v10857_v53  ;;  %v5308_v3 = vmul.f32 %v10917_v21, %v5269_v0  ;;  %v5130_v35 = vadd.f32 %v5098_v11, %v5060_v26  ;;  %v4959_v22 = vmul.f32 %v10402_v46, %v10920_v62 }
 0x9a5   : > { %8125 = vrcp.f32 %v5472_v31  ;;  %v5030_v15 = vmul.f32 %v10408_v17, %v4786_v48  ;;  %v4755_v18 = vadd.f32 %v4723_v41, %v4623_v2  ;;  %v5099_v63 = vmul.f32 %v10421_v60, %v4587_v51  ;;  %v4788_v2 = vld [vmem:[#allocation4 + $0xd1] sm:$0xff] }
 0x9a6   : > { %v8120_v8 = vpop.eup %8119  ;;  %v5598_v28 = vadd.f32 %v5566_v25, %v10715_v38  ;;  %v11013_v53 = vadd.f32 %v10930_v55, %v5308_v3  ;;  %v5200_v50 = vadd.f32 %v5168_v14, %v5130_v35  ;;  %v4991_v23 = vadd.f32 %v4959_v22, %v4921_v9  ;;  %v11034_v25 = vld [vmem:[#allocation4 + $0xd8] sm:$0xff] }
 0x9a7   : > { %v5473_v29 = vadd.f32 1.0, %v8120_v8  ;;  %v11015_v32 = vadd.f32 %v4823_v45, %v4755_v18  ;;  %v4891_v47 = vmul.f32 %v10398_v37, %v4587_v51  ;;  %v4624_v48 = vmul.f32 %v10387_v12, %v4588_v10 }
 0x9a8   : > { %7330 = vmatmul.mubr.msk.f32.gmra.mrb[166].mxu1 %vm390_vm0, %v5598_v28  ;;  %v6363_v6 = vmul.f32 -1.442695, %v11013_v53  ;;  %v5270_v11 = vadd.f32 %v5238_v49, %v5200_v50  ;;  %v5061_v59 = vadd.f32 %v5029_v5, %v4991_v23  ;;  %v4724_v38 = vmul.f32 %v10389_v40, %v11009_v58  ;;  %v4589_v5 = vld [vmem:[#allocation4 + $0xd7] sm:$0xff] }
 0x9a9   : > { %v8122_v41 = vpop.eup %8121  ;;  %8127 = vrcp.f32 %v5473_v29  ;;  %v5169_v24 = vmul.f32 %v10424_v34, %v10983_v30  ;;  %v5239_v0 = vmul.f32 %v10876_v61, %v4787_v27  ;;  %v4922_v51 = vadd.f32 %v4890_v1, %v10935_v43  ;;  %v4789_v23 = vld [vmem:[#allocation4 + $0xd9] sm:$0xff] }
 0x9aa   : > { %v5567_v26 = vmul.f32 %v8122_v41, %v10892_v33  ;;  %8129 = vpow2.f32 %v6363_v6  ;;  %v5309_v14 = vmul.f32 %v10917_v21, %v5270_v11  ;;  %v5131_v49 = vadd.f32 %v5099_v63, %v5061_v59 }
 0x9ab   : > { %v5031_v44 = vmul.f32 %v10408_v17, %v4787_v27  ;;  %v4824_v31 = vmul.f32 %v10393_v52, %v4788_v2  ;;  %v4892_v45 = vmul.f32 %v10398_v37, %v4588_v10  ;;  %v4960_v9 = vmul.f32 %v10402_v46, %v10959_v4 }
 0x9ac   : > { %v5599_v43 = vadd.f32 %v5567_v26, %v10737_v36  ;;  %v11038_v33 = vadd.f32 %v10930_v55, %v5309_v14  ;;  %v5201_v1 = vadd.f32 %v5169_v24, %v5131_v49  ;;  %v4756_v3 = vadd.f32 %v4724_v38, %v4624_v48  ;;  %v11060_v26 = vld [vmem:[#allocation4 + $0xe0] sm:$0xff] }
 0x9ad   : > { %v8124_v35 = vpop.eup %8123  ;;  %v4992_v22 = vadd.f32 %v4960_v9, %v4922_v51  ;;  %v11041_v27 = vmul.f32 %v10408_v17, %v4788_v2  ;;  %v5100_v18 = vmul.f32 %v10421_v60, %v4588_v10  ;;  %v4625_v63 = vmul.f32 %v10387_v12, %v4589_v5  ;;  %v4790_v49 = vld [vmem:[#allocation4 + $0xe1] sm:$0xff] }
 0x9ae   : > { %7332 = vmatprep.mubr.msk.f32.mxu1 %vm390_vm0, %v5599_v43  ;;  %v5474_v8 = vadd.f32 1.0, %v8124_v35  ;;  %v6364_v28 = vmul.f32 -1.442695, %v11038_v33  ;;  %v5271_v36 = vadd.f32 %v5239_v0, %v5201_v1  ;;  %v4725_v50 = vmul.f32 %v10389_v40, %v11034_v25 }
 0x9af   : > { %v8126_v29 = vpop.eup %8125  ;;  %v11049_v48 = vadd.f32 %v4824_v31, %v4756_v3  ;;  %v5062_v6 = vadd.f32 %v5030_v15, %v4992_v22  ;;  %v5170_v11 = vmul.f32 %v10424_v34, %v11009_v58  ;;  %v4923_v10 = vadd.f32 %v4891_v47, %v10968_v42  ;;  %v4590_v15 = vld [vmem:[#allocation4 + $0xdf] sm:$0xff] }
 0x9b0   : > { %v5568_v59 = vmul.f32 %v8126_v29, %v10933_v54  ;;  %8131 = vrcp.f32 %v5474_v8  ;;  %v5310_v38 = vmul.f32 %v10917_v21, %v5271_v36  ;;  %v5240_v41 = vmul.f32 %v10876_v61, %v4788_v2 }
 0x9b1   : > { %8133 = vpow2.f32 %v6364_v28  ;;  %v5132_v24 = vadd.f32 %v5100_v18, %v5062_v6  ;;  %v4825_v0 = vmul.f32 %v10393_v52, %v4789_v23  ;;  %v4961_v51 = vmul.f32 %v10402_v46, %v10983_v30 }
 0x9b2   : > { %v5600_v14 = vadd.f32 %v5568_v59, %v10769_v20  ;;  %v11064_v42 = vadd.f32 %v10930_v55, %v5310_v38  ;;  %v4757_v54 = vadd.f32 %v4725_v50, %v4625_v63  ;;  %v4893_v47 = vmul.f32 %v10398_v37, %v4589_v5  ;;  %v11081_v59 = vld [vmem:[#allocation4 + $0xe8] sm:$0xff] }
 0x9b3   : > { %v8128_v2 = vpop.eup %8127  ;;  %v5202_v31 = vadd.f32 %v5170_v11, %v5132_v24  ;;  %v4993_v9 = vadd.f32 %v4961_v51, %v4923_v10  ;;  %v5101_v43 = vmul.f32 %v10421_v60, %v4589_v5  ;;  %v5171_v1 = vmul.f32 %v10424_v34, %v11034_v25  ;;  %v4591_v10 = vld [vmem:[#allocation4 + $0xe7] sm:$0xff] }
 0x9b4   : > { %v8130_v3 = vpop.eup %8129  ;;  %7333 = vmatmul.mubr.msk.f32.gmra.mrb[168].mxu1 %vm390_vm0, %v5600_v14  ;;  %v5569_v20 = vmul.f32 %v8128_v2, %v10955_v57  ;;  %v6365_v35 = vmul.f32 -1.442695, %v11064_v42  ;;  %v4626_v22 = vmul.f32 %v10387_v12, %v4590_v15  ;;  %v4726_v18 = vmul.f32 %v10389_v40, %v11060_v26 }
 0x9b5   : > { %v5475_v63 = vadd.f32 1.0, %v8130_v3  ;;  %v5272_v8 = vadd.f32 %v5240_v41, %v5202_v31  ;;  %v5063_v28 = vadd.f32 %v5031_v44, %v4993_v9  ;;  %v4826_v5 = vmul.f32 %v10393_v52, %v4790_v49 }
 0x9b6   : > { %v5601_v36 = vadd.f32 %v5569_v20, %v10794_v39  ;;  %8135 = vpow2.f32 %v6365_v35  ;;  %v5241_v50 = vmul.f32 %v10876_v61, %v4789_v23  ;;  %v4758_v29 = vadd.f32 %v4726_v18, %v4626_v22 }
 0x9b7   : > { %8137 = vrcp.f32 %v5475_v63  ;;  %v5311_v57 = vmul.f32 %v10917_v21, %v5272_v8  ;;  %v5133_v6 = vadd.f32 %v5101_v43, %v5063_v28  ;;  %v4924_v11 = vadd.f32 %v4892_v45, %v10993_v56  ;;  %v4791_v45 = vld [vmem:[#allocation4 + $0xe9] sm:$0xff] }
 0x9b8   : > { %7335 = vmatprep.mubr.msk.f32.mxu1 %vm390_vm0, %v5601_v36  ;;  %v11084_v44 = vadd.f32 %v4825_v0, %v4757_v54  ;;  %v5033_v38 = vmul.f32 %v10408_v17, %v4789_v23  ;;  %v4894_v39 = vmul.f32 %v10398_v37, %v4590_v15  ;;  %v4962_v41 = vmul.f32 %v10402_v46, %v11009_v58  ;;  %v4592_v28 = vld [vmem:[#allocation4 + $0xef] sm:$0xff] }
 0x9b9   : > { %v11091_v24 = vadd.f32 %v10930_v55, %v5311_v57  ;;  %v5203_v51 = vadd.f32 %v5171_v1, %v5133_v6  ;;  %v11093_v14 = vadd.f32 %v4826_v5, %v4758_v29  ;;  %v11096_v56 = vmul.f32 %v10408_v17, %v4790_v49  ;;  %v11113_v5 = vld [vmem:[#allocation4 + $0xf0] sm:$0xff] }
 0x9ba   : > { %v8132_v2 = vpop.eup %8131  ;;  %v4994_v0 = vadd.f32 %v4962_v41, %v4924_v11  ;;  %v5102_v54 = vmul.f32 %v10421_v60, %v4590_v15  ;;  %v4627_v23 = vmul.f32 %v10387_v12, %v4591_v10  ;;  %v4727_v31 = vmul.f32 %v10389_v40, %v11081_v59  ;;  %v4792_v57 = vld [vmem:[#allocation4 + $0xf1] sm:$0xff] }
 0x9bb   : > { %v8134_v9 = vpop.eup %8133  ;;  %v5570_v43 = vmul.f32 %v8132_v2, %v10986_v16  ;;  %v6366_v1 = vmul.f32 -1.442695, %v11091_v24  ;;  %v5273_v3 = vadd.f32 %v5241_v50, %v5203_v51  ;;  %v5172_v20 = vmul.f32 %v10424_v34, %v11060_v26 }
 0x9bc   : > { %v5476_v35 = vadd.f32 1.0, %v8134_v9  ;;  %v5064_v22 = vadd.f32 %v11041_v27, %v4994_v0  ;;  %v4827_v18 = vmul.f32 %v10393_v52, %v4791_v45  ;;  %v4925_v15 = vadd.f32 %v4893_v47, %v11015_v32 }
 0x9bd   : > { %v5602_v63 = vadd.f32 %v5570_v43, %v10824_v19  ;;  %8139 = vpow2.f32 %v6366_v1  ;;  %v5312_v8 = vmul.f32 %v10917_v21, %v5273_v3  ;;  %v4963_v16 = vmul.f32 %v10402_v46, %v11034_v25 }
 0x9be   : > { %8141 = vrcp.f32 %v5476_v35  ;;  %v5134_v36 = vadd.f32 %v5102_v54, %v5064_v22  ;;  %v5242_v50 = vmul.f32 %v10876_v61, %v4790_v49  ;;  %v4759_v27 = vadd.f32 %v4727_v31, %v4627_v23 }
 0x9bf   : > { %7336 = vmatmul.mubr.msk.f32.gmra.mrb[170].mxu1 %vm390_vm0, %v5602_v63  ;;  %v11118_v32 = vadd.f32 %v10930_v55, %v5312_v8  ;;  %v4895_v19 = vmul.f32 %v10398_v37, %v4591_v10  ;;  %v4995_v47 = vadd.f32 %v4963_v16, %v4925_v15  ;;  %v5103_v29 = vmul.f32 %v10421_v60, %v4591_v10  ;;  %v4593_v15 = vld [vmem:[#allocation4 + $0xf7] sm:$0xff] }
 0x9c0   : > { %v8136_v6 = vpop.eup %8135  ;;  %v5204_v11 = vadd.f32 %v5172_v20, %v5134_v36  ;;  %v11122_v41 = vadd.f32 %v4827_v18, %v4759_v27  ;;  %v4628_v51 = vmul.f32 %v10387_v12, %v4592_v28  ;;  %v4728_v49 = vmul.f32 %v10389_v40, %v11113_v5  ;;  %v11140_v36 = vld [vmem:[#allocation4 + $0xf8] sm:$0xff] }
 0x9c1   : > { %v8138_v2 = vpop.eup %8137  ;;  %v5477_v0 = vadd.f32 1.0, %v8136_v6  ;;  %v6367_v54 = vmul.f32 -1.442695, %v11118_v32  ;;  %v5065_v23 = vadd.f32 %v5033_v38, %v4995_v47  ;;  %v5173_v31 = vmul.f32 %v10424_v34, %v11081_v59 }
 0x9c2   : > { %v5571_v10 = vmul.f32 %v8138_v2, %v11013_v53  ;;  %v5274_v9 = vadd.f32 %v5242_v50, %v5204_v11  ;;  %v5243_v43 = vmul.f32 %v10876_v61, %v4791_v45  ;;  %v4828_v1 = vmul.f32 %v10393_v52, %v4792_v57  ;;  %v4793_v11 = vld [vmem:[#allocation4 + $0xf9] sm:$0xff] }
 0x9c3   : > { %8143 = vrcp.f32 %v5477_v0  ;;  %v5135_v3 = vadd.f32 %v5103_v29, %v5065_v23  ;;  %v4926_v20 = vadd.f32 %v4894_v39, %v11049_v48  ;;  %v4964_v35 = vmul.f32 %v10402_v46, %v11060_v26 }
 0x9c4   : > { %v5603_v22 = vadd.f32 %v5571_v10, %v10854_v13  ;;  %8145 = vpow2.f32 %v6367_v54  ;;  %v5313_v38 = vmul.f32 %v10917_v21, %v5274_v9  ;;  %v4760_v18 = vadd.f32 %v4728_v49, %v4628_v51 }
 0x9c5   : > { %v5035_v53 = vmul.f32 %v10408_v17, %v4791_v45  ;;  %v5205_v63 = vadd.f32 %v5173_v31, %v5135_v3  ;;  %v4996_v8 = vadd.f32 %v4964_v35, %v4926_v20  ;;  %v5104_v16 = vmul.f32 %v10421_v60, %v4592_v28  ;;  %v11167_v3 = vld [vmem:[#allocation4 + $0x100] sm:$0xff] }
 0x9c6   : > { %7338 = vmatprep.mubr.msk.f32.mxu1 %vm390_vm0, %v5603_v22  ;;  %v11144_v48 = vadd.f32 %v10930_v55, %v5313_v38  ;;  %v11146_v39 = vadd.f32 %v4828_v1, %v4760_v18  ;;  %v4896_v13 = vmul.f32 %v10398_v37, %v4592_v28  ;;  %v11150_v50 = vmul.f32 %v10408_v17, %v4792_v57  ;;  %v4594_v1 = vld [vmem:[#allocation4 + $0xff] sm:$0xff] }
 0x9c7   : > { %v8140_v27 = vpop.eup %8139  ;;  %v5275_v45 = vadd.f32 %v5243_v43, %v5205_v63  ;;  %v5066_v47 = vadd.f32 %v11096_v56, %v4996_v8  ;;  %v5174_v29 = vmul.f32 %v10424_v34, %v11113_v5  ;;  %v4629_v6 = vmul.f32 %v10387_v12, %v4593_v15  ;;  %v4794_v38 = vld [vmem:[#allocation4 + $0x101] sm:$0xff] }
 0x9c8   : > { %v8142_v51 = vpop.eup %8141  ;;  %v5478_v49 = vadd.f32 1.0, %v8140_v27  ;;  %v6368_v2 = vmul.f32 -1.442695, %v11144_v48  ;;  %v4729_v28 = vmul.f32 %v10389_v40, %v11140_v36  ;;  %v4927_v0 = vadd.f32 %v4895_v19, %v11084_v44 }
 0x9c9   : > { %v5572_v54 = vmul.f32 %v8142_v51, %v11038_v33  ;;  %v5314_v23 = vmul.f32 %v10917_v21, %v5275_v45  ;;  %v5136_v56 = vadd.f32 %v5104_v16, %v5066_v47  ;;  %v5244_v31 = vmul.f32 %v10876_v61, %v4792_v57 }
 0x9ca   : > { %8147 = vrcp.f32 %v5478_v49  ;;  %v4829_v10 = vmul.f32 %v10393_v52, %v4793_v11  ;;  %v4897_v9 = vmul.f32 %v10398_v37, %v4593_v15  ;;  %v4965_v43 = vmul.f32 %v10402_v46, %v11081_v59 }
 0x9cb   : > { %v5604_v44 = vadd.f32 %v5572_v54, %v10888_v7  ;;  %8149 = vpow2.f32 %v6368_v2  ;;  %v11171_v33 = vadd.f32 %v10930_v55, %v5314_v23  ;;  %v5206_v19 = vadd.f32 %v5174_v29, %v5136_v56  ;;  %v4863_v23 = vld [vmem:[#allocation4 + $0x107] sm:$0xff] }
 0x9cc   : > { %v4761_v20 = vadd.f32 %v4729_v28, %v4629_v6  ;;  %v4997_v57 = vadd.f32 %v4965_v43, %v4927_v0  ;;  %v5037_v35 = vmul.f32 %v10408_v17, %v4793_v11  ;;  %v5105_v22 = vmul.f32 %v10421_v60, %v4593_v15 }
 0x9cd   : > { %v8144_v18 = vpop.eup %8143  ;;  %7339 = vmatmul.mubr.msk.f32.gmra.mrb[172].mxu1 %vm390_vm0, %v5604_v44  ;;  %v6369_v63 = vmul.f32 -1.442695, %v11171_v33  ;;  %v5276_v8 = vadd.f32 %v5244_v31, %v5206_v19  ;;  %v4630_v7 = vmul.f32 %v10387_v12, %v4594_v1  ;;  %v4730_v16 = vmul.f32 %v10389_v40, %v11167_v3 }
 0x9ce   : > { %v8146_v27 = vpop.eup %8145  ;;  %v5573_v45 = vmul.f32 %v8144_v18, %v11064_v42  ;;  %v5067_v47 = vadd.f32 %v5035_v53, %v4997_v57  ;;  %v5175_v29 = vmul.f32 %v10424_v34, %v11140_v36  ;;  %v5245_v15 = vmul.f32 %v10876_v61, %v4793_v11  ;;  %v5003_v57 = vld [vmem:[#allocation4 + $0x109] sm:$0xff] }
 0x9cf   : > { %v5479_v6 = vadd.f32 1.0, %v8146_v27  ;;  %8151 = vpow2.f32 %v6369_v63  ;;  %v5315_v51 = vmul.f32 %v10917_v21, %v5276_v8  ;;  %v4830_v49 = vmul.f32 %v10393_v52, %v4794_v38 }
 0x9d0   : > { %v5605_v12 = vadd.f32 %v5573_v45, %v10920_v62  ;;  %v5137_v2 = vadd.f32 %v5105_v22, %v5067_v47  ;;  %v4928_v40 = vadd.f32 %v4896_v13, %v11093_v14  ;;  %v4966_v42 = vmul.f32 %v10402_v46, %v11113_v5 }
 0x9d1   : > { %8153 = vrcp.f32 %v5479_v6  ;;  %v11191_v53 = vadd.f32 %v10930_v55, %v5315_v51  ;;  %v4861_v28 = vadd.f32 %v4829_v10, %v4761_v20  ;;  %v4762_v11 = vadd.f32 %v4730_v16, %v4630_v7  ;;  %v11204_v20 = vld [vmem:[#allocation4 + $0x108] sm:$0xff]  ;;  %v11220_v6 = vld [vmem:[#allocation4 + $0x110] sm:$0xff] }
 0x9d2   : > { %7341 = vmatprep.mubr.msk.f32.mxu1 %vm390_vm0, %v5605_v12  ;;  %v5207_v0 = vadd.f32 %v5175_v29, %v5137_v2  ;;  %v4898_v54 = vmul.f32 %v10398_v37, %v4594_v1  ;;  %v4998_v52 = vadd.f32 %v4966_v42, %v4928_v40  ;;  %v5106_v62 = vmul.f32 %v10421_v60, %v4594_v1 }
 0x9d3   : > { %v6370_v14 = vmul.f32 -1.442695, %v11191_v53  ;;  %v11197_v13 = vadd.f32 %v4830_v49, %v4762_v11  ;;  %v5038_v56 = vmul.f32 %v10408_v17, %v4794_v38  ;;  %v4929_v31 = vadd.f32 %v4897_v9, %v11122_v41 }
 0x9d4   : > { %v8148_v43 = vpop.eup %8147  ;;  %v5277_v10 = vadd.f32 %v5245_v15, %v5207_v0  ;;  %v5068_v44 = vadd.f32 %v11150_v50, %v4998_v52  ;;  %v5176_v19 = vmul.f32 %v10424_v34, %v11167_v3  ;;  %v4967_v1 = vmul.f32 %v10402_v46, %v11140_v36  ;;  %v4864_v15 = vld [vmem:[#allocation4 + $0x10f] sm:$0xff] }
 0x9d5   : > { %v8150_v22 = vpop.eup %8149  ;;  %v5574_v18 = vmul.f32 %v8148_v43, %v11091_v24  ;;  %8155 = vpow2.f32 %v6370_v14  ;;  %v5246_v63 = vmul.f32 %v10876_v61, %v4794_v38  ;;  %v5107_v41 = vmul.f32 %v10421_v60, %v4863_v23  ;;  %v5004_v0 = vld [vmem:[#allocation4 + $0x111] sm:$0xff] }
 0x9d6   : > { %v5480_v9 = vadd.f32 1.0, %v8150_v22  ;;  %v5316_v50 = vmul.f32 %v10917_v21, %v5277_v10  ;;  %v5138_v8 = vadd.f32 %v5106_v62, %v5068_v44  ;;  %v4999_v7 = vadd.f32 %v4967_v1, %v4929_v31  ;;  %v5073_v1 = vld [vmem:[#allocation4 + $0x117] sm:$0xff] }
 0x9d7   : > { %v5606_v16 = vadd.f32 %v5574_v18, %v10959_v4  ;;  %v4899_v27 = vmul.f32 %v10398_v37, %v4863_v23  ;;  %v4969_v45 = vmul.f32 %v10402_v46, %v11204_v20  ;;  %v5039_v47 = vmul.f32 %v10408_v17, %v5003_v57 }
 0x9d8   : > { %8157 = vrcp.f32 %v5480_v9  ;;  %v11218_v24 = vadd.f32 %v10930_v55, %v5316_v50  ;;  %v5208_v38 = vadd.f32 %v5176_v19, %v5138_v8  ;;  %v5069_v29 = vadd.f32 %v5037_v35, %v4999_v7  ;;  %v5213_v50 = vld [vmem:[#allocation4 + $0x119] sm:$0xff] }
 0x9d9   : > { %v8152_v51 = vpop.eup %8151  ;;  %7342 = vmatmul.mubr.msk.f32.gmra.mrb[174].mxu1 %vm390_vm0, %v5606_v16  ;;  %v5177_v4 = vmul.f32 %v10424_v34, %v11204_v20  ;;  %v5247_v49 = vmul.f32 %v10876_v61, %v5003_v57  ;;  %v4930_v12 = vadd.f32 %v4898_v54, %v11146_v39  ;;  %v4968_v2 = vmul.f32 %v10402_v46, %v11167_v3 }
 0x9da   : > { %v5481_v40 = vadd.f32 1.0, %v8152_v51  ;;  %v6371_v42 = vmul.f32 -1.442695, %v11218_v24  ;;  %v5278_v35 = vadd.f32 %v5246_v63, %v5208_v38  ;;  %v5139_v11 = vadd.f32 %v5107_v41, %v5069_v29 }
 0x9db   : > { %v8154_v52 = vpop.eup %8153  ;;  %v4900_v62 = vmul.f32 %v10398_v37, %v4864_v15  ;;  %v4970_v23 = vmul.f32 %v10402_v46, %v11220_v6  ;;  %v5000_v14 = vadd.f32 %v4968_v2, %v4930_v12  ;;  %v5108_v31 = vmul.f32 %v10421_v60, %v4864_v15  ;;  %v5144_v15 = vld [vmem:[#allocation4 + $0x120] sm:$0xff] }
 0x9dc   : > { %v5575_v39 = vmul.f32 %v8154_v52, %v11118_v32  ;;  %8159 = vrcp.f32 %v5481_v40  ;;  %v5317_v54 = vmul.f32 %v10917_v21, %v5278_v35  ;;  %v5209_v43 = vadd.f32 %v5177_v4, %v5139_v11  ;;  %v5143_v32 = vld [vmem:[#allocation4 + $0x118] sm:$0xff]  ;;  %v5214_v40 = vld [vmem:[#allocation4 + $0x121] sm:$0xff] }
 0x9dd   : > { %8161 = vpow2.f32 %v6371_v42  ;;  %v5040_v10 = vmul.f32 %v10408_v17, %v5004_v0  ;;  %v5070_v44 = vadd.f32 %v5038_v56, %v5000_v14  ;;  %v4931_v19 = vadd.f32 %v4899_v27, %v4861_v28  ;;  %v5074_v28 = vld [vmem:[#allocation4 + $0x11f] sm:$0xff] }
 0x9de   : > { %v5607_v37 = vadd.f32 %v5575_v39, %v10983_v30  ;;  %v11239_v57 = vadd.f32 %v10930_v55, %v5317_v54  ;;  %v5279_v46 = vadd.f32 %v5247_v49, %v5209_v43  ;;  %v5178_v22 = vmul.f32 %v10424_v34, %v11220_v6 }
 0x9df   : > { %v8156_v18 = vpop.eup %8155  ;;  %v5140_v63 = vadd.f32 %v5108_v31, %v5070_v44  ;;  %v5248_v41 = vmul.f32 %v10876_v61, %v5004_v0  ;;  %v5001_v9 = vadd.f32 %v4969_v45, %v4931_v19  ;;  %v4932_v17 = vadd.f32 %v4900_v62, %v11197_v13 }
 0x9e0   : > { %7344 = vmatprep.mubr.msk.f32.mxu1 %vm390_vm0, %v5607_v37  ;;  %v5482_v30 = vadd.f32 1.0, %v8156_v18  ;;  %v6372_v56 = vmul.f32 -1.442695, %v11239_v57  ;;  %v5318_v8 = vmul.f32 %v10917_v21, %v5279_v46  ;;  %v5109_v7 = vmul.f32 %v10421_v60, %v5073_v1 }
 0x9e1   : > { %v5210_v16 = vadd.f32 %v5178_v22, %v5140_v63  ;;  %v5071_v27 = vadd.f32 %v5039_v47, %v5001_v9  ;;  %v5179_v38 = vmul.f32 %v10424_v34, %v5143_v32  ;;  %v5002_v29 = vadd.f32 %v4970_v23, %v4932_v17 }
 0x9e2   : > { %v8158_v45 = vpop.eup %8157  ;;  %8163 = vrcp.f32 %v5482_v30  ;;  %v11251_v13 = vadd.f32 %v10930_v55, %v5318_v8  ;;  %v5249_v51 = vmul.f32 %v10876_v61, %v5213_v50  ;;  %v5110_v4 = vmul.f32 %v10421_v60, %v5074_v28 }
 0x9e3   : > { %v5576_v49 = vmul.f32 %v8158_v45, %v11144_v48  ;;  %8165 = vpow2.f32 %v6372_v56  ;;  %v5280_v12 = vadd.f32 %v5248_v41, %v5210_v16  ;;  %v5141_v2 = vadd.f32 %v5109_v7, %v5071_v27 }
 0x9e4   : > { %v6373_v47 = vmul.f32 -1.442695, %v11251_v13  ;;  %v5072_v42 = vadd.f32 %v5040_v10, %v5002_v29  ;;  %v5180_v35 = vmul.f32 %v10424_v34, %v5144_v15  ;;  %v5250_v60 = vmul.f32 %v10876_v61, %v5214_v40 }
 0x9e5   : > { %v5608_v11 = vadd.f32 %v5576_v49, %v11009_v58  ;;  %v5319_v0 = vmul.f32 %v10917_v21, %v5280_v12  ;;  %v5211_v52 = vadd.f32 %v5179_v38, %v5141_v2  ;;  %v5943_v12 = vld [vmem:[%s11292_s24 + $0x18] sm:$0xff]  ;;  %v5942_v2 = vld [vmem:[%s11292_s24 + $0x10] sm:$0xff] }
 0x9e6   : > { %v8160_v62 = vpop.eup %8159  ;;  %8167 = vpow2.f32 %v6373_v47  ;;  %v5142_v23 = vadd.f32 %v5110_v4, %v5072_v42 }
 0x9e7   : > { %v8162_v48 = vpop.eup %8161  ;;  %7345 = vmatmul.mubr.msk.f32.gmra.mrb[176].mxu1 %vm390_vm0, %v5608_v11  ;;  %v5577_v14 = vmul.f32 %v8160_v62, %v11171_v33  ;;  %v5358_v31 = vadd.f32 %v10930_v55, %v5319_v0  ;;  %v5281_v39 = vadd.f32 %v5249_v51, %v5211_v52  ;;  %v5945_v11 = vld [vmem:[%s11292_s24 + $0x28] sm:$0xff]  ;;  %v5944_v0 = vld [vmem:[%s11292_s24 + $0x20] sm:$0xff] }
 0x9e8   : > { %v5483_v54 = vadd.f32 1.0, %v8162_v48  ;;  %v5212_v34 = vadd.f32 %v5180_v35, %v5142_v23  ;;  %v5947_v48 = vld [vmem:[%s11292_s24 + $0x38] sm:$0xff] }
 0x9e9   : > { %v5609_v58 = vadd.f32 %v5577_v14, %v11034_v25  ;;  %v6374_v43 = vmul.f32 -1.442695, %v5358_v31  ;;  %v5320_v10 = vmul.f32 %v10917_v21, %v5281_v39  ;;  %v5946_v14 = vld [vmem:[%s11292_s24 + $0x30] sm:$0xff] }
 0x9ea   : > { %8169 = vrcp.f32 %v5483_v54  ;;  %v5282_v44 = vadd.f32 %v5250_v60, %v5212_v34 }
 0x9eb   : > { %7347 = vmatprep.mubr.msk.f32.mxu1 %vm390_vm0, %v5609_v58  ;;  %8171 = vpow2.f32 %v6374_v43  ;;  %v5359_v61 = vadd.f32 %v10930_v55, %v5320_v10  ;;  %v5949_v58 = vld [vmem:[%s11292_s24 + $0x48] sm:$0xff]  ;;  %v5948_v43 = vld [vmem:[%s11292_s24 + $0x40] sm:$0xff] }
 0x9ec   : > { %v8164_v19 = vpop.eup %8163  ;;  %v5321_v33 = vmul.f32 %v10917_v21, %v5282_v44 }
 0x9ed   : > { %v8166_v1 = vpop.eup %8165  ;;  %v5578_v37 = vmul.f32 %v8164_v19, %v11191_v53  ;;  %v6375_v46 = vmul.f32 -1.442695, %v5359_v61 }
 0x9ee   : > { %v5484_v22 = vadd.f32 1.0, %v8166_v1  ;;  %v5360_v25 = vadd.f32 %v10930_v55, %v5321_v33  ;;  %v5951_v33 = vld [vmem:[%s11292_s24 + $0x58] sm:$0xff]  ;;  %v5950_v1 = vld [vmem:[%s11292_s24 + $0x50] sm:$0xff] }
 0x9ef   : > { %v5610_v32 = vadd.f32 %v5578_v37, %v11060_v26  ;;  %8173 = vpow2.f32 %v6375_v46 }
 0x9f0   : > { %v8168_v18 = vpop.eup %8167  ;;  %8175 = vrcp.f32 %v5484_v22  ;;  %v6376_v63 = vmul.f32 -1.442695, %v5360_v25 }
 0x9f1   : > { %7348 = vmatmul.mubr.msk.f32.gmra.mrb[178].mxu1 %vm390_vm0, %v5610_v32  ;;  %v5485_v41 = vadd.f32 1.0, %v8168_v18  ;;  %v5953_v32 = vld [vmem:[%s11292_s24 + $0x68] sm:$0xff]  ;;  %v5952_v18 = vld [vmem:[%s11292_s24 + $0x60] sm:$0xff] }
 0x9f2   : > { %8177 = vpow2.f32 %v6376_v63 }
 0x9f3   : > { %8179 = vrcp.f32 %v5485_v41 }
 0x9f4   : > { %v8170_v9 = vpop.eup %8169 }
 0x9f5   : > { %v8172_v21 = vpop.eup %8171  ;;  %v5579_v50 = vmul.f32 %v8170_v9, %v11218_v24 }
 0x9f6   : > { %v5486_v53 = vadd.f32 1.0, %v8172_v21 }
 0x9f7   : > { %v5611_v17 = vadd.f32 %v5579_v50, %v11081_v59  ;;  %v5955_v50 = vld [vmem:[%s11292_s24 + $0x78] sm:$0xff] }
 0x9f8   : > { %8181 = vrcp.f32 %v5486_v53  ;;  %v5954_v53 = vld [vmem:[%s11292_s24 + $0x70] sm:$0xff] }
 0x9f9   : > { %v8174_v55 = vpop.eup %8173  ;;  %7350 = vmatprep.mubr.msk.f32.mxu1 %vm390_vm0, %v5611_v17 }
 0x9fa   : > { %v8176_v26 = vpop.eup %8175  ;;  %v5487_v28 = vadd.f32 1.0, %v8174_v55 }
 0x9fb   : > { %v5580_v30 = vmul.f32 %v8176_v26, %v11239_v57 }
 0x9fc   : > { %v8178_v56 = vpop.eup %8177  ;;  %8183 = vrcp.f32 %v5487_v28 }
 0x9fd   : > { %v8180_v8 = vpop.eup %8179  ;;  %v5612_v7 = vadd.f32 %v5580_v30, %v11113_v5  ;;  %v5488_v16 = vadd.f32 1.0, %v8178_v56  ;;  %v5957_v30 = vld [vmem:[%s11292_s24 + $0x88] sm:$0xff]  ;;  %v5956_v56 = vld [vmem:[%s11292_s24 + $0x80] sm:$0xff] }
 0x9fe   : > { %v5581_v27 = vmul.f32 %v8180_v8, %v11251_v13 }
 0x9ff   : > { %7351 = vmatmul.mubr.msk.f32.gmra.mrb[180].mxu1 %vm390_vm0, %v5612_v7  ;;  %8185 = vrcp.f32 %v5488_v16 }
 0xa00   : > { %v5613_v59 = vadd.f32 %v5581_v27, %v11140_v36  ;;  %v5941_v36 = vld [vmem:[%s11292_s24 + $0x8] sm:$0xff] }
 0xa02   : > { %v8182_v24 = vpop.eup %8181  ;;  %7353 = vmatprep.mubr.msk.f32.mxu1 %vm390_vm0, %v5613_v59  ;;  %v5959_v59 = vld [vmem:[%s11292_s24 + $0x98] sm:$0xff] }
 0xa03   : > { %v5582_v38 = vmul.f32 %v8182_v24, %v5358_v31  ;;  %v5958_v24 = vld [vmem:[%s11292_s24 + $0x90] sm:$0xff] }
 0xa05   : > { %v5614_v57 = vadd.f32 %v5582_v38, %v11167_v3  ;;  %v5940_v3 = vld [vmem:[%s11292_s24] sm:$0xff] }
 0xa06   : > { %v8184_v29 = vpop.eup %8183 }
 0xa07   : > { %7354 = vmatmul.mubr.msk.f32.gmra.mrb[182].mxu1 %vm390_vm0, %v5614_v57  ;;  %v5583_v15 = vmul.f32 %v8184_v29, %v5359_v61 }
 0xa09   : > { %v8186_v5 = vpop.eup %8185  ;;  %v5615_v45 = vadd.f32 %v5583_v15, %v11204_v20 }
 0xa0a   : > { %v5584_v13 = vmul.f32 %v8186_v5, %v5360_v25  ;;  %v5961_v5 = vld [vmem:[%s11292_s24 + $0xa8] sm:$0xff] }
 0xa0b   : > { %7356 = vmatprep.mubr.msk.f32.mxu1 %vm390_vm0, %v5615_v45  ;;  %v5960_v45 = vld [vmem:[%s11292_s24 + $0xa0] sm:$0xff] }
 0xa0c   : > { %v5616_v51 = vadd.f32 %v5584_v13, %v11220_v6 }
 0xa0e   : > { %7357 = vmatmul.mubr.msk.f32.gmra.mrb[184].mxu1 %vm390_vm0, %v5616_v51 }
 0xa31   : > { %v7313_v20 = vpop.f32.mrb[154].mxu1 }
 0xa32   : > { %v5973_v6 = vadd.f32 %v7313_v20, %v5941_v36  ;;  %v5781_v4 = vpop.f32.mrb[155].mxu1  ;;  %v5963_v20 = vld [vmem:[%s11292_s24 + $0xb8] sm:$0xff] }
 0xa33   : > { %v5972_v49 = vadd.f32 %v5940_v3, %v5781_v4 }
 0xa34   : > { %6005 = vst.msk [vmem:[%s11299_s27 + $0x8] sm:$0xff] %vm390_vm0, %v5973_v6  ;;  %v5962_v6 = vld [vmem:[%s11292_s24 + $0xb0] sm:$0xff] }
 0xa35   : > { %6004 = vst.msk [vmem:[%s11299_s27] sm:$0xff] %vm390_vm0, %v5972_v49 }
 0xa3a   : > { %v7316_v40 = vpop.f32.mrb[156].mxu1 }
 0xa3b   : > { %v5975_v47 = vadd.f32 %v7316_v40, %v5943_v12  ;;  %v5791_v42 = vpop.f32.mrb[157].mxu1  ;;  %v5965_v40 = vld [vmem:[%s11292_s24 + $0xc8] sm:$0xff] }
 0xa3c   : > { %v5974_v35 = vadd.f32 %v5942_v2, %v5791_v42 }
 0xa3d   : > { %6007 = vst.msk [vmem:[%s11299_s27 + $0x18] sm:$0xff] %vm390_vm0, %v5975_v47  ;;  %v5964_v47 = vld [vmem:[%s11292_s24 + $0xc0] sm:$0xff] }
 0xa3e   : > { %6006 = vst.msk [vmem:[%s11299_s27 + $0x10] sm:$0xff] %vm390_vm0, %v5974_v35 }
 0xa4a   : > { %v7319_v52 = vpop.f32.mrb[158].mxu1 }
 0xa4b   : > { %v5977_v62 = vadd.f32 %v7319_v52, %v5945_v11  ;;  %v5801_v23 = vpop.f32.mrb[159].mxu1  ;;  %v5967_v52 = vld [vmem:[%s11292_s24 + $0xd8] sm:$0xff] }
 0xa4c   : > { %v5976_v60 = vadd.f32 %v5944_v0, %v5801_v23 }
 0xa4d   : > { %6009 = vst.msk [vmem:[%s11299_s27 + $0x28] sm:$0xff] %vm390_vm0, %v5977_v62  ;;  %v5966_v62 = vld [vmem:[%s11292_s24 + $0xd0] sm:$0xff] }
 0xa4e   : > { %6008 = vst.msk [vmem:[%s11299_s27 + $0x20] sm:$0xff] %vm390_vm0, %v5976_v60 }
 0xa53   : > { %v7322_v31 = vpop.f32.mrb[160].mxu1 }
 0xa54   : > { %v5979_v39 = vadd.f32 %v7322_v31, %v5947_v48  ;;  %v5811_v54 = vpop.f32.mrb[161].mxu1  ;;  %v5969_v31 = vld [vmem:[%s11292_s24 + $0xe8] sm:$0xff] }
 0xa55   : > { %v5978_v34 = vadd.f32 %v5946_v14, %v5811_v54 }
 0xa56   : > { %6011 = vst.msk [vmem:[%s11299_s27 + $0x38] sm:$0xff] %vm390_vm0, %v5979_v39  ;;  %v5968_v39 = vld [vmem:[%s11292_s24 + $0xe0] sm:$0xff] }
 0xa57   : > { %6010 = vst.msk [vmem:[%s11299_s27 + $0x30] sm:$0xff] %vm390_vm0, %v5978_v34 }
 0xa62   : > { %v7325_v10 = vpop.f32.mrb[162].mxu1 }
 0xa63   : > { %v5981_v44 = vadd.f32 %v7325_v10, %v5949_v58  ;;  %v5821_v61 = vpop.f32.mrb[163].mxu1  ;;  %v5971_v10 = vld [vmem:[%s11292_s24 + $0xf8] sm:$0xff] }
 0xa64   : > { %v5980_v19 = vadd.f32 %v5948_v43, %v5821_v61 }
 0xa65   : > { %6013 = vst.msk [vmem:[%s11299_s27 + $0x48] sm:$0xff] %vm390_vm0, %v5981_v44  ;;  %v5970_v44 = vld [vmem:[%s11292_s24 + $0xf0] sm:$0xff] }
 0xa66   : > { %6012 = vst.msk [vmem:[%s11299_s27 + $0x40] sm:$0xff] %vm390_vm0, %v5980_v19 }
 0xa6d   : > { %v7328_v37 = vpop.f32.mrb[164].mxu1 }
 0xa6e   : > { %v5983_v46 = vadd.f32 %v7328_v37, %v5951_v33  ;;  %v5831_v22 = vpop.f32.mrb[165].mxu1 }
 0xa6f   : > { %v5982_v25 = vadd.f32 %v5950_v1, %v5831_v22 }
 0xa70   : > { %6015 = vst.msk [vmem:[%s11299_s27 + $0x58] sm:$0xff] %vm390_vm0, %v5983_v46 }
 0xa71   : > { %6014 = vst.msk [vmem:[%s11299_s27 + $0x50] sm:$0xff] %vm390_vm0, %v5982_v25 }
 0xa7b   : > { %v7331_v63 = vpop.f32.mrb[166].mxu1 }
 0xa7c   : > { %v5985_v41 = vadd.f32 %v7331_v63, %v5953_v32  ;;  %v5841_v9 = vpop.f32.mrb[167].mxu1 }
 0xa7d   : > { %v5984_v21 = vadd.f32 %v5952_v18, %v5841_v9 }
 0xa7e   : > { %6017 = vst.msk [vmem:[%s11299_s27 + $0x68] sm:$0xff] %vm390_vm0, %v5985_v41 }
 0xa7f   : > { %6016 = vst.msk [vmem:[%s11299_s27 + $0x60] sm:$0xff] %vm390_vm0, %v5984_v21 }
 0xa87   : > { %v7334_v17 = vpop.f32.mrb[168].mxu1 }
 0xa88   : > { %v5987_v55 = vadd.f32 %v7334_v17, %v5955_v50  ;;  %v5851_v26 = vpop.f32.mrb[169].mxu1 }
 0xa89   : > { %v5986_v28 = vadd.f32 %v5954_v53, %v5851_v26 }
 0xa8a   : > { %6019 = vst.msk [vmem:[%s11299_s27 + $0x78] sm:$0xff] %vm390_vm0, %v5987_v55 }
 0xa8b   : > { %6018 = vst.msk [vmem:[%s11299_s27 + $0x70] sm:$0xff] %vm390_vm0, %v5986_v28 }
 0xa92   : > { %v7337_v8 = vpop.f32.mrb[170].mxu1 }
 0xa93   : > { %v5989_v7 = vadd.f32 %v7337_v8, %v5957_v30  ;;  %v5861_v16 = vpop.f32.mrb[171].mxu1 }
 0xa94   : > { %v5988_v27 = vadd.f32 %v5956_v56, %v5861_v16 }
 0xa95   : > { %6021 = vst.msk [vmem:[%s11299_s27 + $0x88] sm:$0xff] %vm390_vm0, %v5989_v7 }
 0xa96   : > { %6020 = vst.msk [vmem:[%s11299_s27 + $0x80] sm:$0xff] %vm390_vm0, %v5988_v27 }
 0xaa0   : > { %v7340_v38 = vpop.f32.mrb[172].mxu1 }
 0xaa1   : > { %v5991_v57 = vadd.f32 %v7340_v38, %v5959_v59  ;;  %v5871_v29 = vpop.f32.mrb[173].mxu1 }
 0xaa2   : > { %v5990_v15 = vadd.f32 %v5958_v24, %v5871_v29 }
 0xaa3   : > { %6023 = vst.msk [vmem:[%s11299_s27 + $0x98] sm:$0xff] %vm390_vm0, %v5991_v57 }
 0xaa4   : > { %6022 = vst.msk [vmem:[%s11299_s27 + $0x90] sm:$0xff] %vm390_vm0, %v5990_v15 }
 0xaac   : > { %v7343_v13 = vpop.f32.mrb[174].mxu1 }
 0xaad   : > { %v5993_v51 = vadd.f32 %v7343_v13, %v5961_v5  ;;  %v5881_v36 = vpop.f32.mrb[175].mxu1 }
 0xaae   : > { %v5992_v3 = vadd.f32 %v5960_v45, %v5881_v36 }
 0xaaf   : > { %6025 = vst.msk [vmem:[%s11299_s27 + $0xa8] sm:$0xff] %vm390_vm0, %v5993_v51 }
 0xab0   : > { %6024 = vst.msk [vmem:[%s11299_s27 + $0xa0] sm:$0xff] %vm390_vm0, %v5992_v3 }
 0xaba   : > { %v7346_v4 = vpop.f32.mrb[176].mxu1 }
 0xabb   : > { %v5995_v49 = vadd.f32 %v7346_v4, %v5963_v20  ;;  %v5891_v12 = vpop.f32.mrb[177].mxu1 }
 0xabc   : > { %v5994_v2 = vadd.f32 %v5962_v6, %v5891_v12 }
 0xabd   : > { %6027 = vst.msk [vmem:[%s11299_s27 + $0xb8] sm:$0xff] %vm390_vm0, %v5995_v49 }
 0xabe   : > { %6026 = vst.msk [vmem:[%s11299_s27 + $0xb0] sm:$0xff] %vm390_vm0, %v5994_v2 }
 0xac4   : > { %v7349_v42 = vpop.f32.mrb[178].mxu1 }
 0xac5   : > { %v5997_v35 = vadd.f32 %v7349_v42, %v5965_v40  ;;  %v5901_v11 = vpop.f32.mrb[179].mxu1 }
 0xac6   : > { %v5996_v0 = vadd.f32 %v5964_v47, %v5901_v11 }
 0xac7   : > { %6029 = vst.msk [vmem:[%s11299_s27 + $0xc8] sm:$0xff] %vm390_vm0, %v5997_v35 }
 0xac8   : > { %6028 = vst.msk [vmem:[%s11299_s27 + $0xc0] sm:$0xff] %vm390_vm0, %v5996_v0 }
 0xad2   : > { %v7352_v23 = vpop.f32.mrb[180].mxu1 }
 0xad3   : > { %v5999_v60 = vadd.f32 %v7352_v23, %v5967_v52  ;;  %v5911_v48 = vpop.f32.mrb[181].mxu1 }
 0xad4   : > { %v5998_v14 = vadd.f32 %v5966_v62, %v5911_v48 }
 0xad5   : > { %6031 = vst.msk [vmem:[%s11299_s27 + $0xd8] sm:$0xff] %vm390_vm0, %v5999_v60 }
 0xad6   : > { %6030 = vst.msk [vmem:[%s11299_s27 + $0xd0] sm:$0xff] %vm390_vm0, %v5998_v14 }
 0xada   : > { %v7355_v54 = vpop.f32.mrb[182].mxu1 }
 0xadb   : > { %v6001_v34 = vadd.f32 %v7355_v54, %v5969_v31  ;;  %v5921_v58 = vpop.f32.mrb[183].mxu1 }
 0xadc   : > { %v6000_v43 = vadd.f32 %v5968_v39, %v5921_v58 }
 0xadd   : > { %6033 = vst.msk [vmem:[%s11299_s27 + $0xe8] sm:$0xff] %vm390_vm0, %v6001_v34 }
 0xade   : > { %6032 = vst.msk [vmem:[%s11299_s27 + $0xe0] sm:$0xff] %vm390_vm0, %v6000_v43 }
 0xae1   : > { %v7358_v61 = vpop.f32.mrb[184].mxu1 }
 0xae2   : > { %v6003_v19 = vadd.f32 %v7358_v61, %v5971_v10  ;;  %v5931_v33 = vpop.f32.mrb[185].mxu1 }
 0xae3   : > { %v6002_v1 = vadd.f32 %v5970_v44, %v5931_v33 }
 0xae4   : > { %6035 = vst.msk [vmem:[%s11299_s27 + $0xf8] sm:$0xff] %vm390_vm0, %v6003_v19 }
 0xae5   : > { %6034 = vst.msk [vmem:[%s11299_s27 + $0xf0] sm:$0xff] %vm390_vm0, %v6002_v1 }
 0xae6 PF: > { %s19_s30 = sadd.s32 1, %s8218_s30  }
 0xae7   : > { %p16_p4 = scmp.ge.s32.totalorder %s19_s30, 4  }
 0xae9   :  { %18 = sbr.rel (!%p16_p4) target bundleno = 1 (0x1), region = 89 }

</bundles_post_ra>
